<compile_context>
chip_gen: v7x
topology: tpu7x:2x2x1
jax: 0.10.0
libtpu: 0.0.40
codegen_flags: <defaults>
</compile_context>

<pallas_src>
import functools

import jax
import jax.numpy as jnp
from jax import lax
from jax.experimental import pallas as pl
from jax.experimental.pallas import tpu as pltpu


# ---------------------------------------------------------------------------
# Kernel
# ---------------------------------------------------------------------------
def _bottleneck_kernel(downsampling, stride, H, W, Ho, Wo, *refs):
    if downsampling:
        (x_ref, w1_ref, s1_ref, b1_ref, w2_ref, s2_ref, b2_ref,
         w3_ref, s3_ref, b3_ref, wd_ref, sd_ref, bd_ref,
         o_ref, pad_ref) = refs
    else:
        (x_ref, w1_ref, s1_ref, b1_ref, w2_ref, s2_ref, b2_ref,
         w3_ref, s3_ref, b3_ref,
         o_ref, pad_ref) = refs
        wd_ref = sd_ref = bd_ref = None

    Cp = x_ref.shape[-1]          # padded Cin   (multiple of 128)
    Pp = w1_ref.shape[-1]         # padded places
    Op = w3_ref.shape[-1]         # padded Cout
    W2p = pad_ref.shape[1]        # W+2 rounded up to a multiple of 8
    mdt = w2_ref.dtype            # MXU operand dtype (bf16)
    pdt = pad_ref.dtype           # scratch dtype (f32)

    x = x_ref[0]                                          # (H, W, Cp) bf16

    # ---- conv1: 1x1 (no bias) + BN + ReLU --------------------------------
    h1 = jnp.dot(x.reshape(H * W, Cp), w1_ref[...],
                 preferred_element_type=jnp.float32)      # (H*W, Pp) f32
    h1 = jnp.maximum(h1 * s1_ref[...] + b1_ref[...], 0.0)

    # ---- conv2: 3x3, padding 1, as 9 per-tap MXU matmuls ------------------
    # Zero only the 1-wide halo strips; the interior is fully overwritten.
    pad_ref[pl.ds(0, 1), pl.ds(0, W2p), :] = jnp.zeros((1, W2p, Pp), pdt)
    pad_ref[pl.ds(H + 1, 1), pl.ds(0, W2p), :] = jnp.zeros((1, W2p, Pp), pdt)
    pad_ref[pl.ds(0, H + 2), pl.ds(0, 1), :] = jnp.zeros((H + 2, 1, Pp), pdt)
    pad_ref[pl.ds(0, H + 2), pl.ds(W + 1, 1), :] = jnp.zeros((H + 2, 1, Pp), pdt)
    pad_ref[pl.ds(1, H), pl.ds(1, W), :] = h1.reshape(H, W, Pp)

    acc2 = jnp.zeros((Ho * Wo, Pp), jnp.float32)
    for kh in range(3):
        for kw in range(3):
            t = kh * 3 + kw
            tap = pad_ref[pl.ds(kh, H), pl.ds(kw, W), :]      # (H, W, Pp) f32
            if stride > 1:
                # Pre-decimate BEFORE the matmul: M dim is Ho*Wo, not H*W.
                tap = tap[::stride, ::stride, :]
            acc2 = acc2 + jnp.dot(
                tap.reshape(Ho * Wo, Pp).astype(mdt),
                w2_ref[pl.ds(t * Pp, Pp), :],
                preferred_element_type=jnp.float32)
    h2 = jnp.maximum(acc2 * s2_ref[...] + b2_ref[...], 0.0)   # (Ho*Wo, Pp)

    # ---- conv3: 1x1 (no bias) + BN (ReLU deferred past residual add) -----
    h3 = jnp.dot(h2.astype(mdt), w3_ref[...],
                 preferred_element_type=jnp.float32)          # (Ho*Wo, Op)
    h3 = h3 * s3_ref[...] + b3_ref[...]

    # ---- residual branch ---------------------------------------------------
    if downsampling:
        xr = x if stride == 1 else x[::stride, ::stride, :]
        res = jnp.dot(xr.reshape(Ho * Wo, Cp), wd_ref[...],
                      preferred_element_type=jnp.float32)
        res = res * sd_ref[...] + bd_ref[...]
    else:
        # identity shortcut (Cin == Cout, stride == 1; asserted in wrapper)
        res = x.reshape(H * W, Cp).astype(jnp.float32)

    # Lane-dense bf16 (Ho*Wo, Op) store; Op is a multiple of 128.
    o_ref[0] = jnp.maximum(h3 + res, 0.0).astype(o_ref.dtype)


# ---------------------------------------------------------------------------
# Wrapper
# ---------------------------------------------------------------------------
def _round_up(v, m):
    return (v + m - 1) // m * m


def _nbytes(shape, dtype):
    n = 1
    for d in shape:
        n *= int(d)
    return n * jnp.dtype(dtype).itemsize


def bottleneck_forward(x_nhwc, params, *, stride=1, downsampling=False,
                       out_dtype=jnp.bfloat16, lane=128):
    N, H, W, Cin = x_nhwc.shape
    Cin_w, P = params["w1"].shape
    assert Cin_w == Cin, (Cin_w, Cin)
    Cout = params["w3"].shape[1]
    Ho = (H - 1) // stride + 1
    Wo = (W - 1) // stride + 1

    if not downsampling:
        assert Cin == Cout and stride == 1, (
            "identity shortcut requires Cin == Cout and stride == 1")

    Cp = _round_up(Cin, lane)
    Pp = _round_up(P, lane)
    Op = _round_up(Cout, lane)
    W2p = _round_up(W + 2, 8)

    cdt = jnp.bfloat16  # matmul-operand dtype (f32 accumulation on the MXU)

    def pad2(a, rows, cols, dtype):
        return jnp.pad(a, ((0, rows - a.shape[0]),
                           (0, cols - a.shape[1]))).astype(dtype)

    # Accept bf16 NHWC input directly; pad channels only when necessary
    # (padded channels stay exactly zero end-to-end).
    x_p = x_nhwc
    if Cp != Cin:
        x_p = jnp.pad(x_p, ((0, 0), (0, 0), (0, 0), (0, Cp - Cin)))
    if x_p.dtype != cdt:
        x_p = x_p.astype(cdt)

    w1 = pad2(params["w1"], Cp, Pp, cdt)
    s1 = pad2(params["s1"], 1, Pp, jnp.float32)
    b1 = pad2(params["b1"], 1, Pp, jnp.float32)
    w2 = jnp.pad(params["w2"],
                 ((0, 0), (0, Pp - P), (0, Pp - P))).astype(cdt)
    w2 = w2.reshape(9 * Pp, Pp)                       # tap-major rows
    s2 = pad2(params["s2"], 1, Pp, jnp.float32)
    b2 = pad2(params["b2"], 1, Pp, jnp.float32)
    w3 = pad2(params["w3"], Pp, Op, cdt)
    s3 = pad2(params["s3"], 1, Op, jnp.float32)
    b3 = pad2(params["b3"], 1, Op, jnp.float32)

    args = [x_p, w1, s1, b1, w2, s2, b2, w3, s3, b3]

    def const_spec(shape):
        nd = len(shape)
        return pl.BlockSpec(shape, lambda n, _nd=nd: (0,) * _nd)

    in_specs = [pl.BlockSpec((1, H, W, Cp), lambda n: (n, 0, 0, 0))]
    in_specs += [const_spec(a.shape) for a in args[1:]]

    if downsampling:
        wd = pad2(params["wd"], Cp, Op, cdt)
        sd = pad2(params["sd"], 1, Op, jnp.float32)
        bd = pad2(params["bd"], 1, Op, jnp.float32)
        extra = [wd, sd, bd]
        args += extra
        in_specs += [const_spec(a.shape) for a in extra]

    kernel = functools.partial(_bottleneck_kernel, downsampling, stride,
                               H, W, Ho, Wo)

    # VMEM budget derived from actual block + scratch sizes (double-buffered
    # blocks + scratch + headroom for f32 intermediates), clamped.
    block_bytes = (_nbytes((1, H, W, Cp), cdt)
                   + _nbytes((1, Ho * Wo, Op), out_dtype))
    for a in args[1:]:
        block_bytes += _nbytes(a.shape, a.dtype)
    scratch_bytes = _nbytes((H + 2, W2p, Pp), jnp.float32)
    interm_bytes = 4 * _nbytes((H * W, Pp), jnp.float32)
    vmem_limit = 2 * block_bytes + scratch_bytes + interm_bytes + (8 << 20)
    vmem_limit = int(min(max(vmem_limit, 16 << 20), 96 << 20))

    out_padded = pl.pallas_call(
        kernel,
        out_shape=jax.ShapeDtypeStruct((N, Ho * Wo, Op), out_dtype),
        grid=(N,),
        in_specs=in_specs,
        out_specs=pl.BlockSpec((1, Ho * Wo, Op), lambda n: (n, 0, 0)),
        scratch_shapes=[
            pltpu.VMEM((H + 2, W2p, Pp), jnp.float32),   # halo-padded h1
        ],
        compiler_params=pltpu.CompilerParams(
            dimension_semantics=("parallel",),
            vmem_limit_bytes=vmem_limit,
        ),
    )(*args)

    # Slice padded channels only when needed; restore NHWC spatial shape.
    out = out_padded if Op == Cout else out_padded[:, :, :Cout]
    return out.reshape(N, Ho, Wo, Cout)


# ---------------------------------------------------------------------------
# Parameter construction (deterministic, synthetic) and pure-JAX reference.
# ---------------------------------------------------------------------------
def _bn_fold(k, c, eps=1e-5):
    k1, k2, k3, k4 = jax.random.split(k, 4)
    gamma = jax.random.uniform(k1, (1, c), jnp.float32, 0.5, 1.5)
    beta = jax.random.normal(k2, (1, c), jnp.float32) * 0.1
    mean = jax.random.normal(k3, (1, c), jnp.float32) * 0.1
    var = jax.random.uniform(k4, (1, c), jnp.float32, 0.5, 1.5)
    scale = gamma / jnp.sqrt(var + eps)
    bias = beta - mean * scale
    return scale, bias


def init_params(key, in_places, places, expansion):
    Cout = places * expansion
    ks = jax.random.split(key, 8)

    def w(k, shape, fan_in):
        return jax.random.normal(k, shape, jnp.float32) / jnp.sqrt(float(fan_in))

    p = {}
    p["w1"] = w(ks[0], (in_places, places), in_places)        # 1x1: (Cin, P)
    p["s1"], p["b1"] = _bn_fold(ks[1], places)
    p["w2"] = w(ks[2], (9, places, places), 9 * places)       # 3x3: (kh*3+kw, Pin, Pout)
    p["s2"], p["b2"] = _bn_fold(ks[3], places)
    p["w3"] = w(ks[4], (places, Cout), places)                # 1x1: (P, Cout)
    p["s3"], p["b3"] = _bn_fold(ks[5], Cout)
    p["wd"] = w(ks[6], (in_places, Cout), in_places)          # downsample 1x1
    p["sd"], p["bd"] = _bn_fold(ks[7], Cout)
    return p


def reference(x, p, stride, downsampling):
    # Kernel feeds bf16 operands to the MXU with f32 accumulation; mirror
    # that rounding here so the comparison is tight.
    q = lambda a: a.astype(jnp.bfloat16).astype(jnp.float32)

    def conv(a, w_hwio, s, padding):
        return lax.conv_general_dilated(
            q(a), q(w_hwio), (s, s), padding,
            dimension_numbers=("NHWC", "HWIO", "NHWC"))

    Cin, P = p["w1"].shape
    Cout = p["w3"].shape[1]
    h = conv(x, p["w1"].reshape(1, 1, Cin, P), 1, "VALID")
    h = jnp.maximum(h * p["s1"] + p["b1"], 0.0)
    h = conv(h, p["w2"].reshape(3, 3, P, P), stride, ((1, 1), (1, 1)))
    h = jnp.maximum(h * p["s2"] + p["b2"], 0.0)
    h = conv(h, p["w3"].reshape(1, 1, P, Cout), 1, "VALID")
    h = h * p["s3"] + p["b3"]
    if downsampling:
        r = conv(x, p["wd"].reshape(1, 1, Cin, Cout), stride, "VALID")
        r = r * p["sd"] + p["bd"]
    else:
        r = q(x)
    return jnp.maximum(h + r, 0.0)


def _run_case(key, N, H, W, in_places, places, expansion, stride, downsampling):
    kx, kp = jax.random.split(key)
    # PyTorch-style NCHW input, transposed to the kernel's NHWC layout.
    x_nchw = jax.random.normal(kx, (N, in_places, H, W), jnp.float32)
    x_nhwc = jnp.transpose(x_nchw, (0, 2, 3, 1))
    params = init_params(kp, in_places, places, expansion)

    out = bottleneck_forward(x_nhwc, params, stride=stride,
                             downsampling=downsampling)
    out = jax.block_until_ready(out)

    ref = reference(x_nhwc, params, stride, downsampling)
    assert out.shape == ref.shape, (out.shape, ref.shape)
    out_f32 = out.astype(jnp.float32)
    err = float(jnp.max(jnp.abs(out_f32 - ref)))
    # bf16 output quantization (~0.4% relative) on top of the bf16-operand
    # matmul rounding already mirrored in the reference.
    assert jnp.allclose(out_f32, ref, rtol=1e-2, atol=1e-2), err
    return err


if __name__ == "__main__":
    key = jax.random.PRNGKey(0)
    k1, k2 = jax.random.split(key)

    # Case 1: projection shortcut (downsampling=True).
    _run_case(k1, N=2, H=16, W=16, in_places=16, places=8, expansion=4,
              stride=1, downsampling=True)

    # Case 2: identity shortcut (downsampling=False, Cin == Cout).
    _run_case(k2, N=2, H=16, W=16, in_places=32, places=8, expansion=4,
              stride=1, downsampling=False)

    print("KERNEL_OK")
</pallas_src>

<mosaic_0001>
module attributes {stable_mosaic.version = 11 : i64} {
  func.func @_bottleneck_kernel(%arg0: i32, %arg1: memref<1x16x16x128xbf16, #tpu.memory_space<vmem>>, %arg2: memref<128x128xbf16, #tpu.memory_space<vmem>>, %arg3: memref<1x128xf32, #tpu.memory_space<vmem>>, %arg4: memref<1x128xf32, #tpu.memory_space<vmem>>, %arg5: memref<1152x128xbf16, #tpu.memory_space<vmem>>, %arg6: memref<1x128xf32, #tpu.memory_space<vmem>>, %arg7: memref<1x128xf32, #tpu.memory_space<vmem>>, %arg8: memref<128x128xbf16, #tpu.memory_space<vmem>>, %arg9: memref<1x128xf32, #tpu.memory_space<vmem>>, %arg10: memref<1x128xf32, #tpu.memory_space<vmem>>, %arg11: memref<128x128xbf16, #tpu.memory_space<vmem>>, %arg12: memref<1x128xf32, #tpu.memory_space<vmem>>, %arg13: memref<1x128xf32, #tpu.memory_space<vmem>>, %arg14: memref<1x256x128xbf16, #tpu.memory_space<vmem>>, %arg15: memref<18x24x128xf32, #tpu.memory_space<vmem>>) attributes {dimension_semantics = [#tpu.dimension_semantics<parallel>], iteration_bounds = array<i64: 2>, scalar_prefetch = 0 : i64, scratch_operands = 1 : i64, tpu.core_type = #tpu.core_type<tc>, window_params = [{transform_indices = @transform_0, window_bounds = array<i64: 1, 16, 16, 128>}, {pipeline_mode = #tpu.pipeline_mode<synchronous>, transform_indices = @transform_1, window_bounds = array<i64: 128, 128>}, {pipeline_mode = #tpu.pipeline_mode<synchronous>, transform_indices = @transform_2, window_bounds = array<i64: 1, 128>}, {pipeline_mode = #tpu.pipeline_mode<synchronous>, transform_indices = @transform_3, window_bounds = array<i64: 1, 128>}, {pipeline_mode = #tpu.pipeline_mode<synchronous>, transform_indices = @transform_4, window_bounds = array<i64: 1152, 128>}, {pipeline_mode = #tpu.pipeline_mode<synchronous>, transform_indices = @transform_5, window_bounds = array<i64: 1, 128>}, {pipeline_mode = #tpu.pipeline_mode<synchronous>, transform_indices = @transform_6, window_bounds = array<i64: 1, 128>}, {pipeline_mode = #tpu.pipeline_mode<synchronous>, transform_indices = @transform_7, window_bounds = array<i64: 128, 128>}, {pipeline_mode = #tpu.pipeline_mode<synchronous>, transform_indices = @transform_8, window_bounds = array<i64: 1, 128>}, {pipeline_mode = #tpu.pipeline_mode<synchronous>, transform_indices = @transform_9, window_bounds = array<i64: 1, 128>}, {pipeline_mode = #tpu.pipeline_mode<synchronous>, transform_indices = @transform_10, window_bounds = array<i64: 128, 128>}, {pipeline_mode = #tpu.pipeline_mode<synchronous>, transform_indices = @transform_11, window_bounds = array<i64: 1, 128>}, {pipeline_mode = #tpu.pipeline_mode<synchronous>, transform_indices = @transform_12, window_bounds = array<i64: 1, 128>}, {transform_indices = @transform_13, window_bounds = array<i64: 1, 256, 128>}]} {
    %c0 = arith.constant 0 : index
    %c0_0 = arith.constant 0 : index
    %c0_1 = arith.constant 0 : index
    %c0_2 = arith.constant 0 : index
    %0 = vector.load %arg1[%c0, %c0_0, %c0_1, %c0_2] : memref<1x16x16x128xbf16, #tpu.memory_space<vmem>>, vector<1x16x16x128xbf16>
    %1 = vector.shape_cast %0 : vector<1x16x16x128xbf16> to vector<16x16x128xbf16>
    %2 = vector.shape_cast %1 : vector<16x16x128xbf16> to vector<256x128xbf16>
    %c0_3 = arith.constant 0 : index
    %c0_4 = arith.constant 0 : index
    %3 = vector.load %arg2[%c0_3, %c0_4] : memref<128x128xbf16, #tpu.memory_space<vmem>>, vector<128x128xbf16>
    %cst = arith.constant dense<0.000000e+00> : vector<256x128xf32>
    %4 = tpu.matmul %2, %3, %cst {dimension_numbers = #tpu.dot_dimension_numbers<[1], [0], [0], [1], [0, 0, 1, 1], [], []>} : vector<256x128xbf16>, vector<128x128xbf16>, vector<256x128xf32> -> vector<256x128xf32>
    %c0_5 = arith.constant 0 : index
    %c0_6 = arith.constant 0 : index
    %5 = vector.load %arg3[%c0_5, %c0_6] : memref<1x128xf32, #tpu.memory_space<vmem>>, vector<1x128xf32>
    %6 = vector.broadcast %5 : vector<1x128xf32> to vector<256x128xf32>
    %7 = arith.mulf %4, %6 : vector<256x128xf32>
    %c0_7 = arith.constant 0 : index
    %c0_8 = arith.constant 0 : index
    %8 = vector.load %arg4[%c0_7, %c0_8] : memref<1x128xf32, #tpu.memory_space<vmem>>, vector<1x128xf32>
    %9 = vector.broadcast %8 : vector<1x128xf32> to vector<256x128xf32>
    %10 = arith.addf %7, %9 : vector<256x128xf32>
    %cst_9 = arith.constant 0.000000e+00 : f32
    %11 = vector.broadcast %cst_9 : f32 to vector<256x128xf32>
    %12 = arith.maximumf %10, %11 : vector<256x128xf32>
    %cst_10 = arith.constant 0.000000e+00 : f32
    %13 = vector.broadcast %cst_10 : f32 to vector<1x24x128xf32>
    %c0_11 = arith.constant 0 : index
    %c0_12 = arith.constant 0 : index
    %c0_13 = arith.constant 0 : index
    %14 = vector.load %arg15[%c0_11, %c0_12, %c0_13] : memref<18x24x128xf32, #tpu.memory_space<vmem>>, vector<1x24x128xf32>
    tpu.vector_store %arg15[%c0_11, %c0_12, %c0_13], %13 {strides = array<i32>} : memref<18x24x128xf32, #tpu.memory_space<vmem>>, vector<1x24x128xf32>,
    %cst_14 = arith.constant 0.000000e+00 : f32
    %15 = vector.broadcast %cst_14 : f32 to vector<1x24x128xf32>
    %c17 = arith.constant 17 : index
    %c0_15 = arith.constant 0 : index
    %c0_16 = arith.constant 0 : index
    %16 = vector.load %arg15[%c17, %c0_15, %c0_16] : memref<18x24x128xf32, #tpu.memory_space<vmem>>, vector<1x24x128xf32>
    tpu.vector_store %arg15[%c17, %c0_15, %c0_16], %15 {strides = array<i32>} : memref<18x24x128xf32, #tpu.memory_space<vmem>>, vector<1x24x128xf32>,
    %cst_17 = arith.constant 0.000000e+00 : f32
    %17 = vector.broadcast %cst_17 : f32 to vector<18x1x128xf32>
    %c0_18 = arith.constant 0 : index
    %c0_19 = arith.constant 0 : index
    %c0_20 = arith.constant 0 : index
    %18 = vector.load %arg15[%c0_18, %c0_19, %c0_20] : memref<18x24x128xf32, #tpu.memory_space<vmem>>, vector<18x1x128xf32>
    tpu.vector_store %arg15[%c0_18, %c0_19, %c0_20], %17 {strides = array<i32>} : memref<18x24x128xf32, #tpu.memory_space<vmem>>, vector<18x1x128xf32>,
    %cst_21 = arith.constant 0.000000e+00 : f32
    %19 = vector.broadcast %cst_21 : f32 to vector<18x1x128xf32>
    %c0_22 = arith.constant 0 : index
    %c17_23 = arith.constant 17 : index
    %c0_24 = arith.constant 0 : index
    %20 = vector.load %arg15[%c0_22, %c17_23, %c0_24] : memref<18x24x128xf32, #tpu.memory_space<vmem>>, vector<18x1x128xf32>
    tpu.vector_store %arg15[%c0_22, %c17_23, %c0_24], %19 {strides = array<i32>} : memref<18x24x128xf32, #tpu.memory_space<vmem>>, vector<18x1x128xf32>,
    %21 = vector.shape_cast %12 : vector<256x128xf32> to vector<16x16x128xf32>
    %c1 = arith.constant 1 : index
    %c1_25 = arith.constant 1 : index
    %c0_26 = arith.constant 0 : index
    %22 = vector.load %arg15[%c1, %c1_25, %c0_26] : memref<18x24x128xf32, #tpu.memory_space<vmem>>, vector<16x16x128xf32>
    tpu.vector_store %arg15[%c1, %c1_25, %c0_26], %21 {strides = array<i32>} : memref<18x24x128xf32, #tpu.memory_space<vmem>>, vector<16x16x128xf32>,
    %cst_27 = arith.constant 0.000000e+00 : f32
    %23 = vector.broadcast %cst_27 : f32 to vector<256x128xf32>
    %c0_28 = arith.constant 0 : index
    %c0_29 = arith.constant 0 : index
    %c0_30 = arith.constant 0 : index
    %24 = vector.load %arg15[%c0_28, %c0_29, %c0_30] : memref<18x24x128xf32, #tpu.memory_space<vmem>>, vector<16x16x128xf32>
    %25 = vector.shape_cast %24 : vector<16x16x128xf32> to vector<256x128xf32>
    %26 = arith.truncf %25 : vector<256x128xf32> to vector<256x128xbf16>
    %c0_31 = arith.constant 0 : index
    %c0_32 = arith.constant 0 : index
    %27 = vector.load %arg5[%c0_31, %c0_32] : memref<1152x128xbf16, #tpu.memory_space<vmem>>, vector<128x128xbf16>
    %cst_33 = arith.constant dense<0.000000e+00> : vector<256x128xf32>
    %28 = tpu.matmul %26, %27, %cst_33 {dimension_numbers = #tpu.dot_dimension_numbers<[1], [0], [0], [1], [0, 0, 1, 1], [], []>} : vector<256x128xbf16>, vector<128x128xbf16>, vector<256x128xf32> -> vector<256x128xf32>
    %29 = arith.addf %23, %28 : vector<256x128xf32>
    %c0_34 = arith.constant 0 : index
    %c1_35 = arith.constant 1 : index
    %c0_36 = arith.constant 0 : index
    %30 = vector.load %arg15[%c0_34, %c1_35, %c0_36] : memref<18x24x128xf32, #tpu.memory_space<vmem>>, vector<16x16x128xf32>
    %31 = vector.shape_cast %30 : vector<16x16x128xf32> to vector<256x128xf32>
    %32 = arith.truncf %31 : vector<256x128xf32> to vector<256x128xbf16>
    %c128 = arith.constant 128 : index
    %c0_37 = arith.constant 0 : index
    %33 = vector.load %arg5[%c128, %c0_37] : memref<1152x128xbf16, #tpu.memory_space<vmem>>, vector<128x128xbf16>
    %cst_38 = arith.constant dense<0.000000e+00> : vector<256x128xf32>
    %34 = tpu.matmul %32, %33, %cst_38 {dimension_numbers = #tpu.dot_dimension_numbers<[1], [0], [0], [1], [0, 0, 1, 1], [], []>} : vector<256x128xbf16>, vector<128x128xbf16>, vector<256x128xf32> -> vector<256x128xf32>
    %35 = arith.addf %29, %34 : vector<256x128xf32>
    %c0_39 = arith.constant 0 : index
    %c2 = arith.constant 2 : index
    %c0_40 = arith.constant 0 : index
    %36 = vector.load %arg15[%c0_39, %c2, %c0_40] : memref<18x24x128xf32, #tpu.memory_space<vmem>>, vector<16x16x128xf32>
    %37 = vector.shape_cast %36 : vector<16x16x128xf32> to vector<256x128xf32>
    %38 = arith.truncf %37 : vector<256x128xf32> to vector<256x128xbf16>
    %c256 = arith.constant 256 : index
    %c0_41 = arith.constant 0 : index
    %39 = vector.load %arg5[%c256, %c0_41] : memref<1152x128xbf16, #tpu.memory_space<vmem>>, vector<128x128xbf16>
    %cst_42 = arith.constant dense<0.000000e+00> : vector<256x128xf32>
    %40 = tpu.matmul %38, %39, %cst_42 {dimension_numbers = #tpu.dot_dimension_numbers<[1], [0], [0], [1], [0, 0, 1, 1], [], []>} : vector<256x128xbf16>, vector<128x128xbf16>, vector<256x128xf32> -> vector<256x128xf32>
    %41 = arith.addf %35, %40 : vector<256x128xf32>
    %c1_43 = arith.constant 1 : index
    %c0_44 = arith.constant 0 : index
    %c0_45 = arith.constant 0 : index
    %42 = vector.load %arg15[%c1_43, %c0_44, %c0_45] : memref<18x24x128xf32, #tpu.memory_space<vmem>>, vector<16x16x128xf32>
    %43 = vector.shape_cast %42 : vector<16x16x128xf32> to vector<256x128xf32>
    %44 = arith.truncf %43 : vector<256x128xf32> to vector<256x128xbf16>
    %c384 = arith.constant 384 : index
    %c0_46 = arith.constant 0 : index
    %45 = vector.load %arg5[%c384, %c0_46] : memref<1152x128xbf16, #tpu.memory_space<vmem>>, vector<128x128xbf16>
    %cst_47 = arith.constant dense<0.000000e+00> : vector<256x128xf32>
    %46 = tpu.matmul %44, %45, %cst_47 {dimension_numbers = #tpu.dot_dimension_numbers<[1], [0], [0], [1], [0, 0, 1, 1], [], []>} : vector<256x128xbf16>, vector<128x128xbf16>, vector<256x128xf32> -> vector<256x128xf32>
    %47 = arith.addf %41, %46 : vector<256x128xf32>
    %c1_48 = arith.constant 1 : index
    %c1_49 = arith.constant 1 : index
    %c0_50 = arith.constant 0 : index
    %48 = vector.load %arg15[%c1_48, %c1_49, %c0_50] : memref<18x24x128xf32, #tpu.memory_space<vmem>>, vector<16x16x128xf32>
    %49 = vector.shape_cast %48 : vector<16x16x128xf32> to vector<256x128xf32>
    %50 = arith.truncf %49 : vector<256x128xf32> to vector<256x128xbf16>
    %c512 = arith.constant 512 : index
    %c0_51 = arith.constant 0 : index
    %51 = vector.load %arg5[%c512, %c0_51] : memref<1152x128xbf16, #tpu.memory_space<vmem>>, vector<128x128xbf16>
    %cst_52 = arith.constant dense<0.000000e+00> : vector<256x128xf32>
    %52 = tpu.matmul %50, %51, %cst_52 {dimension_numbers = #tpu.dot_dimension_numbers<[1], [0], [0], [1], [0, 0, 1, 1], [], []>} : vector<256x128xbf16>, vector<128x128xbf16>, vector<256x128xf32> -> vector<256x128xf32>
    %53 = arith.addf %47, %52 : vector<256x128xf32>
    %c1_53 = arith.constant 1 : index
    %c2_54 = arith.constant 2 : index
    %c0_55 = arith.constant 0 : index
    %54 = vector.load %arg15[%c1_53, %c2_54, %c0_55] : memref<18x24x128xf32, #tpu.memory_space<vmem>>, vector<16x16x128xf32>
    %55 = vector.shape_cast %54 : vector<16x16x128xf32> to vector<256x128xf32>
    %56 = arith.truncf %55 : vector<256x128xf32> to vector<256x128xbf16>
    %c640 = arith.constant 640 : index
    %c0_56 = arith.constant 0 : index
    %57 = vector.load %arg5[%c640, %c0_56] : memref<1152x128xbf16, #tpu.memory_space<vmem>>, vector<128x128xbf16>
    %cst_57 = arith.constant dense<0.000000e+00> : vector<256x128xf32>
    %58 = tpu.matmul %56, %57, %cst_57 {dimension_numbers = #tpu.dot_dimension_numbers<[1], [0], [0], [1], [0, 0, 1, 1], [], []>} : vector<256x128xbf16>, vector<128x128xbf16>, vector<256x128xf32> -> vector<256x128xf32>
    %59 = arith.addf %53, %58 : vector<256x128xf32>
    %c2_58 = arith.constant 2 : index
    %c0_59 = arith.constant 0 : index
    %c0_60 = arith.constant 0 : index
    %60 = vector.load %arg15[%c2_58, %c0_59, %c0_60] : memref<18x24x128xf32, #tpu.memory_space<vmem>>, vector<16x16x128xf32>
    %61 = vector.shape_cast %60 : vector<16x16x128xf32> to vector<256x128xf32>
    %62 = arith.truncf %61 : vector<256x128xf32> to vector<256x128xbf16>
    %c768 = arith.constant 768 : index
    %c0_61 = arith.constant 0 : index
    %63 = vector.load %arg5[%c768, %c0_61] : memref<1152x128xbf16, #tpu.memory_space<vmem>>, vector<128x128xbf16>
    %cst_62 = arith.constant dense<0.000000e+00> : vector<256x128xf32>
    %64 = tpu.matmul %62, %63, %cst_62 {dimension_numbers = #tpu.dot_dimension_numbers<[1], [0], [0], [1], [0, 0, 1, 1], [], []>} : vector<256x128xbf16>, vector<128x128xbf16>, vector<256x128xf32> -> vector<256x128xf32>
    %65 = arith.addf %59, %64 : vector<256x128xf32>
    %c2_63 = arith.constant 2 : index
    %c1_64 = arith.constant 1 : index
    %c0_65 = arith.constant 0 : index
    %66 = vector.load %arg15[%c2_63, %c1_64, %c0_65] : memref<18x24x128xf32, #tpu.memory_space<vmem>>, vector<16x16x128xf32>
    %67 = vector.shape_cast %66 : vector<16x16x128xf32> to vector<256x128xf32>
    %68 = arith.truncf %67 : vector<256x128xf32> to vector<256x128xbf16>
    %c896 = arith.constant 896 : index
    %c0_66 = arith.constant 0 : index
    %69 = vector.load %arg5[%c896, %c0_66] : memref<1152x128xbf16, #tpu.memory_space<vmem>>, vector<128x128xbf16>
    %cst_67 = arith.constant dense<0.000000e+00> : vector<256x128xf32>
    %70 = tpu.matmul %68, %69, %cst_67 {dimension_numbers = #tpu.dot_dimension_numbers<[1], [0], [0], [1], [0, 0, 1, 1], [], []>} : vector<256x128xbf16>, vector<128x128xbf16>, vector<256x128xf32> -> vector<256x128xf32>
    %71 = arith.addf %65, %70 : vector<256x128xf32>
    %c2_68 = arith.constant 2 : index
    %c2_69 = arith.constant 2 : index
    %c0_70 = arith.constant 0 : index
    %72 = vector.load %arg15[%c2_68, %c2_69, %c0_70] : memref<18x24x128xf32, #tpu.memory_space<vmem>>, vector<16x16x128xf32>
    %73 = vector.shape_cast %72 : vector<16x16x128xf32> to vector<256x128xf32>
    %74 = arith.truncf %73 : vector<256x128xf32> to vector<256x128xbf16>
    %c1024 = arith.constant 1024 : index
    %c0_71 = arith.constant 0 : index
    %75 = vector.load %arg5[%c1024, %c0_71] : memref<1152x128xbf16, #tpu.memory_space<vmem>>, vector<128x128xbf16>
    %cst_72 = arith.constant dense<0.000000e+00> : vector<256x128xf32>
    %76 = tpu.matmul %74, %75, %cst_72 {dimension_numbers = #tpu.dot_dimension_numbers<[1], [0], [0], [1], [0, 0, 1, 1], [], []>} : vector<256x128xbf16>, vector<128x128xbf16>, vector<256x128xf32> -> vector<256x128xf32>
    %77 = arith.addf %71, %76 : vector<256x128xf32>
    %c0_73 = arith.constant 0 : index
    %c0_74 = arith.constant 0 : index
    %78 = vector.load %arg6[%c0_73, %c0_74] : memref<1x128xf32, #tpu.memory_space<vmem>>, vector<1x128xf32>
    %79 = vector.broadcast %78 : vector<1x128xf32> to vector<256x128xf32>
    %80 = arith.mulf %77, %79 : vector<256x128xf32>
    %c0_75 = arith.constant 0 : index
    %c0_76 = arith.constant 0 : index
    %81 = vector.load %arg7[%c0_75, %c0_76] : memref<1x128xf32, #tpu.memory_space<vmem>>, vector<1x128xf32>
    %82 = vector.broadcast %81 : vector<1x128xf32> to vector<256x128xf32>
    %83 = arith.addf %80, %82 : vector<256x128xf32>
    %cst_77 = arith.constant 0.000000e+00 : f32
    %84 = vector.broadcast %cst_77 : f32 to vector<256x128xf32>
    %85 = arith.maximumf %83, %84 : vector<256x128xf32>
    %86 = arith.truncf %85 : vector<256x128xf32> to vector<256x128xbf16>
    %c0_78 = arith.constant 0 : index
    %c0_79 = arith.constant 0 : index
    %87 = vector.load %arg8[%c0_78, %c0_79] : memref<128x128xbf16, #tpu.memory_space<vmem>>, vector<128x128xbf16>
    %cst_80 = arith.constant dense<0.000000e+00> : vector<256x128xf32>
    %88 = tpu.matmul %86, %87, %cst_80 {dimension_numbers = #tpu.dot_dimension_numbers<[1], [0], [0], [1], [0, 0, 1, 1], [], []>} : vector<256x128xbf16>, vector<128x128xbf16>, vector<256x128xf32> -> vector<256x128xf32>
    %c0_81 = arith.constant 0 : index
    %c0_82 = arith.constant 0 : index
    %89 = vector.load %arg9[%c0_81, %c0_82] : memref<1x128xf32, #tpu.memory_space<vmem>>, vector<1x128xf32>
    %90 = vector.broadcast %89 : vector<1x128xf32> to vector<256x128xf32>
    %91 = arith.mulf %88, %90 : vector<256x128xf32>
    %c0_83 = arith.constant 0 : index
    %c0_84 = arith.constant 0 : index
    %92 = vector.load %arg10[%c0_83, %c0_84] : memref<1x128xf32, #tpu.memory_space<vmem>>, vector<1x128xf32>
    %93 = vector.broadcast %92 : vector<1x128xf32> to vector<256x128xf32>
    %94 = arith.addf %91, %93 : vector<256x128xf32>
    %95 = vector.shape_cast %1 : vector<16x16x128xbf16> to vector<256x128xbf16>
    %c0_85 = arith.constant 0 : index
    %c0_86 = arith.constant 0 : index
    %96 = vector.load %arg11[%c0_85, %c0_86] : memref<128x128xbf16, #tpu.memory_space<vmem>>, vector<128x128xbf16>
    %cst_87 = arith.constant dense<0.000000e+00> : vector<256x128xf32>
    %97 = tpu.matmul %95, %96, %cst_87 {dimension_numbers = #tpu.dot_dimension_numbers<[1], [0], [0], [1], [0, 0, 1, 1], [], []>} : vector<256x128xbf16>, vector<128x128xbf16>, vector<256x128xf32> -> vector<256x128xf32>
    %c0_88 = arith.constant 0 : index
    %c0_89 = arith.constant 0 : index
    %98 = vector.load %arg12[%c0_88, %c0_89] : memref<1x128xf32, #tpu.memory_space<vmem>>, vector<1x128xf32>
    %99 = vector.broadcast %98 : vector<1x128xf32> to vector<256x128xf32>
    %100 = arith.mulf %97, %99 : vector<256x128xf32>
    %c0_90 = arith.constant 0 : index
    %c0_91 = arith.constant 0 : index
    %101 = vector.load %arg13[%c0_90, %c0_91] : memref<1x128xf32, #tpu.memory_space<vmem>>, vector<1x128xf32>
    %102 = vector.broadcast %101 : vector<1x128xf32> to vector<256x128xf32>
    %103 = arith.addf %100, %102 : vector<256x128xf32>
    %104 = arith.addf %94, %103 : vector<256x128xf32>
    %cst_92 = arith.constant 0.000000e+00 : f32
    %105 = vector.broadcast %cst_92 : f32 to vector<256x128xf32>
    %106 = arith.maximumf %104, %105 : vector<256x128xf32>
    %107 = arith.truncf %106 : vector<256x128xf32> to vector<256x128xbf16>
    %c0_93 = arith.constant 0 : index
    %c0_94 = arith.constant 0 : index
    %c0_95 = arith.constant 0 : index
    %108 = vector.load %arg14[%c0_93, %c0_94, %c0_95] : memref<1x256x128xbf16, #tpu.memory_space<vmem>>, vector<1x256x128xbf16>
    %109 = vector.shape_cast %108 : vector<1x256x128xbf16> to vector<256x128xbf16>
    %110 = vector.shape_cast %107 : vector<256x128xbf16> to vector<1x256x128xbf16>
    tpu.vector_store %arg14[%c0_93, %c0_94, %c0_95], %110 {strides = array<i32>} : memref<1x256x128xbf16, #tpu.memory_space<vmem>>, vector<1x256x128xbf16>,
    return
  }
  func.func @transform_0(%arg0: i32) -> (i32, i32, i32, i32) {
    %c0_i32 = arith.constant 0 : i32
    %c0_i32_0 = arith.constant 0 : i32
    %c0_i32_1 = arith.constant 0 : i32
    %c0_i32_2 = arith.constant 0 : i32
    return %arg0, %c0_i32, %c0_i32_0, %c0_i32_1 : i32, i32, i32, i32
  }
  func.func @transform_1(%arg0: i32) -> (i32, i32) {
    %c0_i32 = arith.constant 0 : i32
    %c0_i32_0 = arith.constant 0 : i32
    %c0_i32_1 = arith.constant 0 : i32
    return %c0_i32, %c0_i32_0 : i32, i32
  }
  func.func @transform_2(%arg0: i32) -> (i32, i32) {
    %c0_i32 = arith.constant 0 : i32
    %c0_i32_0 = arith.constant 0 : i32
    %c0_i32_1 = arith.constant 0 : i32
    return %c0_i32, %c0_i32_0 : i32, i32
  }
  func.func @transform_3(%arg0: i32) -> (i32, i32) {
    %c0_i32 = arith.constant 0 : i32
    %c0_i32_0 = arith.constant 0 : i32
    %c0_i32_1 = arith.constant 0 : i32
    return %c0_i32, %c0_i32_0 : i32, i32
  }
  func.func @transform_4(%arg0: i32) -> (i32, i32) {
    %c0_i32 = arith.constant 0 : i32
    %c0_i32_0 = arith.constant 0 : i32
    %c0_i32_1 = arith.constant 0 : i32
    return %c0_i32, %c0_i32_0 : i32, i32
  }
  func.func @transform_5(%arg0: i32) -> (i32, i32) {
    %c0_i32 = arith.constant 0 : i32
    %c0_i32_0 = arith.constant 0 : i32
    %c0_i32_1 = arith.constant 0 : i32
    return %c0_i32, %c0_i32_0 : i32, i32
  }
  func.func @transform_6(%arg0: i32) -> (i32, i32) {
    %c0_i32 = arith.constant 0 : i32
    %c0_i32_0 = arith.constant 0 : i32
    %c0_i32_1 = arith.constant 0 : i32
    return %c0_i32, %c0_i32_0 : i32, i32
  }
  func.func @transform_7(%arg0: i32) -> (i32, i32) {
    %c0_i32 = arith.constant 0 : i32
    %c0_i32_0 = arith.constant 0 : i32
    %c0_i32_1 = arith.constant 0 : i32
    return %c0_i32, %c0_i32_0 : i32, i32
  }
  func.func @transform_8(%arg0: i32) -> (i32, i32) {
    %c0_i32 = arith.constant 0 : i32
    %c0_i32_0 = arith.constant 0 : i32
    %c0_i32_1 = arith.constant 0 : i32
    return %c0_i32, %c0_i32_0 : i32, i32
  }
  func.func @transform_9(%arg0: i32) -> (i32, i32) {
    %c0_i32 = arith.constant 0 : i32
    %c0_i32_0 = arith.constant 0 : i32
    %c0_i32_1 = arith.constant 0 : i32
    return %c0_i32, %c0_i32_0 : i32, i32
  }
  func.func @transform_10(%arg0: i32) -> (i32, i32) {
    %c0_i32 = arith.constant 0 : i32
    %c0_i32_0 = arith.constant 0 : i32
    %c0_i32_1 = arith.constant 0 : i32
    return %c0_i32, %c0_i32_0 : i32, i32
  }
  func.func @transform_11(%arg0: i32) -> (i32, i32) {
    %c0_i32 = arith.constant 0 : i32
    %c0_i32_0 = arith.constant 0 : i32
    %c0_i32_1 = arith.constant 0 : i32
    return %c0_i32, %c0_i32_0 : i32, i32
  }
  func.func @transform_12(%arg0: i32) -> (i32, i32) {
    %c0_i32 = arith.constant 0 : i32
    %c0_i32_0 = arith.constant 0 : i32
    %c0_i32_1 = arith.constant 0 : i32
    return %c0_i32, %c0_i32_0 : i32, i32
  }
  func.func @transform_13(%arg0: i32) -> (i32, i32, i32) {
    %c0_i32 = arith.constant 0 : i32
    %c0_i32_0 = arith.constant 0 : i32
    %c0_i32_1 = arith.constant 0 : i32
    return %arg0, %c0_i32, %c0_i32_0 : i32, i32, i32
  }
}

</mosaic_0001>

<bundles_post_ra>
// kernel: tpu_custom_call.1
= control target key start
LH: loop header
LB: loop body
LE: loop exit
PB: predicated region body
PF: predicated region fallthrough
CT: control target
= control target key end

     0   :  { %s7824_s0 = inlined_call_operand.hbm [shape: bf16[2,16,16,128], index: 0, kind: input, shape index: {}]   ;;  %s7825_s1 = inlined_call_operand.hbm [shape: bf16[128,128], index: 1, kind: input, shape index: {}]   ;;  %s7826_s2 = inlined_call_operand.vmem [shape: f32[1,128], index: 2, kind: input, shape index: {}]   ;;  %s7827_s3 = inlined_call_operand.vmem [shape: f32[1,128], index: 3, kind: input, shape index: {}]   ;;  %s7828_s4 = inlined_call_operand.hbm [shape: bf16[1152,128], index: 4, kind: input, shape index: {}]   ;;  %s7829_s5 = inlined_call_operand.vmem [shape: f32[1,128], index: 5, kind: input, shape index: {}]   ;;  %s7830_s6 = inlined_call_operand.vmem [shape: f32[1,128], index: 6, kind: input, shape index: {}]   ;;  %s7831_s7 = inlined_call_operand.hbm [shape: bf16[128,128], index: 7, kind: input, shape index: {}]   ;;  %s7832_s8 = inlined_call_operand.vmem [shape: f32[1,128], index: 8, kind: input, shape index: {}]   ;;  %s7833_s9 = inlined_call_operand.vmem [shape: f32[1,128], index: 9, kind: input, shape index: {}]   ;;  %s7834_s10 = inlined_call_operand.hbm [shape: bf16[128,128], index: 10, kind: input, shape index: {}]   ;;  %s7835_s11 = inlined_call_operand.vmem [shape: f32[1,128], index: 11, kind: input, shape index: {}]   ;;  %s7836_s12 = inlined_call_operand.vmem [shape: f32[1,128], index: 12, kind: input, shape index: {}]   ;;  %s7837_s13 = inlined_call_operand.hbm [shape: bf16[2,256,128], index: 13, kind: output, shape index: {}]  }
   0x1   :  { %7844 = sst [smem:[#allocation19_spill]] %s7832_s8 }
   0x2   :  { %7845 = sst [smem:[#allocation20_spill]] %s7833_s9 }
   0x3   :  { %7846 = sst [smem:[#allocation21_spill]] %s7835_s11 }
   0x4   :  { %7847 = sst [smem:[#allocation22_spill]] %s7836_s12 }
   0x5   :  { %7848 = sst [smem:[#allocation23_spill]] %s7837_s13 }
   0x6   :  { %18 = vsyncpa [#allocation4], 0 }
   0x7   :  { %20 = vsyncpa [#allocation4 + $0x1], 0 }
   0x8   :  { %21 = vsyncpa [#allocation7], 0 }
   0x9   :  { %22 = vsyncpa [#allocation10], 0 }
   0xa   :  { %23 = vsyncpa [#allocation5], 0 }
   0xb   :  { %25 = vsyncpa [#allocation5 + $0x1], 0  ;;  %s6763_s25 = smov 0   ;;  %s6765_s26 = smov 0  }
   0xc   :  { %s6767_s27 = smov 0   ;;  %s6769_s28 = smov 0  }
   0xd LB: > { %7849 = sst [smem:[#allocation17_spill]] %s6668_s25  ;;  %s6784_s29 = sadd.s32 4294967295, %s6680_s28   ;;  %s6680_s28 = sphi %s6769_s28, %s7877_s28   ;;  %s6676_s27 = sphi %s6767_s27, %s7876_s27   ;;  %s6672_s26 = sphi %s6765_s26, %s7875_s26   ;;  %s6668_s25 = sphi %s6763_s25, %s7874_s25  }
   0xe   : > { %s4820_s30 = sadd.s32 4294967294, %s6680_s28   ;;  %p51_p0 = scmp.ne.s32.totalorder %s6672_s26, %s6668_s25 }
   0xf   : > { %p7841_p1 = scmp.eq.s32.totalorder %s6784_s29, 0  ;;  %p333_p3 = scmp.eq.s32.totalorder %s4820_s30, 1 }
  0x10   : > { %p4821_p5 = scmp.ge.s32.totalorder %s6680_s28, 1  ;;  %p340_p7 = scmp.lt.s32.totalorder %s6680_s28, 3 }
  0x11   : > { %p6793_p4 = por %p7841_p1, %p51_p0  ;;  %p6798_p6 = por %p333_p3, %p51_p0 }
  0x12   : > { %p6803_p8 = pnand %p4821_p5, %p340_p7  ;;  %s6682_s17 = smov [#allocation6]  }
  0x13   : > { %s7850_s14 = scalar_select %p6793_p4, 1, 0 }
  0x14   : > { %s7851_s15 = scalar_select %p6798_p6, 1, 0 }
  0x15   : > { %s7853_s16 = scalar_select %p6803_p8, 1, 0 }
  0x16   : > { %7852 = sst [smem:[#allocation18_spill]] %s7851_s15  ;;  %s352_s18 = sshll.u32 %s6682_s17, 4  ;;  %s6807_s18 = int_to_ptr.vmem [resolvable:$true] %s352_s18 }
  0x17   : > { %p6263_p9 = pneg %p6803_p8  ;;  %s6683_s20 = smov [#allocation9]  }
  0x18   : > { %s390_s21 = sshll.u32 %s6683_s20, 4  ;;  %s6684_s22 = smov [#allocation8]   ;;  %s6818_s21 = int_to_ptr.vmem [resolvable:$true] %s390_s21 }
  0x19   : > { %p6814_p11 = pnand %p6263_p9, %p7841_p1  ;;  %s6820_s23 = sshll.u32 %s6684_s22, 4  ;;  %s372_s23 = int_to_ptr.vmem [resolvable:$true] %s6820_s23 }
  0x1a   : > { %s6464_s17 = scalar_lea.hbm %s7825_s1, 1024 }
  0x1b   : > { %p6465_p12 = scmp.ne.s32.totalorder %s7825_s1, %s6464_s17  ;;  %p6830_p13 = pneg %p6814_p11 }
  0x1c   : > { %p6471_p5 = scmp.lt.u32.totalorder %s6464_s17, %s7825_s1 }
  0x1d   : > { %p6467_p0 = pnand %p6830_p13, %p6465_p12 }
  0x1f   : > { %p6468_p3 = pneg %p6467_p0 }
  0x21   : > { %p6473_p7 = pnand %p6471_p5, %p6468_p3 }
  0x23   : > { %6476 = shalt.err (!%p6473_p7)
}
  0x24   : > { %s6477_s25 = scalar_lea.vmem %s6807_s18, 1024  ;;  %p6485_p2 = scmp.lt.s32.totalorder %s6807_s18, %s6807_s18 }
  0x25   : > { %p6478_p9 = scmp.ne.s32.totalorder %s6807_s18, %s6477_s25  ;;  %p6486_p6 = scmp.lt.s32.totalorder %s6477_s25, %s6477_s25 }
  0x27   : > { %p6480_p10 = pnand %p6478_p9, %p6830_p13  ;;  %p6487_p12 = por %p6486_p6, %p6485_p2 }
  0x29   : > { %p6481_p1 = pneg %p6480_p10 }
  0x2b   : > { %p6488_p0 = pnand %p6487_p12, %p6481_p1 }
  0x2d   : > { %6491 = shalt.err (!%p6488_p0)
}
  0x2e   : > { %s6685_s15 = smov 64   ;;  %s6686_s24 = smov 4  }
  0x2f   : > { %6266 = dma.hbm_to_vmem [thread:$0]  (!%p6814_p11), %s7825_s1, 1024, %s6807_s18, [#allocation7], %s6685_s15, %s6685_s15, %s6686_s24  }
  0x30   : > { %s6492_s25 = scalar_lea.hbm %s7831_s7, 1024 }
  0x31   : > { %p6493_p1 = scmp.ne.s32.totalorder %s7831_s7, %s6492_s25  ;;  %p6499_p10 = scmp.lt.u32.totalorder %s6492_s25, %s7831_s7 }
  0x33   : > { %p6495_p2 = pnand %p6493_p1, %p6830_p13 }
  0x35   : > { %p6496_p6 = pneg %p6495_p2 }
  0x37   : > { %p6501_p3 = pnand %p6499_p10, %p6496_p6 }
  0x39   : > { %6504 = shalt.err (!%p6501_p3)
}
  0x3a   : > { %s6505_s18 = scalar_lea.vmem %s6818_s21, 1024  ;;  %p6513_p12 = scmp.lt.s32.totalorder %s6818_s21, %s6818_s21 }
  0x3b   : > { %p6506_p5 = scmp.ne.s32.totalorder %s6818_s21, %s6505_s18  ;;  %p6514_p0 = scmp.lt.s32.totalorder %s6505_s18, %s6505_s18 }
  0x3d   : > { %p6508_p7 = pnand %p6506_p5, %p6830_p13  ;;  %p6515_p1 = por %p6514_p0, %p6513_p12 }
  0x3f   : > { %p6509_p9 = pneg %p6508_p7 }
  0x41   : > { %p6516_p2 = pnand %p6515_p1, %p6509_p9 }
  0x43   : > { %6519 = shalt.err (!%p6516_p2)
}
  0x44   : > { %6272 = dma.hbm_to_vmem [thread:$0]  (!%p6814_p11), %s7831_s7, 1024, %s6818_s21, [#allocation10], %s6685_s15, %s6685_s15, %s6686_s24  }
  0x45   : > { %s6520_s30 = scalar_lea.hbm %s7828_s4, 9216 }
  0x46   : > { %p6521_p6 = scmp.ne.s32.totalorder %s7828_s4, %s6520_s30  ;;  %p6527_p5 = scmp.lt.u32.totalorder %s6520_s30, %s7828_s4 }
  0x48   : > { %p6523_p10 = pnand %p6521_p6, %p6830_p13 }
  0x4a   : > { %p6524_p3 = pneg %p6523_p10 }
  0x4c   : > { %p6529_p7 = pnand %p6527_p5, %p6524_p3 }
  0x4e   : > { %6532 = shalt.err (!%p6529_p7)
}
  0x4f   : > { %s6533_s18 = scalar_lea.vmem %s372_s23, 9216  ;;  %p6541_p1 = scmp.lt.s32.totalorder %s372_s23, %s372_s23 }
  0x50   : > { %p6534_p9 = scmp.ne.s32.totalorder %s372_s23, %s6533_s18  ;;  %p6542_p2 = scmp.lt.s32.totalorder %s6533_s18, %s6533_s18 }
  0x52   : > { %p6536_p12 = pnand %p6534_p9, %p6830_p13  ;;  %p6543_p4 = por %p6542_p2, %p6541_p1 }
  0x54   : > { %p6537_p0 = pneg %p6536_p12 }
  0x56   : > { %p6544_p8 = pnand %p6543_p4, %p6537_p0 }
  0x58   : > { %6547 = shalt.err (!%p6544_p8)
}
  0x59   : > { %6269 = dma.hbm_to_vmem [thread:$0]  (!%p6814_p11), %s7828_s4, 9216, %s372_s23, [#allocation7], %s6685_s15, %s6685_s15, %s6686_s24  }
  0x5a   : > { %s6687_s9 = smov [#allocation11]   ;;  %s6548_s17 = scalar_lea.hbm %s7834_s10, 1024 }
  0x5b   : > { %s409_s11 = sshll.u32 %s6687_s9, 4  ;;  %p6549_p4 = scmp.ne.s32.totalorder %s7834_s10, %s6548_s17  ;;  %s410_s11 = int_to_ptr.vmem [resolvable:$true] %s409_s11 }
  0x5c   : > { %p6555_p10 = scmp.lt.u32.totalorder %s6548_s17, %s7834_s10 }
  0x5d   : > { %p6551_p8 = pnand %p6549_p4, %p6830_p13 }
  0x5f   : > { %p6552_p6 = pneg %p6551_p8 }
  0x61   : > { %p6557_p3 = pnand %p6555_p10, %p6552_p6 }
  0x63   : > { %6560 = shalt.err (!%p6557_p3)
}
  0x64   : > { %s6561_s23 = scalar_lea.vmem %s410_s11, 1024  ;;  %p6569_p12 = scmp.lt.s32.totalorder %s410_s11, %s410_s11 }
  0x65   : > { %p6562_p5 = scmp.ne.s32.totalorder %s410_s11, %s6561_s23  ;;  %p6570_p0 = scmp.lt.s32.totalorder %s6561_s23, %s6561_s23 }
  0x67   : > { %p6564_p7 = pnand %p6562_p5, %p6830_p13  ;;  %p6571_p1 = por %p6570_p0, %p6569_p12 }
  0x69   : > { %p6565_p9 = pneg %p6564_p7 }
  0x6b   : > { %p6572_p2 = pnand %p6571_p1, %p6565_p9 }
  0x6d   : > { %6575 = shalt.err (!%p6572_p2)
}
  0x6e   : > { %6275 = dma.hbm_to_vmem [thread:$0]  (!%p6814_p11), %s7834_s10, 1024, %s410_s11, [#allocation10], %s6685_s15, %s6685_s15, %s6686_s24  }
  0x6f   : > { %s6924_s13 = sadd.s32 1, %s6680_s28   ;;  %s38_s19 = sadd.s32 1, %s6676_s27 }
  0x70   : > { %s35_s9 = ssub.s32 %s6680_s28, %s6924_s13  ;;  %p45_p13 = scmp.ne.s32.totalorder %s6676_s27, %s6672_s26 }
  0x71   : > { %p36_p4 = scmp.eq.s32.totalorder %s35_s9, 0  ;;  %p46_p8 = scmp.eq.s32.totalorder %s6680_s28, 0 }
  0x72   : > { %p7856_p6 = scmp.eq.s32.totalorder %s6784_s29, 1  ;;  %p6288_p3 = scmp.lt.s32.totalorder %s6680_s28, 2 }
  0x73   : > { %s6940_s30 = scalar_select %p36_p4, %s6676_s27, %s38_s19  }
  0x74   : > { %p6934_p10 = por %p7856_p6, %p45_p13  ;;  %p47_p5 = por %p46_p8, %p45_p13 }
  0x75   : > { %s429_s17 = sand.u32 1, %s6676_s27   ;;  %s4994_s11 = sshll.u32 %s6680_s28, 11 }
  0x76   : > { %s4827_s20 = sshll.u32 %s429_s17, 7  ;;  %s6947_s18 = scalar_lea.hbm %s7824_s0, %s4994_s11 }
  0x77   : > { %s433_s23 = scalar_lea.vmem [#allocation3], %s4827_s20  ;;  %p6951_p11 = pnand %p6288_p3, %p47_p5 }
  0x78   : > { %s440_s21 = sshll.u32 %s433_s23, 4  ;;  %s6955_s19 = scalar_lea.sflag [#allocation4], %s429_s17  ;;  %s6949_s21 = int_to_ptr.vmem [resolvable:$true] %s440_s21 }
  0x79   : > { %s6576_s9 = scalar_lea.hbm %s6947_s18, 2048  ;;  %p6578_p9 = pneg %p6951_p11 }
  0x7a   : > { %p6577_p7 = scmp.ne.s32.totalorder %s6947_s18, %s6576_s9  ;;  %s6581_s22 = scalar_lea.hbm %s7824_s0, 4096 }
  0x7b   : > { %p6582_p1 = scmp.lt.u32.totalorder %s6947_s18, %s7824_s0  ;;  %p6583_p2 = scmp.lt.u32.totalorder %s6581_s22, %s6576_s9 }
  0x7c   : > { %p6579_p12 = pnand %p6578_p9, %p6577_p7  ;;  %p6585_p4 = scmp.lt.u32.totalorder %s6576_s9, %s6947_s18 }
  0x7d   : > { %p6584_p13 = por %p6583_p2, %p6582_p1 }
  0x7e   : > { %p6580_p0 = pneg %p6579_p12 }
  0x7f   : > { %p6586_p8 = por %p6585_p4, %p6584_p13 }
  0x81   : > { %p6587_p6 = pnand %p6586_p8, %p6580_p0 }
  0x83   : > { %6590 = shalt.err (!%p6587_p6)
}
  0x84   : > { %s6591_s17 = scalar_lea.vmem %s6949_s21, 2048  ;;  %s6688_s20 = smov [#allocation3]  }
  0x85   : > { %p6592_p3 = scmp.ne.s32.totalorder %s6949_s21, %s6591_s17  ;;  %s6596_s11 = sshll.u32 %s6688_s20, 4  ;;  %s6597_s11 = int_to_ptr.vmem [resolvable:$false] %s6596_s11 }
  0x86   : > { %s6598_s25 = scalar_lea.vmem %s6597_s11, 4096  ;;  %p6599_p12 = scmp.lt.s32.totalorder %s6949_s21, %s6597_s11 }
  0x87   : > { %p6594_p5 = pnand %p6592_p3, %p6578_p9  ;;  %p6600_p1 = scmp.lt.s32.totalorder %s6598_s25, %s6591_s17 }
  0x89   : > { %p6595_p7 = pneg %p6594_p5  ;;  %p6601_p2 = por %p6600_p1, %p6599_p12 }
  0x8b   : > { %p6602_p13 = pnand %p6601_p2, %p6595_p7 }
  0x8d   : > { %6605 = shalt.err (!%p6602_p13)
}
  0x8e   : > { %6279 = dma.hbm_to_vmem [thread:$0]  (!%p6951_p11), %s6947_s18, 2048, %s6949_s21, %s6955_s19, %s6685_s15, %s6685_s15, %s6686_s24  }
  0x8f   : > { %p7859_p9 = scmp.ne.s32.totalorder %s7853_s16, 0 }
  0x90   : > { %s6989_s9 = sand.u32 (!%p7859_p9), 1, %s6672_s26   ;;  %p7860_p0 = scmp.ne.s32.totalorder (!%p7859_p9), %s7850_s14, 0 }
  0x91   : > { %452 = sbr.rel (%p7859_p9) target bundleno = 1332 (0x534), region = 72  ;;  %s4831_s22 = sshll.u32 (!%p7859_p9), %s6989_s9, 7 }
  0x92   : > { %s455_s23 = scalar_lea.sflag (!%p7859_p9), [#allocation4], %s6989_s9  ;;  %s6995_s8 = scalar_lea.vmem (!%p7859_p9), [#allocation3], %s4831_s22 }
  0x98   : > { %6651 = dma.done.wait (%p7860_p0), %s455_s23, 2048  }
  0x99   : > { %6653 = vsyncadd (%p7860_p0), %s455_s23, 4294965248  ;;  %p7861_p11 = scmp.eq.s32.totalorder %s6784_s29, 0 }
  0x9b   : > { %6655 = dma.done.wait (%p7861_p11), [#allocation7], 10240   ;;  %p7862_p4 = pmov %p7861_p11 }
  0x9d   : > { %6657 = vsyncadd (%p7862_p4), [#allocation7], 4294957056  ;;  %p7863_p8 = pmov %p7862_p4 }
  0x9e   : > { %p7864_p6 = pmov %p7862_p4 }
  0x9f   : > { %6659 = dma.done.wait (%p7863_p8), [#allocation10], 2048  }
  0xa0   : > { %6661 = vsyncadd (%p7864_p6), [#allocation10], 4294965248  ;;  %v6335_v0 = vld [vmem:[#allocation6] sm:$0xff]   ;;  %v6336_v1 = vld [vmem:[#allocation6 + $0x8] sm:$0xff]   ;;  %v6689_v34 = vmov 0.0   ;;  %s7865_s25 = sld [smem:[#allocation19_spill]] }
  0xa1   : > { %5411 = vmatprep.subr.bf16.mxu0 %v6335_v0  ;;  %v6337_v2 = vld [vmem:[#allocation6 + $0x10] sm:$0xff]   ;;  %v6338_v3 = vld [vmem:[#allocation6 + $0x18] sm:$0xff]   ;;  %v6343_v4 = vld [vmem:[%s6995_s8] sm:$0xff]   ;;  %981 = vst [vmem:[#allocation2] sm:$0xff] %v6689_v34  ;;  %s7866_s14 = sld [smem:[#allocation21_spill]]  ;;  %s7867_s24 = sld [smem:[#allocation20_spill]] }
  0xa2   : > { %5412 = vmatpush3.bf16.msra.mxu0 %v6335_v0  ;;  %5427 = vmatprep.mubr.bf16.mxu0 %v6343_v4  ;;  %v6339_v5 = vld [vmem:[#allocation6 + $0x20] sm:$0xff]   ;;  %v6340_v6 = vld [vmem:[#allocation6 + $0x28] sm:$0xff]   ;;  %v6341_v7 = vld [vmem:[#allocation6 + $0x30] sm:$0xff]   ;;  %982 = vst [vmem:[#allocation2 + $0x8] sm:$0xff] %v6689_v34  ;;  %s7868_s19 = sld [smem:[#allocation22_spill]]  ;;  %s7632_s17 = scalar_lea.vmem [#allocation12], %s4831_s22 }
  0xa3   : > { %5413 = vmatprep.subr.bf16.mxu0 %v6336_v1  ;;  %v6342_v8 = vld [vmem:[#allocation6 + $0x38] sm:$0xff]   ;;  %v6360_v9 = vld [vmem:[#allocation8 + $0xc0] sm:$0xff]   ;;  %v6362_v10 = vld [vmem:[#allocation8 + $0xc8] sm:$0xff]   ;;  %983 = vst [vmem:[#allocation2 + $0x10] sm:$0xff] %v6689_v34  ;;  %s5027_s22 = sshll.u32 %s6784_s29, 11  ;;  %s4709_s20 = sshll.u32 %s7632_s17, 4  ;;  %s7778_s20 = int_to_ptr.vmem [resolvable:$true] %s4709_s20 }
  0xa4   : > { %5603 = vmatprep.subr.bf16.mxu1 %v6360_v9  ;;  %v6344_v11 = vld [vmem:[%s6995_s8 + $0x8] sm:$0xff]   ;;  %v6359_v12 = vld [vmem:[#allocation8 + $0x40] sm:$0xff]   ;;  %v6345_v13 = vld [vmem:[%s6995_s8 + $0x10] sm:$0xff]   ;;  %985 = vst [vmem:[#allocation2 + $0x198] sm:$0xff] %v6689_v34  ;;  %s7869_s23 = sld [smem:[#allocation23_spill]]  ;;  %s4696_s29 = scalar_lea.sflag [#allocation5], %s6989_s9 }
  0xa5   : > { %5604 = vmatpush3.bf16.msra.mxu1 %v6360_v9  ;;  %v6364_v14 = vld [vmem:[#allocation8 + $0xd0] sm:$0xff]   ;;  %v6361_v15 = vld [vmem:[#allocation8 + $0x48] sm:$0xff]   ;;  %v6346_v17 = vld [vmem:[%s6995_s8 + $0x18] sm:$0xff]   ;;  %986 = vst [vmem:[#allocation2 + $0x1a0] sm:$0xff] %v6689_v34  ;;  %s6690_s16 = smov [#allocation12]  }
  0xa6   : > { %5414 = vmatpush3.bf16.msra.mxu0 %v6336_v1  ;;  %5605 = vmatprep.subr.bf16.mxu1 %v6362_v10  ;;  %v6363_v16 = vld [vmem:[#allocation8 + $0x50] sm:$0xff]   ;;  %v6347_v18 = vld [vmem:[%s6995_s8 + $0x20] sm:$0xff]   ;;  %v6348_v19 = vld [vmem:[%s6995_s8 + $0x28] sm:$0xff]   ;;  %987 = vst [vmem:[#allocation2 + $0x1a8] sm:$0xff] %v6689_v34  ;;  %s6610_s15 = sshll.u32 %s6690_s16, 4  ;;  %s6611_s15 = int_to_ptr.vmem [resolvable:$false] %s6610_s15 }
  0xa7   : > { %5415 = vmatprep.subr.bf16.mxu0 %v6337_v2  ;;  %v6349_v20 = vld [vmem:[%s6995_s8 + $0x30] sm:$0xff]   ;;  %v6350_v21 = vld [vmem:[%s6995_s8 + $0x38] sm:$0xff]   ;;  %v6351_v22 = vld [vmem:[%s6995_s8 + $0x40] sm:$0xff]   ;;  %989 = vst [vmem:[#allocation2 + $0x18] sm:$0x1] %v6689_v34  ;;  %p6613_p12 = scmp.lt.s32.totalorder %s7778_s20, %s6611_s15 }
  0xa8   : > { %v6352_v23 = vld [vmem:[%s6995_s8 + $0x48] sm:$0xff]   ;;  %v6353_v24 = vld [vmem:[%s6995_s8 + $0x50] sm:$0xff]   ;;  %v6354_v25 = vld [vmem:[%s6995_s8 + $0x58] sm:$0xff]   ;;  %990 = vst [vmem:[#allocation2 + $0x30] sm:$0x1] %v6689_v34 }
  0xa9   : > { %5606 = vmatpush3.bf16.msra.mxu1 %v6362_v10  ;;  %v6355_v26 = vld [vmem:[%s6995_s8 + $0x60] sm:$0xff]   ;;  %v6356_v27 = vld [vmem:[%s6995_s8 + $0x68] sm:$0xff]   ;;  %v6357_v28 = vld [vmem:[%s6995_s8 + $0x70] sm:$0xff]   ;;  %991 = vst [vmem:[#allocation2 + $0x48] sm:$0x1] %v6689_v34 }
  0xaa   : > { %5416 = vmatpush3.bf16.msra.mxu0 %v6337_v2  ;;  %5607 = vmatprep.subr.bf16.mxu1 %v6364_v14  ;;  %v6358_v29 = vld [vmem:[%s6995_s8 + $0x78] sm:$0xff]   ;;  %v6367_v31 = vld [vmem:[#allocation8 + $0x60] sm:$0xff]   ;;  %v6369_v32 = vld [vmem:[#allocation8 + $0x68] sm:$0xff]   ;;  %992 = vst [vmem:[#allocation2 + $0x60] sm:$0x1] %v6689_v34 }
  0xab   : > { %5417 = vmatprep.subr.bf16.mxu0 %v6338_v3  ;;  %v6365_v30 = vld [vmem:[#allocation8 + $0x58] sm:$0xff]   ;;  %993 = vst [vmem:[#allocation2 + $0x78] sm:$0x1] %v6689_v34  ;;  %994 = vst [vmem:[#allocation2 + $0x90] sm:$0x1] %v6689_v34  ;;  %v6371_v35 = vld [vmem:[#allocation8 + $0x70] sm:$0xff]  }
  0xac   : > { %v6366_v33 = vld [vmem:[#allocation8 + $0xd8] sm:$0xff]   ;;  %995 = vst [vmem:[#allocation2 + $0xa8] sm:$0x1] %v6689_v34  ;;  %996 = vst [vmem:[#allocation2 + $0xc0] sm:$0x1] %v6689_v34  ;;  %v6368_v36 = vld [vmem:[#allocation8 + $0xe0] sm:$0xff]  }
  0xad   : > { %5608 = vmatpush3.bf16.msra.mxu1 %v6364_v14  ;;  %997 = vst [vmem:[#allocation2 + $0xd8] sm:$0x1] %v6689_v34  ;;  %998 = vst [vmem:[#allocation2 + $0xf0] sm:$0x1] %v6689_v34  ;;  %v6373_v37 = vld [vmem:[#allocation8 + $0x78] sm:$0xff]   ;;  %v6370_v38 = vld [vmem:[#allocation8 + $0xe8] sm:$0xff]  }
  0xae   : > { %5418 = vmatpush3.bf16.msra.mxu0 %v6338_v3  ;;  %5609 = vmatprep.subr.bf16.mxu1 %v6366_v33  ;;  %999 = vst [vmem:[#allocation2 + $0x108] sm:$0x1] %v6689_v34  ;;  %1000 = vst [vmem:[#allocation2 + $0x120] sm:$0x1] %v6689_v34  ;;  %v1121_v39 = vld [vmem:[#allocation2 + $0x1] sm:$0xff]  ;;  %v1122_v40 = vld [vmem:[#allocation2 + $0x9] sm:$0xff] }
  0xaf   : > { %5419 = vmatprep.subr.bf16.mxu0 %v6339_v5  ;;  %1001 = vst [vmem:[#allocation2 + $0x138] sm:$0x1] %v6689_v34  ;;  %1002 = vst [vmem:[#allocation2 + $0x150] sm:$0x1] %v6689_v34  ;;  %v1153_v41 = vpack.c.bf16 %v1122_v40, %v1121_v39  ;;  %v6372_v42 = vld [vmem:[#allocation8 + $0xf0] sm:$0xff]   ;;  %v6374_v43 = vld [vmem:[#allocation8 + $0xf8] sm:$0xff]  }
  0xb0   : > { %1003 = vst [vmem:[#allocation2 + $0x168] sm:$0x1] %v6689_v34  ;;  %1004 = vst [vmem:[#allocation2 + $0x180] sm:$0x1] %v6689_v34  ;;  %v7067_v44 = vld [vmem:[#allocation8 + $0x100] sm:$0xff]  }
  0xb1   : > { %1007 = vst [vmem:[#allocation2 + $0x29] sm:$0x1] %v6689_v34  ;;  %1008 = vst [vmem:[#allocation2 + $0x41] sm:$0x1] %v6689_v34  ;;  %5610 = vmatpush3.bf16.msra.mxu1 %v6366_v33  ;;  %v6379_v45 = vld [vmem:[#allocation8] sm:$0xff]  }
  0xb2   : > { %5420 = vmatpush3.bf16.msra.mxu0 %v6339_v5  ;;  %1009 = vst [vmem:[#allocation2 + $0x59] sm:$0x1] %v6689_v34  ;;  %1010 = vst [vmem:[#allocation2 + $0x71] sm:$0x1] %v6689_v34  ;;  %5611 = vmatprep.subr.bf16.mxu1 %v6368_v36  ;;  %v7073_v46 = vld [vmem:[%s7826_s2] ss:$0 sm:$0xff] }
  0xb3   : > { %5421 = vmatprep.subr.bf16.mxu0 %v6340_v6  ;;  %1011 = vst [vmem:[#allocation2 + $0x89] sm:$0x1] %v6689_v34  ;;  %1012 = vst [vmem:[#allocation2 + $0xa1] sm:$0x1] %v6689_v34  ;;  %v7078_v48 = vld [vmem:[%s7827_s3] ss:$0 sm:$0xff] }
  0xb4   : > { %1013 = vst [vmem:[#allocation2 + $0xb9] sm:$0x1] %v6689_v34  ;;  %1014 = vst [vmem:[#allocation2 + $0xd1] sm:$0x1] %v6689_v34 }
  0xb5   : > { %1015 = vst [vmem:[#allocation2 + $0xe9] sm:$0x1] %v6689_v34  ;;  %1016 = vst [vmem:[#allocation2 + $0x101] sm:$0x1] %v6689_v34  ;;  %5612 = vmatpush3.bf16.msra.mxu1 %v6368_v36 }
  0xb6   : > { %5422 = vmatpush3.bf16.msra.mxu0 %v6340_v6  ;;  %1017 = vst [vmem:[#allocation2 + $0x119] sm:$0x1] %v6689_v34  ;;  %1018 = vst [vmem:[#allocation2 + $0x131] sm:$0x1] %v6689_v34  ;;  %5613 = vmatprep.subr.bf16.mxu1 %v6370_v38 }
  0xb7   : > { %5423 = vmatprep.subr.bf16.mxu0 %v6341_v7  ;;  %1019 = vst [vmem:[#allocation2 + $0x149] sm:$0x1] %v6689_v34  ;;  %1020 = vst [vmem:[#allocation2 + $0x161] sm:$0x1] %v6689_v34 }
  0xb8   : > { %1021 = vst [vmem:[#allocation2 + $0x179] sm:$0x1] %v6689_v34  ;;  %1022 = vst [vmem:[#allocation2 + $0x191] sm:$0x1] %v6689_v34 }
  0xb9   : > { %988 = vst [vmem:[#allocation2] sm:$0x1] %v6689_v34  ;;  %1006 = vst [vmem:[#allocation2 + $0x11] sm:$0x1] %v6689_v34  ;;  %5614 = vmatpush3.bf16.msra.mxu1 %v6370_v38  ;;  %v6384_v38 = vld [vmem:[#allocation8 + $0x18] sm:$0xff]  }
  0xba   : > { %5424 = vmatpush3.bf16.msra.mxu0 %v6341_v7  ;;  %1005 = vst [vmem:[#allocation2 + $0x198] sm:$0x1] %v6689_v34  ;;  %1023 = vst [vmem:[#allocation2 + $0x1a9] sm:$0x1] %v6689_v34  ;;  %5615 = vmatprep.subr.bf16.mxu1 %v6372_v42  ;;  %v6381_v7 = vld [vmem:[#allocation8 + $0x8] sm:$0xff]  }
  0xbb   : > { %5425 = vmatprep.subr.bf16.mxu0 %v6342_v8 }
  0xbd   : > { %5616 = vmatpush3.bf16.msra.mxu1 %v6372_v42 }
  0xbe   : > { %5426 = vmatpush3.bf16.msra.mxu0 %v6342_v8  ;;  %5617 = vmatprep.subr.bf16.mxu1 %v6374_v43 }
  0xbf   : > { %5459 = vmatprep.subr.bf16.mxu0 %v6359_v12 }
  0xc1   : > { %5428 = vmatmul.mubr.bf16.vlgmr.msra.gmra.mrb[0].mxu0 %v6344_v11  ;;  %5618 = vmatpush3.bf16.msra.mxu1 %v6374_v43 }
  0xc2   : > { %5431 = vmatprep.mubr.bf16.mxu0 %v6345_v13  ;;  %5460 = vmatpush3.bf16.msra.mxu0 %v6359_v12 }
  0xc3   : > { %5461 = vmatprep.subr.bf16.mxu0 %v6361_v15  ;;  %5651 = vmatprep.subr.bf16.mxu1 %v7067_v44 }
  0xc6   : > { %5462 = vmatpush3.bf16.msra.mxu0 %v6361_v15 }
  0xc7   : > { %5463 = vmatprep.subr.bf16.mxu0 %v6363_v16 }
  0xc9   : > { %5432 = vmatmul.mubr.bf16.gmra.mrb[4].mxu0 %v6346_v17  ;;  %v6382_v17 = vld [vmem:[#allocation8 + $0x10] sm:$0xff]  }
  0xca   : > { %5435 = vmatprep.mubr.bf16.mxu0 %v6347_v18  ;;  %5464 = vmatpush3.bf16.msra.mxu0 %v6363_v16 }
  0xcb   : > { %5465 = vmatprep.subr.bf16.mxu0 %v6365_v30 }
  0xce   : > { %5466 = vmatpush3.bf16.msra.mxu0 %v6365_v30 }
  0xcf   : > { %5467 = vmatprep.subr.bf16.mxu0 %v6367_v31 }
  0xd1   : > { %5436 = vmatmul.mubr.bf16.gmra.mrb[8].mxu0 %v6348_v19 }
  0xd2   : > { %5439 = vmatprep.mubr.bf16.mxu0 %v6349_v20  ;;  %5468 = vmatpush3.bf16.msra.mxu0 %v6367_v31 }
  0xd3   : > { %5469 = vmatprep.subr.bf16.mxu0 %v6369_v32 }
  0xd6   : > { %5470 = vmatpush3.bf16.msra.mxu0 %v6369_v32 }
  0xd7   : > { %5471 = vmatprep.subr.bf16.mxu0 %v6371_v35 }
  0xd9   : > { %5440 = vmatmul.mubr.bf16.gmra.mrb[12].mxu0 %v6350_v21 }
  0xda   : > { %5443 = vmatprep.mubr.bf16.mxu0 %v6351_v22  ;;  %5472 = vmatpush3.bf16.msra.mxu0 %v6371_v35 }
  0xdb   : > { %5473 = vmatprep.subr.bf16.mxu0 %v6373_v37 }
  0xde   : > { %5474 = vmatpush3.bf16.msra.mxu0 %v6373_v37  ;;  %v6376_v37 = vld [vmem:[#allocation8 + $0x108] sm:$0xff]  }
  0xdf   : > { %5507 = vmatprep.subr.bf16.mxu0 %v6379_v45 }
  0xe1   : > { %5444 = vmatmul.mubr.bf16.gmra.mrb[16].mxu0 %v6352_v23 }
  0xe2   : > { %5447 = vmatprep.mubr.bf16.mxu0 %v6353_v24 }
  0xe9   : > { %5448 = vmatmul.mubr.bf16.gmra.mrb[20].mxu0 %v6354_v25 }
  0xea   : > { %5451 = vmatprep.mubr.bf16.mxu0 %v6355_v26 }
  0xf1   : > { %5452 = vmatmul.mubr.bf16.gmra.mrb[24].mxu0 %v6356_v27 }
  0xf2   : > { %5455 = vmatprep.mubr.bf16.mxu0 %v6357_v28 }
  0xf9   : > { %5456 = vmatmul.mubr.bf16.gmra.mrb[28].mxu0 %v6358_v29 }
  0xfa   : > { %5475 = vmatprep.mubr.bf16.mxu0 %v1153_v41 }
 0x194   : > { %v5429_v47 = vpop.f32.mrb[0].mxu0 }
 0x195   : > { %v880_v49 = vmul.f32 %v5429_v47, %v7073_v46  ;;  %v744_v50 = vpop.f32.mrb[1].mxu0 }
 0x196   : > { %v878_v51 = vmul.f32 %v7073_v46, %v744_v50  ;;  %v5430_v52 = vpop.f32.mrb[2].mxu0  ;;  %v6385_v50 = vld [vmem:[#allocation8 + $0x20] sm:$0xff]  }
 0x197   : > { %v919_v53 = vadd.f32 %v7078_v48, %v880_v49  ;;  %v881_v54 = vmul.f32 %v5430_v52, %v7073_v46  ;;  %v747_v55 = vpop.f32.mrb[3].mxu0  ;;  %v6377_v49 = vld [vmem:[#allocation8 + $0x110] sm:$0xff]  }
 0x198   : > { %v917_v56 = vadd.f32 %v7078_v48, %v878_v51  ;;  %v879_v57 = vmul.f32 %v7073_v46, %v747_v55 }
 0x199   : > { %v951_v58 = vmax.f32 %v919_v53, 0.0  ;;  %v920_v59 = vadd.f32 %v7078_v48, %v881_v54 }
 0x19a   : > { %v949_v60 = vmax.f32 %v917_v56, 0.0  ;;  %v918_v61 = vadd.f32 %v7078_v48, %v879_v57 }
 0x19b   : > { %1027 = vst [vmem:[#allocation2 + $0x31] sm:$0xff] %v951_v58  ;;  %v952_v62 = vmax.f32 %v920_v59, 0.0 }
 0x19c   : > { %1025 = vst [vmem:[#allocation2 + $0x19] sm:$0xff] %v949_v60  ;;  %v950_v63 = vmax.f32 %v918_v61, 0.0  ;;  %v5433_v0 = vpop.f32.mrb[4].mxu0 }
 0x19d   : > { %1028 = vst [vmem:[#allocation2 + $0x39] sm:$0xff] %v952_v62  ;;  %v884_v1 = vmul.f32 %v5433_v0, %v7073_v46  ;;  %v760_v2 = vpop.f32.mrb[5].mxu0  ;;  %v7089_v3 = vpack.c.bf16 %v952_v62, %v951_v58 }
 0x19e   : > { %1026 = vst [vmem:[#allocation2 + $0x21] sm:$0xff] %v950_v63  ;;  %v882_v4 = vmul.f32 %v7073_v46, %v760_v2  ;;  %v5434_v5 = vpop.f32.mrb[6].mxu0  ;;  %v7092_v6 = vpack.c.bf16 %v950_v63, %v949_v60 }
 0x19f   : > { %v923_v8 = vadd.f32 %v7078_v48, %v884_v1  ;;  %v885_v9 = vmul.f32 %v5434_v5, %v7073_v46  ;;  %v763_v10 = vpop.f32.mrb[7].mxu0  ;;  %v6387_v5 = vld [vmem:[#allocation8 + $0x28] sm:$0xff]  }
 0x1a0   : > { %v921_v11 = vadd.f32 %v7078_v48, %v882_v4  ;;  %v883_v12 = vmul.f32 %v7073_v46, %v763_v10  ;;  %5476 = vmatmul.mubr.bf16.vlgmr.msra.gmra.mrb[32].mxu0 %v7092_v6  ;;  %v6378_v4 = vld [vmem:[#allocation8 + $0x118] sm:$0xff]  }
 0x1a1   : > { %v955_v13 = vmax.f32 %v923_v8, 0.0  ;;  %v924_v14 = vadd.f32 %v7078_v48, %v885_v9  ;;  %5479 = vmatprep.mubr.bf16.mxu0 %v7089_v3  ;;  %5508 = vmatpush3.bf16.msra.mxu0 %v6379_v45 }
 0x1a2   : > { %v953_v15 = vmax.f32 %v921_v11, 0.0  ;;  %v922_v16 = vadd.f32 %v7078_v48, %v883_v12  ;;  %5509 = vmatprep.subr.bf16.mxu0 %v6381_v7  ;;  %v1910_v30 = vld [vmem:[#allocation2 + $0x30] sm:$0xff] }
 0x1a3   : > { %1031 = vst [vmem:[#allocation2 + $0x61] sm:$0xff] %v955_v13  ;;  %v956_v18 = vmax.f32 %v924_v14, 0.0  ;;  %v1908_v24 = vld [vmem:[#allocation2 + $0x18] sm:$0xff]  ;;  %v6380_v14 = vld [vmem:[#allocation8 + $0x120] sm:$0xff]  }
 0x1a4   : > { %1029 = vst [vmem:[#allocation2 + $0x49] sm:$0xff] %v953_v15  ;;  %v954_v19 = vmax.f32 %v922_v16, 0.0  ;;  %v5437_v20 = vpop.f32.mrb[8].mxu0  ;;  %v1911_v21 = vld [vmem:[#allocation2 + $0x38] sm:$0xff] }
 0x1a5   : > { %1032 = vst [vmem:[#allocation2 + $0x69] sm:$0xff] %v956_v18  ;;  %v888_v22 = vmul.f32 %v5437_v20, %v7073_v46  ;;  %v776_v23 = vpop.f32.mrb[9].mxu0  ;;  %v1909_v25 = vld [vmem:[#allocation2 + $0x20] sm:$0xff]  ;;  %v7103_v26 = vpack.c.bf16 %v956_v18, %v955_v13  ;;  %5510 = vmatpush3.bf16.msra.mxu0 %v6381_v7  ;;  %v7112_v36 = vpack.c.bf16 %v1911_v21, %v1910_v30 }
 0x1a6   : > { %1030 = vst [vmem:[#allocation2 + $0x51] sm:$0xff] %v954_v19  ;;  %v886_v27 = vmul.f32 %v7073_v46, %v776_v23  ;;  %v5438_v28 = vpop.f32.mrb[10].mxu0  ;;  %v7106_v29 = vpack.c.bf16 %v1909_v25, %v1908_v24  ;;  %v7108_v31 = vpack.c.bf16 %v954_v19, %v953_v15  ;;  %5511 = vmatprep.subr.bf16.mxu0 %v6382_v17  ;;  %v6388_v15 = vld [vmem:[#allocation8 + $0x30] sm:$0xff]  }
 0x1a7   : > { %v927_v32 = vadd.f32 %v7078_v48, %v888_v22  ;;  %v889_v33 = vmul.f32 %v5438_v28, %v7073_v46  ;;  %v779_v35 = vpop.f32.mrb[11].mxu0 }
 0x1a8   : > { %v925_v39 = vadd.f32 %v7078_v48, %v886_v27  ;;  %v887_v40 = vmul.f32 %v7073_v46, %v779_v35  ;;  %5619 = vmatprep.mubr.bf16.mxu1 %v7106_v29  ;;  %5480 = vmatmul.mubr.bf16.gmra.mrb[36].mxu0 %v7108_v31 }
 0x1a9   : > { %v959_v41 = vmax.f32 %v927_v32, 0.0  ;;  %v928_v42 = vadd.f32 %v7078_v48, %v889_v33  ;;  %5620 = vmatmul.mubr.bf16.vlgmr.msra.gmra.mrb[0].mxu1 %v7112_v36  ;;  %5483 = vmatprep.mubr.bf16.mxu0 %v7103_v26 }
 0x1aa   : > { %v957_v43 = vmax.f32 %v925_v39, 0.0  ;;  %v926_v45 = vadd.f32 %v7078_v48, %v887_v40  ;;  %5652 = vmatpush3.bf16.msra.mxu1 %v7067_v44  ;;  %5512 = vmatpush3.bf16.msra.mxu0 %v6382_v17  ;;  %v1914_v61 = vld [vmem:[#allocation2 + $0x60] sm:$0xff]  ;;  %v6390_v39 = vld [vmem:[#allocation8 + $0x38] sm:$0xff]  }
 0x1ab   : > { %1035 = vst [vmem:[#allocation2 + $0x91] sm:$0xff] %v959_v41  ;;  %v960_v47 = vmax.f32 %v928_v42, 0.0  ;;  %5653 = vmatprep.subr.bf16.mxu1 %v6376_v37  ;;  %5513 = vmatprep.subr.bf16.mxu0 %v6384_v38  ;;  %v1912_v56 = vld [vmem:[#allocation2 + $0x48] sm:$0xff] }
 0x1ac   : > { %1033 = vst [vmem:[#allocation2 + $0x79] sm:$0xff] %v957_v43  ;;  %v958_v51 = vmax.f32 %v926_v45, 0.0  ;;  %v5441_v52 = vpop.f32.mrb[12].mxu0  ;;  %v1915_v53 = vld [vmem:[#allocation2 + $0x68] sm:$0xff] }
 0x1ad   : > { %1036 = vst [vmem:[#allocation2 + $0x99] sm:$0xff] %v960_v47  ;;  %v892_v54 = vmul.f32 %v5441_v52, %v7073_v46  ;;  %v792_v55 = vpop.f32.mrb[13].mxu0  ;;  %v1913_v57 = vld [vmem:[#allocation2 + $0x50] sm:$0xff]  ;;  %v7124_v58 = vpack.c.bf16 %v960_v47, %v959_v41  ;;  %v7133_v2 = vpack.c.bf16 %v1915_v53, %v1914_v61 }
 0x1ae   : > { %1034 = vst [vmem:[#allocation2 + $0x81] sm:$0xff] %v958_v51  ;;  %v890_v44 = vmul.f32 %v7073_v46, %v792_v55  ;;  %v5442_v59 = vpop.f32.mrb[14].mxu0  ;;  %v7127_v60 = vpack.c.bf16 %v1913_v57, %v1912_v56  ;;  %5654 = vmatpush3.bf16.msra.mxu1 %v6376_v37  ;;  %v7129_v62 = vpack.c.bf16 %v958_v51, %v957_v43  ;;  %v7163_v51 = vld [vmem:[#allocation8 + $0x80] sm:$0xff]  }
 0x1af   : > { %5514 = vmatpush3.bf16.msra.mxu0 %v6384_v38  ;;  %v931_v63 = vadd.f32 %v7078_v48, %v892_v54  ;;  %v893_v0 = vmul.f32 %v5442_v59, %v7073_v46  ;;  %v795_v1 = vpop.f32.mrb[15].mxu0  ;;  %5655 = vmatprep.subr.bf16.mxu1 %v6377_v49  ;;  %v6383_v38 = vld [vmem:[#allocation8 + $0x128] sm:$0xff]  }
 0x1b0   : > { %5515 = vmatprep.subr.bf16.mxu0 %v6385_v50  ;;  %v929_v7 = vadd.f32 %v7078_v48, %v890_v44  ;;  %v891_v8 = vmul.f32 %v7073_v46, %v795_v1  ;;  %5623 = vmatprep.mubr.bf16.mxu1 %v7127_v60 }
 0x1b1   : > { %5484 = vmatmul.mubr.bf16.gmra.mrb[40].mxu0 %v7129_v62  ;;  %v963_v9 = vmax.f32 %v931_v63, 0.0  ;;  %v932_v10 = vadd.f32 %v7078_v48, %v893_v0  ;;  %5624 = vmatmul.mubr.bf16.gmra.mrb[4].mxu1 %v7133_v2 }
 0x1b2   : > { %5487 = vmatprep.mubr.bf16.mxu0 %v7124_v58  ;;  %v961_v11 = vmax.f32 %v929_v7, 0.0  ;;  %v930_v12 = vadd.f32 %v7078_v48, %v891_v8  ;;  %5656 = vmatpush3.bf16.msra.mxu1 %v6377_v49  ;;  %v1918_v28 = vld [vmem:[#allocation2 + $0x90] sm:$0xff] }
 0x1b3   : > { %5516 = vmatpush3.bf16.msra.mxu0 %v6385_v50  ;;  %1039 = vst [vmem:[#allocation2 + $0xc1] sm:$0xff] %v963_v9  ;;  %v964_v13 = vmax.f32 %v932_v10, 0.0  ;;  %5657 = vmatprep.subr.bf16.mxu1 %v6378_v4  ;;  %v1916_v21 = vld [vmem:[#allocation2 + $0x78] sm:$0xff]  ;;  %v6386_v50 = vld [vmem:[#allocation8 + $0x130] sm:$0xff]   ;;  %v6389_v10 = vld [vmem:[#allocation8 + $0x138] sm:$0xff]  }
 0x1b4   : > { %5517 = vmatprep.subr.bf16.mxu0 %v6387_v5  ;;  %1037 = vst [vmem:[#allocation2 + $0xa9] sm:$0xff] %v961_v11  ;;  %v962_v16 = vmax.f32 %v930_v12, 0.0  ;;  %v5445_v17 = vpop.f32.mrb[16].mxu0  ;;  %v1919_v18 = vld [vmem:[#allocation2 + $0x98] sm:$0xff] }
 0x1b5   : > { %1040 = vst [vmem:[#allocation2 + $0xc9] sm:$0xff] %v964_v13  ;;  %v896_v19 = vmul.f32 %v5445_v17, %v7073_v46  ;;  %v808_v20 = vpop.f32.mrb[17].mxu0  ;;  %v1917_v22 = vld [vmem:[#allocation2 + $0x80] sm:$0xff]  ;;  %v7144_v23 = vpack.c.bf16 %v964_v13, %v963_v9  ;;  %v7153_v37 = vpack.c.bf16 %v1919_v18, %v1918_v28  ;;  %v7186_v18 = vld [vmem:[#allocation8 + $0x140] sm:$0xff]  }
 0x1b6   : > { %1038 = vst [vmem:[#allocation2 + $0xb1] sm:$0xff] %v962_v16  ;;  %v894_v24 = vmul.f32 %v7073_v46, %v808_v20  ;;  %v5446_v25 = vpop.f32.mrb[18].mxu0  ;;  %v7147_v27 = vpack.c.bf16 %v1917_v22, %v1916_v21  ;;  %v7149_v30 = vpack.c.bf16 %v962_v16, %v961_v11  ;;  %5658 = vmatpush3.bf16.msra.mxu1 %v6378_v4 }
 0x1b7   : > { %5518 = vmatpush3.bf16.msra.mxu0 %v6387_v5  ;;  %v935_v32 = vadd.f32 %v7078_v48, %v896_v19  ;;  %v897_v33 = vmul.f32 %v5446_v25, %v7073_v46  ;;  %v811_v35 = vpop.f32.mrb[19].mxu0  ;;  %5659 = vmatprep.subr.bf16.mxu1 %v6380_v14 }
 0x1b8   : > { %5519 = vmatprep.subr.bf16.mxu0 %v6388_v15  ;;  %v933_v40 = vadd.f32 %v7078_v48, %v894_v24  ;;  %v895_v41 = vmul.f32 %v7073_v46, %v811_v35  ;;  %5627 = vmatprep.mubr.bf16.mxu1 %v7147_v27 }
 0x1b9   : > { %5488 = vmatmul.mubr.bf16.gmra.mrb[44].mxu0 %v7149_v30  ;;  %v967_v42 = vmax.f32 %v935_v32, 0.0  ;;  %v936_v43 = vadd.f32 %v7078_v48, %v897_v33  ;;  %5628 = vmatmul.mubr.bf16.gmra.mrb[8].mxu1 %v7153_v37 }
 0x1ba   : > { %5491 = vmatprep.mubr.bf16.mxu0 %v7144_v23  ;;  %v965_v45 = vmax.f32 %v933_v40, 0.0  ;;  %v934_v47 = vadd.f32 %v7078_v48, %v895_v41  ;;  %5660 = vmatpush3.bf16.msra.mxu1 %v6380_v14  ;;  %v1922_v1 = vld [vmem:[#allocation2 + $0xc0] sm:$0xff] }
 0x1bb   : > { %5520 = vmatpush3.bf16.msra.mxu0 %v6388_v15  ;;  %1043 = vst [vmem:[#allocation2 + $0xf1] sm:$0xff] %v967_v42  ;;  %v968_v49 = vmax.f32 %v936_v43, 0.0  ;;  %5661 = vmatprep.subr.bf16.mxu1 %v6383_v38  ;;  %v1920_v57 = vld [vmem:[#allocation2 + $0xa8] sm:$0xff] }
 0x1bc   : > { %5521 = vmatprep.subr.bf16.mxu0 %v6390_v39  ;;  %1041 = vst [vmem:[#allocation2 + $0xd9] sm:$0xff] %v965_v45  ;;  %v966_v52 = vmax.f32 %v934_v47, 0.0  ;;  %v5449_v53 = vpop.f32.mrb[20].mxu0  ;;  %v1923_v54 = vld [vmem:[#allocation2 + $0xc8] sm:$0xff] }
 0x1bd   : > { %1044 = vst [vmem:[#allocation2 + $0xf9] sm:$0xff] %v968_v49  ;;  %v900_v55 = vmul.f32 %v5449_v53, %v7073_v46  ;;  %v824_v56 = vpop.f32.mrb[21].mxu0  ;;  %v1921_v44 = vld [vmem:[#allocation2 + $0xb0] sm:$0xff]  ;;  %v7166_v59 = vpack.c.bf16 %v968_v49, %v967_v42  ;;  %v7175_v9 = vpack.c.bf16 %v1923_v54, %v1922_v1 }
 0x1be   : > { %1042 = vst [vmem:[#allocation2 + $0xe1] sm:$0xff] %v966_v52  ;;  %v898_v61 = vmul.f32 %v7073_v46, %v824_v56  ;;  %v5450_v63 = vpop.f32.mrb[22].mxu0  ;;  %v7169_v0 = vpack.c.bf16 %v1921_v44, %v1920_v57  ;;  %v7171_v4 = vpack.c.bf16 %v966_v52, %v965_v45  ;;  %5662 = vmatpush3.bf16.msra.mxu1 %v6383_v38 }
 0x1bf   : > { %5522 = vmatpush3.bf16.msra.mxu0 %v6390_v39  ;;  %v939_v5 = vadd.f32 %v7078_v48, %v900_v55  ;;  %v901_v7 = vmul.f32 %v5450_v63, %v7073_v46  ;;  %v827_v8 = vpop.f32.mrb[23].mxu0  ;;  %5663 = vmatprep.subr.bf16.mxu1 %v6386_v50 }
 0x1c0   : > { %5555 = vmatprep.subr.bf16.mxu0 %v7163_v51  ;;  %v937_v11 = vadd.f32 %v7078_v48, %v898_v61  ;;  %v899_v12 = vmul.f32 %v7073_v46, %v827_v8  ;;  %5631 = vmatprep.mubr.bf16.mxu1 %v7169_v0 }
 0x1c1   : > { %5492 = vmatmul.mubr.bf16.gmra.mrb[48].mxu0 %v7171_v4  ;;  %v971_v13 = vmax.f32 %v939_v5, 0.0  ;;  %v940_v14 = vadd.f32 %v7078_v48, %v901_v7  ;;  %5632 = vmatmul.mubr.bf16.gmra.mrb[12].mxu1 %v7175_v9 }
 0x1c2   : > { %5495 = vmatprep.mubr.bf16.mxu0 %v7166_v59  ;;  %v969_v15 = vmax.f32 %v937_v11, 0.0  ;;  %v938_v16 = vadd.f32 %v7078_v48, %v899_v12  ;;  %5664 = vmatpush3.bf16.msra.mxu1 %v6386_v50  ;;  %v1926_v39 = vld [vmem:[#allocation2 + $0xf0] sm:$0xff] }
 0x1c3   : > { %1047 = vst [vmem:[#allocation2 + $0x121] sm:$0xff] %v971_v13  ;;  %v972_v17 = vmax.f32 %v940_v14, 0.0  ;;  %5665 = vmatprep.subr.bf16.mxu1 %v6389_v10  ;;  %v1924_v25 = vld [vmem:[#allocation2 + $0xd8] sm:$0xff] }
 0x1c4   : > { %1045 = vst [vmem:[#allocation2 + $0x109] sm:$0xff] %v969_v15  ;;  %v970_v19 = vmax.f32 %v938_v16, 0.0  ;;  %v5453_v20 = vpop.f32.mrb[24].mxu0  ;;  %v1927_v21 = vld [vmem:[#allocation2 + $0xf8] sm:$0xff] }
 0x1c5   : > { %1048 = vst [vmem:[#allocation2 + $0x129] sm:$0xff] %v972_v17  ;;  %v904_v22 = vmul.f32 %v5453_v20, %v7073_v46  ;;  %v840_v24 = vpop.f32.mrb[25].mxu0  ;;  %v1925_v28 = vld [vmem:[#allocation2 + $0xe0] sm:$0xff]  ;;  %v7189_v32 = vpack.c.bf16 %v972_v17, %v971_v13  ;;  %v7198_v45 = vpack.c.bf16 %v1927_v21, %v1926_v39 }
 0x1c6   : > { %1046 = vst [vmem:[#allocation2 + $0x111] sm:$0xff] %v970_v19  ;;  %v902_v33 = vmul.f32 %v7073_v46, %v840_v24  ;;  %v5454_v35 = vpop.f32.mrb[26].mxu0  ;;  %v7192_v38 = vpack.c.bf16 %v1925_v28, %v1924_v25  ;;  %v7194_v40 = vpack.c.bf16 %v970_v19, %v969_v15  ;;  %5666 = vmatpush3.bf16.msra.mxu1 %v6389_v10  ;;  %v1057_v28 = vld [vmem:[#allocation2] sm:$0xff] }
 0x1c7   : > { %v943_v41 = vadd.f32 %v7078_v48, %v904_v22  ;;  %v905_v42 = vmul.f32 %v5454_v35, %v7073_v46  ;;  %v843_v43 = vpop.f32.mrb[27].mxu0  ;;  %5699 = vmatprep.subr.bf16.mxu1 %v7186_v18 }
 0x1c8   : > { %v941_v47 = vadd.f32 %v7078_v48, %v902_v33  ;;  %v903_v49 = vmul.f32 %v7073_v46, %v843_v43  ;;  %5635 = vmatprep.mubr.bf16.mxu1 %v7192_v38 }
 0x1c9   : > { %5496 = vmatmul.mubr.bf16.gmra.mrb[52].mxu0 %v7194_v40  ;;  %v975_v50 = vmax.f32 %v943_v41, 0.0  ;;  %v944_v52 = vadd.f32 %v7078_v48, %v905_v42  ;;  %5636 = vmatmul.mubr.bf16.gmra.mrb[16].mxu1 %v7198_v45  ;;  %v1089_v42 = vpack.c.bf16 %v6689_v34, %v1057_v28 }
 0x1ca   : > { %5499 = vmatprep.mubr.bf16.mxu0 %v7189_v32  ;;  %v973_v53 = vmax.f32 %v941_v47, 0.0  ;;  %v942_v54 = vadd.f32 %v7078_v48, %v903_v49  ;;  %v1930_v12 = vld [vmem:[#allocation2 + $0x120] sm:$0xff] }
 0x1cb   : > { %1051 = vst [vmem:[#allocation2 + $0x151] sm:$0xff] %v975_v50  ;;  %v976_v55 = vmax.f32 %v944_v52, 0.0  ;;  %v1928_v1 = vld [vmem:[#allocation2 + $0x108] sm:$0xff] }
 0x1cc   : > { %1049 = vst [vmem:[#allocation2 + $0x139] sm:$0xff] %v973_v53  ;;  %v974_v56 = vmax.f32 %v942_v54, 0.0  ;;  %v5457_v57 = vpop.f32.mrb[28].mxu0  ;;  %v1931_v44 = vld [vmem:[#allocation2 + $0x128] sm:$0xff] }
 0x1cd   : > { %1052 = vst [vmem:[#allocation2 + $0x159] sm:$0xff] %v976_v55  ;;  %v908_v61 = vmul.f32 %v5457_v57, %v7073_v46  ;;  %v856_v63 = vpop.f32.mrb[29].mxu0  ;;  %v1929_v5 = vld [vmem:[#allocation2 + $0x110] sm:$0xff]  ;;  %v7210_v7 = vpack.c.bf16 %v976_v55, %v975_v50  ;;  %v7219_v17 = vpack.c.bf16 %v1931_v44, %v1930_v12  ;;  %v6397_v57 = vld [vmem:[#allocation8 + $0x88] sm:$0xff]   ;;  %v6398_v44 = vld [vmem:[#allocation8 + $0x90] sm:$0xff]  }
 0x1ce   : > { %1050 = vst [vmem:[#allocation2 + $0x141] sm:$0xff] %v974_v56  ;;  %v906_v8 = vmul.f32 %v7073_v46, %v856_v63  ;;  %v5458_v10 = vpop.f32.mrb[30].mxu0  ;;  %v7213_v11 = vpack.c.bf16 %v1929_v5, %v1928_v1  ;;  %v7215_v13 = vpack.c.bf16 %v974_v56, %v973_v53  ;;  %v6400_v63 = vld [vmem:[#allocation8 + $0x98] sm:$0xff]   ;;  %v6408_v5 = vld [vmem:[#allocation8 + $0x188] sm:$0xff]  }
 0x1cf   : > { %v947_v14 = vadd.f32 %v7078_v48, %v908_v61  ;;  %v909_v15 = vmul.f32 %v5458_v10, %v7073_v46  ;;  %v859_v16 = vpop.f32.mrb[31].mxu0  ;;  %v6392_v61 = vld [vmem:[#allocation8 + $0x148] sm:$0xff]   ;;  %v2527_v10 = vld [vmem:[#allocation2 + $0x82] sm:$0xff] }
 0x1d0   : > { %v945_v19 = vadd.f32 %v7078_v48, %v906_v8  ;;  %v907_v20 = vmul.f32 %v7073_v46, %v859_v16  ;;  %5639 = vmatprep.mubr.bf16.mxu1 %v7213_v11  ;;  %v2526_v8 = vld [vmem:[#allocation2 + $0x7a] sm:$0xff]  ;;  %v1615_v12 = vld [vmem:[#allocation2 + $0x92] sm:$0xff]  ;;  %v6410_v16 = vld [vmem:[#allocation8 + $0x198] sm:$0xff]  }
 0x1d1   : > { %5500 = vmatmul.mubr.bf16.gmra.mrb[56].mxu0 %v7215_v13  ;;  %v979_v21 = vmax.f32 %v947_v14, 0.0  ;;  %v948_v22 = vadd.f32 %v7078_v48, %v909_v15  ;;  %5640 = vmatmul.mubr.bf16.gmra.mrb[20].mxu1 %v7219_v17  ;;  %v7291_v14 = vpack.c.bf16 %v2527_v10, %v2526_v8  ;;  %v2830_v8 = vld [vmem:[#allocation2 + $0x78] sm:$0xff] }
 0x1d2   : > { %5503 = vmatprep.mubr.bf16.mxu0 %v7210_v7  ;;  %v977_v24 = vmax.f32 %v945_v19, 0.0  ;;  %v946_v25 = vadd.f32 %v7078_v48, %v907_v20  ;;  %v1934_v49 = vld [vmem:[#allocation2 + $0x150] sm:$0xff] }
 0x1d3   : > { %1055 = vst [vmem:[#allocation2 + $0x181] sm:$0xff] %v979_v21  ;;  %v980_v33 = vmax.f32 %v948_v22, 0.0  ;;  %v1932_v39 = vld [vmem:[#allocation2 + $0x138] sm:$0xff]  ;;  %v2530_v19 = vld [vmem:[#allocation2 + $0xaa] sm:$0xff]  ;;  %v1619_v22 = vld [vmem:[#allocation2 + $0xc2] sm:$0xff] }
 0x1d4   : > { %1053 = vst [vmem:[#allocation2 + $0x169] sm:$0xff] %v977_v24  ;;  %v978_v35 = vmax.f32 %v946_v25, 0.0  ;;  %v1935_v46 = vld [vmem:[#allocation2 + $0x158] sm:$0xff] }
 0x1d5   : > { %1056 = vst [vmem:[#allocation2 + $0x189] sm:$0xff] %v980_v33  ;;  %v1933_v41 = vld [vmem:[#allocation2 + $0x140] sm:$0xff]  ;;  %v7230_v43 = vpack.c.bf16 %v980_v33, %v979_v21  ;;  %v7236_v48 = vpack.c.bf16 %v1935_v46, %v1934_v49  ;;  %v2531_v20 = vld [vmem:[#allocation2 + $0xb2] sm:$0xff] }
 0x1d6   : > { %1054 = vst [vmem:[#allocation2 + $0x171] sm:$0xff] %v978_v35  ;;  %v7232_v47 = vpack.c.bf16 %v1933_v41, %v1932_v39  ;;  %v7234_v50 = vpack.c.bf16 %v978_v35, %v977_v24  ;;  %v6411_v21 = vld [vmem:[#allocation8 + $0x1a0] sm:$0xff]   ;;  %v7299_v25 = vpack.c.bf16 %v2531_v20, %v2530_v19  ;;  %v6412_v33 = vld [vmem:[#allocation8 + $0x1a8] sm:$0xff]   ;;  %v2535_v46 = vld [vmem:[#allocation2 + $0xe2] sm:$0xff] }
 0x1d7   : > { %v1620_v24 = vld [vmem:[#allocation2 + $0xca] sm:$0xff]  ;;  %v2534_v35 = vld [vmem:[#allocation2 + $0xda] sm:$0xff]  ;;  %v1623_v41 = vld [vmem:[#allocation2 + $0xf2] sm:$0xff] }
 0x1d8   : > { %5643 = vmatprep.mubr.bf16.mxu1 %v7232_v47  ;;  %v7301_v28 = vpack.c.bf16 %v1620_v24, %v1619_v22  ;;  %v6413_v39 = vld [vmem:[#allocation8 + $0x1b0] sm:$0xff]   ;;  %v2835_v19 = vld [vmem:[#allocation2 + $0xb0] sm:$0xff]  ;;  %v2837_v20 = vld [vmem:[#allocation2 + $0xc8] sm:$0xff] }
 0x1d9   : > { %5504 = vmatmul.mubr.bf16.gmra.mrb[60].mxu0 %v7234_v50  ;;  %5644 = vmatmul.mubr.bf16.gmra.mrb[24].mxu1 %v7236_v48  ;;  %v2836_v24 = vld [vmem:[#allocation2 + $0xc0] sm:$0xff] }
 0x1da   : > { %5523 = vmatprep.mubr.bf16.mxu0 %v1089_v42  ;;  %v1938_v55 = vld [vmem:[#allocation2 + $0x180] sm:$0xff] }
 0x1db   : > { %v1936_v53 = vld [vmem:[#allocation2 + $0x168] sm:$0xff]  ;;  %v1624_v42 = vld [vmem:[#allocation2 + $0xfa] sm:$0xff] }
 0x1dc   : > { %v1939_v52 = vld [vmem:[#allocation2 + $0x188] sm:$0xff]  ;;  %v7309_v49 = vpack.c.bf16 %v1624_v42, %v1623_v41  ;;  %v2841_v41 = vld [vmem:[#allocation2 + $0xf8] sm:$0xff] }
 0x1dd   : > { %v1937_v34 = vld [vmem:[#allocation2 + $0x170] sm:$0xff]  ;;  %v7243_v56 = vpack.c.bf16 %v1939_v52, %v1938_v55  ;;  %v1627_v55 = vld [vmem:[#allocation2 + $0x122] sm:$0xff]  ;;  %v2838_v42 = vld [vmem:[#allocation2 + $0xd8] sm:$0xff] }
 0x1de   : > { %v7241_v54 = vpack.c.bf16 %v1937_v34, %v1936_v53  ;;  %v2538_v52 = vld [vmem:[#allocation2 + $0x10a] sm:$0xff]  ;;  %v2539_v53 = vld [vmem:[#allocation2 + $0x112] sm:$0xff] }
 0x1df   : > { %v6415_v34 = vld [vmem:[#allocation8 + $0x1c0] sm:$0xff]  }
 0x1e0   : > { %5647 = vmatprep.mubr.bf16.mxu1 %v7241_v54 }
 0x1e1   : > { %5524 = vmatmul.mubr.bf16.vlgmr.msra.gmra.mrb[32].mxu0 %v7106_v29  ;;  %5648 = vmatmul.mubr.bf16.gmra.mrb[28].mxu1 %v7243_v56  ;;  %v6401_v29 = vld [vmem:[#allocation8 + $0xa0] sm:$0xff]  }
 0x1e2   : > { %5527 = vmatprep.mubr.bf16.mxu0 %v7112_v36  ;;  %5667 = vmatprep.mubr.bf16.mxu1 %v7092_v6  ;;  %v6393_v6 = vld [vmem:[#allocation8 + $0x150] sm:$0xff]   ;;  %v6394_v36 = vld [vmem:[#allocation8 + $0x158] sm:$0xff]  }
 0x1e3   : > { %5556 = vmatpush3.bf16.msra.mxu0 %v7163_v51  ;;  %v2518_v51 = vld [vmem:[#allocation2 + $0x1a] sm:$0xff] }
 0x1e4   : > { %5557 = vmatprep.subr.bf16.mxu0 %v6397_v57 }
 0x1e7   : > { %5558 = vmatpush3.bf16.msra.mxu0 %v6397_v57  ;;  %v1628_v57 = vld [vmem:[#allocation2 + $0x12a] sm:$0xff] }
 0x1e8   : > { %5559 = vmatprep.subr.bf16.mxu0 %v6398_v44 }
 0x1e9   : > { %5528 = vmatmul.mubr.bf16.gmra.mrb[36].mxu0 %v7127_v60  ;;  %5668 = vmatmul.mubr.bf16.vlgmr.msra.gmra.mrb[0].mxu1 %v7089_v3  ;;  %v6403_v60 = vld [vmem:[#allocation8 + $0xa8] sm:$0xff]   ;;  %v6396_v3 = vld [vmem:[#allocation8 + $0x160] sm:$0xff]  }
 0x1ea   : > { %5531 = vmatprep.mubr.bf16.mxu0 %v7133_v2  ;;  %5700 = vmatpush3.bf16.msra.mxu1 %v7186_v18  ;;  %v6399_v2 = vld [vmem:[#allocation8 + $0x168] sm:$0xff]  }
 0x1eb   : > { %5671 = vmatprep.mubr.bf16.mxu1 %v7108_v31  ;;  %5701 = vmatprep.subr.bf16.mxu1 %v6392_v61  ;;  %v6404_v31 = vld [vmem:[#allocation8 + $0xb0] sm:$0xff]  }
 0x1ec   : > { %5560 = vmatpush3.bf16.msra.mxu0 %v6398_v44  ;;  %v7315_v44 = vpack.c.bf16 %v2539_v53, %v2538_v52  ;;  %v2840_v52 = vld [vmem:[#allocation2 + $0xf0] sm:$0xff]  ;;  %v6422_v53 = vld [vmem:[#allocation8 + $0x1f8] sm:$0xff]  }
 0x1ed   : > { %5561 = vmatprep.subr.bf16.mxu0 %v6400_v63 }
 0x1ee   : > { %5702 = vmatpush3.bf16.msra.mxu1 %v6392_v61  ;;  %v7317_v61 = vpack.c.bf16 %v1628_v57, %v1627_v55  ;;  %v6423_v55 = vld [vmem:[#allocation8 + $0x200] sm:$0xff]  }
 0x1ef   : > { %5703 = vmatprep.subr.bf16.mxu1 %v6393_v6  ;;  %v2843_v57 = vld [vmem:[#allocation2 + $0x110] sm:$0xff] }
 0x1f0   : > { %5562 = vmatpush3.bf16.msra.mxu0 %v6400_v63  ;;  %v2542_v63 = vld [vmem:[#allocation2 + $0x13a] sm:$0xff] }
 0x1f1   : > { %5532 = vmatmul.mubr.bf16.gmra.mrb[40].mxu0 %v7147_v27  ;;  %5563 = vmatprep.subr.bf16.mxu0 %v6401_v29  ;;  %v6406_v27 = vld [vmem:[#allocation8 + $0xb8] sm:$0xff]  }
 0x1f2   : > { %5672 = vmatmul.mubr.bf16.gmra.mrb[4].mxu1 %v7103_v26  ;;  %5535 = vmatprep.mubr.bf16.mxu0 %v7153_v37  ;;  %v6402_v26 = vld [vmem:[#allocation8 + $0x170] sm:$0xff]  }
 0x1f3   : > { %5675 = vmatprep.mubr.bf16.mxu1 %v7129_v62  ;;  %5704 = vmatpush3.bf16.msra.mxu1 %v6393_v6  ;;  %v6405_v62 = vld [vmem:[#allocation8 + $0x178] sm:$0xff]  }
 0x1f4   : > { %5705 = vmatprep.subr.bf16.mxu1 %v6394_v36  ;;  %5564 = vmatpush3.bf16.msra.mxu0 %v6401_v29  ;;  %v2543_v6 = vld [vmem:[#allocation2 + $0x142] sm:$0xff]  ;;  %v1631_v29 = vld [vmem:[#allocation2 + $0x152] sm:$0xff] }
 0x1f5   : > { %5565 = vmatprep.subr.bf16.mxu0 %v6403_v60 }
 0x1f7   : > { %5706 = vmatpush3.bf16.msra.mxu1 %v6394_v36  ;;  %v1632_v36 = vld [vmem:[#allocation2 + $0x15a] sm:$0xff] }
 0x1f8   : > { %5707 = vmatprep.subr.bf16.mxu1 %v6396_v3  ;;  %5566 = vmatpush3.bf16.msra.mxu0 %v6403_v60  ;;  %v7323_v60 = vpack.c.bf16 %v2543_v6, %v2542_v63  ;;  %v2842_v63 = vld [vmem:[#allocation2 + $0x108] sm:$0xff] }
 0x1f9   : > { %5536 = vmatmul.mubr.bf16.gmra.mrb[44].mxu0 %v7169_v0  ;;  %5567 = vmatprep.subr.bf16.mxu0 %v6404_v31  ;;  %v1607_v0 = vld [vmem:[#allocation2 + $0x32] sm:$0xff]  ;;  %v2865_v6 = vpack.c.bf16 %v2843_v57, %v2842_v63  ;;  %v3147_v57 = vld [vmem:[#allocation2 + $0x109] sm:$0xff] }
 0x1fa   : > { %5676 = vmatmul.mubr.bf16.gmra.mrb[8].mxu1 %v7124_v58  ;;  %5539 = vmatprep.mubr.bf16.mxu0 %v7175_v9  ;;  %v6407_v58 = vld [vmem:[#allocation8 + $0x180] sm:$0xff]  }
 0x1fb   : > { %5679 = vmatprep.mubr.bf16.mxu1 %v7149_v30  ;;  %5708 = vmatpush3.bf16.msra.mxu1 %v6396_v3  ;;  %v1604_v30 = vld [vmem:[#allocation2 + $0xa] sm:$0xff]  ;;  %v7325_v3 = vpack.c.bf16 %v1632_v36, %v1631_v29  ;;  %v2854_v29 = vld [vmem:[#allocation2 + $0x198] sm:$0xff] }
 0x1fc   : > { %5709 = vmatprep.subr.bf16.mxu1 %v6399_v2  ;;  %5568 = vmatpush3.bf16.msra.mxu0 %v6404_v31  ;;  %v2546_v31 = vld [vmem:[#allocation2 + $0x16a] sm:$0xff] }
 0x1fd   : > { %5569 = vmatprep.subr.bf16.mxu0 %v6406_v27  ;;  %v6447_v36 = vld [vmem:[#allocation2 + $0x8] sm:$0xff] }
 0x1ff   : > { %5710 = vmatpush3.bf16.msra.mxu1 %v6399_v2  ;;  %v2547_v2 = vld [vmem:[#allocation2 + $0x172] sm:$0xff] }
 0x200   : > { %5711 = vmatprep.subr.bf16.mxu1 %v6402_v26  ;;  %5570 = vmatpush3.bf16.msra.mxu0 %v6406_v27  ;;  %v7331_v27 = vpack.c.bf16 %v2547_v2, %v2546_v31  ;;  %v2871_v31 = vpack.c.bf16 %v6447_v36, %v2854_v29  ;;  %v3130_v2 = vld [vmem:[#allocation2 + $0x39] sm:$0xff]  ;;  %v3152_v36 = vld [vmem:[#allocation2 + $0x141] sm:$0xff] }
 0x201   : > { %5540 = vmatmul.mubr.bf16.gmra.mrb[48].mxu0 %v7192_v38  ;;  %v2523_v38 = vld [vmem:[#allocation2 + $0x52] sm:$0xff] }
 0x202   : > { %5680 = vmatmul.mubr.bf16.gmra.mrb[12].mxu1 %v7144_v23  ;;  %5543 = vmatprep.mubr.bf16.mxu0 %v7198_v45  ;;  %v1603_v23 = vld [vmem:[#allocation2 + $0x2] sm:$0xff]  ;;  %v1612_v45 = vld [vmem:[#allocation2 + $0x6a] sm:$0xff] }
 0x203   : > { %5683 = vmatprep.mubr.bf16.mxu1 %v7171_v4  ;;  %5712 = vmatpush3.bf16.msra.mxu1 %v6402_v26  ;;  %v1635_v37 = vpack.c.bf16 %v1604_v30, %v1603_v23  ;;  %v1608_v4 = vld [vmem:[#allocation2 + $0x3a] sm:$0xff]  ;;  %v2548_v26 = vld [vmem:[#allocation2 + $0x182] sm:$0xff]  ;;  %v2824_v30 = vld [vmem:[#allocation2 + $0x30] sm:$0xff] }
 0x204   : > { %5713 = vmatprep.subr.bf16.mxu1 %v6405_v62  ;;  %v7279_v18 = vpack.c.bf16 %v1608_v4, %v1607_v0  ;;  %v2826_v0 = vld [vmem:[#allocation2 + $0x48] sm:$0xff] }
 0x207   : > { %5714 = vmatpush3.bf16.msra.mxu1 %v6405_v62  ;;  %v2549_v62 = vld [vmem:[#allocation2 + $0x18a] sm:$0xff] }
 0x208   : > { %5747 = vmatprep.subr.bf16.mxu1 %v6407_v58  ;;  %v7336_v23 = vpack.c.bf16 %v2549_v62, %v2548_v26  ;;  %v3129_v26 = vld [vmem:[#allocation2 + $0x31] sm:$0xff] }
 0x209   : > { %5544 = vmatmul.mubr.bf16.gmra.mrb[52].mxu0 %v7213_v11  ;;  %v6409_v11 = vld [vmem:[#allocation8 + $0x190] sm:$0xff]   ;;  %v3161_v62 = vpack.c.bf16 %v3130_v2, %v3129_v26 }
 0x20a   : > { %5684 = vmatmul.mubr.bf16.gmra.mrb[16].mxu1 %v7166_v59  ;;  %5547 = vmatprep.mubr.bf16.mxu0 %v7219_v17  ;;  %v2519_v59 = vld [vmem:[#allocation2 + $0x22] sm:$0xff]  ;;  %v3151_v2 = vld [vmem:[#allocation2 + $0x139] sm:$0xff] }
 0x20b   : > { %5687 = vmatprep.mubr.bf16.mxu1 %v7194_v40  ;;  %v2550_v9 = vpack.c.bf16 %v2519_v59, %v2518_v51  ;;  %v1611_v40 = vld [vmem:[#allocation2 + $0x62] sm:$0xff]  ;;  %v2827_v51 = vld [vmem:[#allocation2 + $0x50] sm:$0xff]  ;;  %v3172_v26 = vpack.c.bf16 %v3152_v36, %v3151_v2 }
 0x20c   : > { %v2829_v59 = vld [vmem:[#allocation2 + $0x68] sm:$0xff]  ;;  %v2857_v4 = vpack.c.bf16 %v2827_v51, %v2826_v0  ;;  %v3135_v0 = vld [vmem:[#allocation2 + $0x79] sm:$0xff] }
 0x20d   : > { %v3133_v51 = vld [vmem:[#allocation2 + $0x61] sm:$0xff] }
 0x211   : > { %5548 = vmatmul.mubr.bf16.gmra.mrb[56].mxu0 %v7232_v47 }
 0x212   : > { %5688 = vmatmul.mubr.bf16.gmra.mrb[20].mxu1 %v7189_v32  ;;  %5551 = vmatprep.mubr.bf16.mxu0 %v7236_v48  ;;  %v2522_v32 = vld [vmem:[#allocation2 + $0x4a] sm:$0xff] }
 0x213   : > { %5691 = vmatprep.mubr.bf16.mxu1 %v7215_v13  ;;  %v7283_v1 = vpack.c.bf16 %v2523_v38, %v2522_v32  ;;  %v1616_v13 = vld [vmem:[#allocation2 + $0x9a] sm:$0xff] }
 0x214   : > { %v7293_v15 = vpack.c.bf16 %v1616_v13, %v1615_v12  ;;  %v6416_v32 = vld [vmem:[#allocation8 + $0x1c8] sm:$0xff]   ;;  %v6418_v12 = vld [vmem:[#allocation8 + $0x1d8] sm:$0xff]  }
 0x219   : > { %5552 = vmatmul.mubr.bf16.gmra.mrb[60].mxu0 %v7241_v54 }
 0x21a   : > { %5692 = vmatmul.mubr.bf16.gmra.mrb[24].mxu1 %v7210_v7  ;;  %5571 = vmatprep.mubr.bf16.mxu0 %v1635_v37  ;;  %v7285_v7 = vpack.c.bf16 %v1612_v45, %v1611_v40  ;;  %v6417_v40 = vld [vmem:[#allocation8 + $0x1d0] sm:$0xff]  }
 0x21b   : > { %5695 = vmatprep.mubr.bf16.mxu1 %v7234_v50  ;;  %v6414_v50 = vld [vmem:[#allocation8 + $0x1b8] sm:$0xff]   ;;  %v2831_v45 = vld [vmem:[#allocation2 + $0x80] sm:$0xff] }
 0x21c   : > { %v2859_v10 = vpack.c.bf16 %v2831_v45, %v2830_v8  ;;  %v6427_v8 = vld [vmem:[#allocation8 + $0x220] sm:$0xff]  }
 0x221   : > { %5572 = vmatmul.mubr.bf16.vlgmr.msra.gmra.mrb[32].mxu0 %v2550_v9 }
 0x222   : > { %5696 = vmatmul.mubr.bf16.gmra.mrb[28].mxu1 %v7230_v43  ;;  %5575 = vmatprep.mubr.bf16.mxu0 %v7279_v18  ;;  %v7307_v43 = vpack.c.bf16 %v2535_v46, %v2534_v35  ;;  %v2862_v35 = vpack.c.bf16 %v2837_v20, %v2836_v24  ;;  %v6421_v46 = vld [vmem:[#allocation8 + $0x1f0] sm:$0xff]   ;;  %v6434_v20 = vld [vmem:[#allocation9 + $0x18] sm:$0xff]  }
 0x223   : > { %5715 = vmatprep.mubr.bf16.mxu1 %v2550_v9  ;;  %v2828_v9 = vld [vmem:[#allocation2 + $0x60] sm:$0xff] }
 0x224   : > { %v2858_v38 = vpack.c.bf16 %v2829_v59, %v2828_v9  ;;  %v6429_v24 = vld [vmem:[#allocation8 + $0x230] sm:$0xff]  }
 0x229   : > { %5576 = vmatmul.mubr.bf16.gmra.mrb[36].mxu0 %v7283_v1 }
 0x22a   : > { %5716 = vmatmul.mubr.bf16.vlgmr.msra.gmra.mrb[0].mxu1 %v7279_v18  ;;  %5579 = vmatprep.mubr.bf16.mxu0 %v7285_v7 }
 0x22b   : > { %5748 = vmatpush3.bf16.msra.mxu1 %v6407_v58  ;;  %5719 = vmatprep.mubr.bf16.mxu1 %v7283_v1  ;;  %v2825_v58 = vld [vmem:[#allocation2 + $0x38] sm:$0xff] }
 0x22c   : > { %5749 = vmatprep.subr.bf16.mxu1 %v6408_v5  ;;  %v2856_v37 = vpack.c.bf16 %v2825_v58, %v2824_v30  ;;  %v3132_v58 = vld [vmem:[#allocation2 + $0x51] sm:$0xff]  ;;  %v3134_v30 = vld [vmem:[#allocation2 + $0x69] sm:$0xff] }
 0x22d   : > { %v3163_v59 = vpack.c.bf16 %v3134_v30, %v3133_v51  ;;  %v3156_v30 = vld [vmem:[#allocation2 + $0x171] sm:$0xff] }
 0x22f   : > { %5750 = vmatpush3.bf16.msra.mxu1 %v6408_v5  ;;  %v2833_v5 = vld [vmem:[#allocation2 + $0x98] sm:$0xff] }
 0x230   : > { %5751 = vmatprep.subr.bf16.mxu1 %v6409_v11 }
 0x231   : > { %5580 = vmatmul.mubr.bf16.gmra.mrb[40].mxu0 %v7291_v14 }
 0x232   : > { %5720 = vmatmul.mubr.bf16.gmra.mrb[4].mxu1 %v7285_v7  ;;  %5583 = vmatprep.mubr.bf16.mxu0 %v7293_v15 }
 0x233   : > { %5723 = vmatprep.mubr.bf16.mxu1 %v7291_v14  ;;  %5752 = vmatpush3.bf16.msra.mxu1 %v6409_v11  ;;  %v2832_v11 = vld [vmem:[#allocation2 + $0x90] sm:$0xff] }
 0x234   : > { %5753 = vmatprep.subr.bf16.mxu1 %v6410_v16  ;;  %v2860_v13 = vpack.c.bf16 %v2833_v5, %v2832_v11  ;;  %v6433_v5 = vld [vmem:[#allocation9 + $0x10] sm:$0xff]   ;;  %v3142_v11 = vld [vmem:[#allocation2 + $0xc9] sm:$0xff] }
 0x237   : > { %5754 = vmatpush3.bf16.msra.mxu1 %v6410_v16  ;;  %v6419_v16 = vld [vmem:[#allocation8 + $0x1e0] sm:$0xff]  }
 0x238   : > { %5755 = vmatprep.subr.bf16.mxu1 %v6411_v21 }
 0x239   : > { %5584 = vmatmul.mubr.bf16.gmra.mrb[44].mxu0 %v7299_v25 }
 0x23a   : > { %5724 = vmatmul.mubr.bf16.gmra.mrb[8].mxu1 %v7293_v15  ;;  %5587 = vmatprep.mubr.bf16.mxu0 %v7301_v28 }
 0x23b   : > { %5727 = vmatprep.mubr.bf16.mxu1 %v7299_v25  ;;  %5756 = vmatpush3.bf16.msra.mxu1 %v6411_v21  ;;  %v2834_v21 = vld [vmem:[#allocation2 + $0xa8] sm:$0xff] }
 0x23c   : > { %5757 = vmatprep.subr.bf16.mxu1 %v6412_v33  ;;  %v2861_v22 = vpack.c.bf16 %v2835_v19, %v2834_v21  ;;  %v6428_v19 = vld [vmem:[#allocation8 + $0x228] sm:$0xff]  }
 0x23f   : > { %5758 = vmatpush3.bf16.msra.mxu1 %v6412_v33  ;;  %v6420_v33 = vld [vmem:[#allocation8 + $0x1e8] sm:$0xff]  }
 0x240   : > { %5759 = vmatprep.subr.bf16.mxu1 %v6413_v39 }
 0x241   : > { %5588 = vmatmul.mubr.bf16.gmra.mrb[48].mxu0 %v7307_v43 }
 0x242   : > { %5728 = vmatmul.mubr.bf16.gmra.mrb[12].mxu1 %v7301_v28  ;;  %5591 = vmatprep.mubr.bf16.mxu0 %v7309_v49 }
 0x243   : > { %5731 = vmatprep.mubr.bf16.mxu1 %v7307_v43  ;;  %5760 = vmatpush3.bf16.msra.mxu1 %v6413_v39  ;;  %v2839_v39 = vld [vmem:[#allocation2 + $0xe0] sm:$0xff] }
 0x244   : > { %5761 = vmatprep.subr.bf16.mxu1 %v6414_v50 }
 0x247   : > { %5762 = vmatpush3.bf16.msra.mxu1 %v6414_v50  ;;  %v2863_v50 = vpack.c.bf16 %v2839_v39, %v2838_v42  ;;  %v6430_v42 = vld [vmem:[#allocation8 + $0x238] sm:$0xff]  }
 0x248   : > { %5795 = vmatprep.subr.bf16.mxu1 %v6415_v34 }
 0x249   : > { %5592 = vmatmul.mubr.bf16.gmra.mrb[52].mxu0 %v7315_v44 }
 0x24a   : > { %5732 = vmatmul.mubr.bf16.gmra.mrb[16].mxu1 %v7309_v49  ;;  %5595 = vmatprep.mubr.bf16.mxu0 %v7317_v61 }
 0x24b   : > { %5735 = vmatprep.mubr.bf16.mxu1 %v7315_v44 }
 0x251   : > { %5596 = vmatmul.mubr.bf16.gmra.mrb[56].mxu0 %v7323_v60 }
 0x252   : > { %5736 = vmatmul.mubr.bf16.gmra.mrb[20].mxu1 %v7317_v61  ;;  %5599 = vmatprep.mubr.bf16.mxu0 %v7325_v3 }
 0x253   : > { %5739 = vmatprep.mubr.bf16.mxu1 %v7323_v60 }
 0x259   : > { %5600 = vmatmul.mubr.bf16.gmra.mrb[60].mxu0 %v7331_v27 }
 0x25a   : > { %5740 = vmatmul.mubr.bf16.gmra.mrb[24].mxu1 %v7325_v3 }
 0x25b   : > { %5743 = vmatprep.mubr.bf16.mxu1 %v7331_v27 }
 0x262   : > { %5744 = vmatmul.mubr.bf16.gmra.mrb[28].mxu1 %v7336_v23 }
 0x263   : > { %5763 = vmatprep.mubr.bf16.mxu1 %v2856_v37  ;;  %v3131_v37 = vld [vmem:[#allocation2 + $0x49] sm:$0xff] }
 0x26a   : > { %5764 = vmatmul.mubr.bf16.vlgmr.msra.gmra.mrb[0].mxu1 %v2857_v4  ;;  %v6431_v4 = vld [vmem:[#allocation9] sm:$0xff]  }
 0x26b   : > { %5796 = vmatpush3.bf16.msra.mxu1 %v6415_v34  ;;  %5767 = vmatprep.mubr.bf16.mxu1 %v2858_v38  ;;  %v2864_v34 = vpack.c.bf16 %v2841_v41, %v2840_v52  ;;  %v6426_v38 = vld [vmem:[#allocation8 + $0x218] sm:$0xff]   ;;  %v3145_v41 = vld [vmem:[#allocation2 + $0xf1] sm:$0xff] }
 0x26c   : > { %5797 = vmatprep.subr.bf16.mxu1 %v6416_v32  ;;  %5891 = vmatprep.subr.bf16.mxu0 %v6431_v4 }
 0x26d   : > { %5892 = vmatpush3.bf16.msra.mxu0 %v6431_v4 }
 0x26f   : > { %5798 = vmatpush3.bf16.msra.mxu1 %v6416_v32  ;;  %v3137_v32 = vld [vmem:[#allocation2 + $0x91] sm:$0xff] }
 0x270   : > { %5799 = vmatprep.subr.bf16.mxu1 %v6417_v40 }
 0x272   : > { %5768 = vmatmul.mubr.bf16.gmra.mrb[4].mxu1 %v2859_v10  ;;  %v3140_v10 = vld [vmem:[#allocation2 + $0xb1] sm:$0xff] }
 0x273   : > { %5771 = vmatprep.mubr.bf16.mxu1 %v2860_v13  ;;  %5800 = vmatpush3.bf16.msra.mxu1 %v6417_v40  ;;  %v6432_v40 = vld [vmem:[#allocation9 + $0x8] sm:$0xff]  }
 0x274   : > { %5801 = vmatprep.subr.bf16.mxu1 %v6418_v12  ;;  %5893 = vmatprep.subr.bf16.mxu0 %v6432_v40 }
 0x275   : > { %5894 = vmatpush3.bf16.msra.mxu0 %v6432_v40 }
 0x276   : > { %5895 = vmatprep.subr.bf16.mxu0 %v6433_v5 }
 0x277   : > { %5802 = vmatpush3.bf16.msra.mxu1 %v6418_v12  ;;  %v3139_v12 = vld [vmem:[#allocation2 + $0xa9] sm:$0xff] }
 0x278   : > { %5803 = vmatprep.subr.bf16.mxu1 %v6419_v16  ;;  %v3166_v13 = vpack.c.bf16 %v3140_v10, %v3139_v12 }
 0x279   : > { %5896 = vmatpush3.bf16.msra.mxu0 %v6433_v5 }
 0x27a   : > { %5772 = vmatmul.mubr.bf16.gmra.mrb[8].mxu1 %v2861_v22  ;;  %v6435_v22 = vld [vmem:[#allocation9 + $0x20] sm:$0xff]   ;;  %5897 = vmatprep.subr.bf16.mxu0 %v6434_v20 }
 0x27b   : > { %5775 = vmatprep.mubr.bf16.mxu1 %v2862_v35  ;;  %5804 = vmatpush3.bf16.msra.mxu1 %v6419_v16  ;;  %v3141_v16 = vld [vmem:[#allocation2 + $0xc1] sm:$0xff]  ;;  %v3146_v35 = vld [vmem:[#allocation2 + $0xf9] sm:$0xff] }
 0x27c   : > { %5805 = vmatprep.subr.bf16.mxu1 %v6420_v33  ;;  %v3167_v21 = vpack.c.bf16 %v3142_v11, %v3141_v16  ;;  %v3169_v52 = vpack.c.bf16 %v3146_v35, %v3145_v41  ;;  %v3465_v11 = vld [vmem:[#allocation2 + $0x1a2] sm:$0xff]  ;;  %v7418_v41 = vld [vmem:[%s7829_s5] ss:$0 sm:$0xff] }
 0x27d   : > { %5898 = vmatpush3.bf16.msra.mxu0 %v6434_v20  ;;  %v6438_v35 = vld [vmem:[#allocation9 + $0x38] sm:$0xff]  }
 0x27e   : > { %5899 = vmatprep.subr.bf16.mxu0 %v6435_v22 }
 0x27f   : > { %5806 = vmatpush3.bf16.msra.mxu1 %v6420_v33  ;;  %v3144_v33 = vld [vmem:[#allocation2 + $0xe1] sm:$0xff] }
 0x280   : > { %5807 = vmatprep.subr.bf16.mxu1 %v6421_v46 }
 0x281   : > { %5900 = vmatpush3.bf16.msra.mxu0 %v6435_v22 }
 0x282   : > { %5776 = vmatmul.mubr.bf16.gmra.mrb[12].mxu1 %v2863_v50  ;;  %v6436_v50 = vld [vmem:[#allocation9 + $0x28] sm:$0xff]  }
 0x283   : > { %5779 = vmatprep.mubr.bf16.mxu1 %v2864_v34  ;;  %5808 = vmatpush3.bf16.msra.mxu1 %v6421_v46  ;;  %v3143_v46 = vld [vmem:[#allocation2 + $0xd9] sm:$0xff]  ;;  %v3148_v34 = vld [vmem:[#allocation2 + $0x111] sm:$0xff] }
 0x284   : > { %5809 = vmatprep.subr.bf16.mxu1 %v6422_v53  ;;  %v3168_v39 = vpack.c.bf16 %v3144_v33, %v3143_v46  ;;  %5901 = vmatprep.subr.bf16.mxu0 %v6436_v50  ;;  %v3170_v63 = vpack.c.bf16 %v3148_v34, %v3147_v57  ;;  %v6439_v46 = vld [vmem:[#allocation11] sm:$0xff]  }
 0x285   : > { %5902 = vmatpush3.bf16.msra.mxu0 %v6436_v50 }
 0x287   : > { %5810 = vmatpush3.bf16.msra.mxu1 %v6422_v53  ;;  %v6437_v53 = vld [vmem:[#allocation9 + $0x30] sm:$0xff]  }
 0x288   : > { %5843 = vmatprep.subr.bf16.mxu1 %v6423_v55  ;;  %5903 = vmatprep.subr.bf16.mxu0 %v6437_v53 }
 0x289   : > { %5904 = vmatpush3.bf16.msra.mxu0 %v6437_v53 }
 0x28a   : > { %5780 = vmatmul.mubr.bf16.gmra.mrb[16].mxu1 %v2865_v6  ;;  %v3149_v6 = vld [vmem:[#allocation2 + $0x121] sm:$0xff]  ;;  %5905 = vmatprep.subr.bf16.mxu0 %v6438_v35 }
 0x28b   : > { %5783 = vmatprep.mubr.bf16.mxu1 %v7219_v17  ;;  %v3162_v17 = vpack.c.bf16 %v3132_v58, %v3131_v37  ;;  %v3158_v37 = vld [vmem:[#allocation2 + $0x189] sm:$0xff] }
 0x28d   : > { %5906 = vmatpush3.bf16.msra.mxu0 %v6438_v35 }
 0x28e   : > { %5939 = vmatprep.subr.bf16.mxu0 %v6439_v46 }
 0x292   : > { %5784 = vmatmul.mubr.bf16.gmra.mrb[20].mxu1 %v7232_v47  ;;  %v6424_v47 = vld [vmem:[#allocation8 + $0x208] sm:$0xff]  }
 0x293   : > { %5787 = vmatprep.mubr.bf16.mxu1 %v7236_v48  ;;  %v6425_v48 = vld [vmem:[#allocation8 + $0x210] sm:$0xff]  }
 0x29a   : > { %5788 = vmatmul.mubr.bf16.gmra.mrb[24].mxu1 %v7241_v54  ;;  %v3136_v54 = vld [vmem:[#allocation2 + $0x81] sm:$0xff] }
 0x29b   : > { %5791 = vmatprep.mubr.bf16.mxu1 %v7243_v56  ;;  %v3138_v56 = vld [vmem:[#allocation2 + $0x99] sm:$0xff]  ;;  %v3164_v9 = vpack.c.bf16 %v3136_v54, %v3135_v0  ;;  %v3160_v54 = vld [vmem:[#allocation2 + $0x1a1] sm:$0xff] }
 0x29c   : > { %v3165_v45 = vpack.c.bf16 %v3138_v56, %v3137_v32 }
 0x2a2   : > { %5792 = vmatmul.mubr.bf16.gmra.mrb[28].mxu1 %v2871_v31  ;;  %v3154_v31 = vld [vmem:[#allocation2 + $0x159] sm:$0xff] }
 0x2a3   : > { %5811 = vmatprep.mubr.bf16.mxu1 %v3161_v62  ;;  %v3153_v62 = vld [vmem:[#allocation2 + $0x151] sm:$0xff] }
 0x2a4   : > { %v3173_v58 = vpack.c.bf16 %v3154_v31, %v3153_v62 }
 0x2aa   : > { %5812 = vmatmul.mubr.bf16.vlgmr.msra.gmra.mrb[0].mxu1 %v3162_v17  ;;  %v3155_v17 = vld [vmem:[#allocation2 + $0x169] sm:$0xff] }
 0x2ab   : > { %5844 = vmatpush3.bf16.msra.mxu1 %v6423_v55  ;;  %5815 = vmatprep.mubr.bf16.mxu1 %v3163_v59  ;;  %v3150_v55 = vld [vmem:[#allocation2 + $0x129] sm:$0xff]  ;;  %v3174_v51 = vpack.c.bf16 %v3156_v30, %v3155_v17 }
 0x2ac   : > { %5845 = vmatprep.subr.bf16.mxu1 %v6424_v47  ;;  %v3171_v29 = vpack.c.bf16 %v3150_v55, %v3149_v6 }
 0x2af   : > { %5846 = vmatpush3.bf16.msra.mxu1 %v6424_v47  ;;  %v3157_v47 = vld [vmem:[#allocation2 + $0x181] sm:$0xff] }
 0x2b0   : > { %5847 = vmatprep.subr.bf16.mxu1 %v6425_v48  ;;  %v3175_v59 = vpack.c.bf16 %v3158_v37, %v3157_v47 }
 0x2b2   : > { %5816 = vmatmul.mubr.bf16.gmra.mrb[4].mxu1 %v3164_v9 }
 0x2b3   : > { %5819 = vmatprep.mubr.bf16.mxu1 %v3165_v45  ;;  %5848 = vmatpush3.bf16.msra.mxu1 %v6425_v48  ;;  %v3159_v48 = vld [vmem:[#allocation2 + $0x199] sm:$0xff] }
 0x2b4   : > { %5849 = vmatprep.subr.bf16.mxu1 %v6426_v38  ;;  %v3176_v56 = vpack.c.bf16 %v3160_v54, %v3159_v48 }
 0x2b7   : > { %5850 = vmatpush3.bf16.msra.mxu1 %v6426_v38 }
 0x2b8   : > { %5851 = vmatprep.subr.bf16.mxu1 %v6427_v8 }
 0x2ba   : > { %5820 = vmatmul.mubr.bf16.gmra.mrb[8].mxu1 %v3166_v13 }
 0x2bb   : > { %5823 = vmatprep.mubr.bf16.mxu1 %v3167_v21  ;;  %5852 = vmatpush3.bf16.msra.mxu1 %v6427_v8 }
 0x2bc   : > { %5853 = vmatprep.subr.bf16.mxu1 %v6428_v19 }
 0x2bf   : > { %5854 = vmatpush3.bf16.msra.mxu1 %v6428_v19 }
 0x2c0   : > { %5855 = vmatprep.subr.bf16.mxu1 %v6429_v24 }
 0x2c2   : > { %5824 = vmatmul.mubr.bf16.gmra.mrb[12].mxu1 %v3168_v39 }
 0x2c3   : > { %5827 = vmatprep.mubr.bf16.mxu1 %v3169_v52  ;;  %5856 = vmatpush3.bf16.msra.mxu1 %v6429_v24  ;;  %v7423_v52 = vld [vmem:[%s7830_s6] ss:$0 sm:$0xff] }
 0x2c4   : > { %5857 = vmatprep.subr.bf16.mxu1 %v6430_v42 }
 0x2c7   : > { %5858 = vmatpush3.bf16.msra.mxu1 %v6430_v42 }
 0x2ca   : > { %5828 = vmatmul.mubr.bf16.gmra.mrb[16].mxu1 %v3170_v63 }
 0x2cb   : > { %5831 = vmatprep.mubr.bf16.mxu1 %v3171_v29 }
 0x2d2   : > { %5832 = vmatmul.mubr.bf16.gmra.mrb[20].mxu1 %v3172_v26 }
 0x2d3   : > { %5835 = vmatprep.mubr.bf16.mxu1 %v3173_v58 }
 0x2da   : > { %5836 = vmatmul.mubr.bf16.gmra.mrb[24].mxu1 %v3174_v51 }
 0x2db   : > { %5839 = vmatprep.mubr.bf16.mxu1 %v3175_v59 }
 0x2e2   : > { %5840 = vmatmul.mubr.bf16.gmra.mrb[28].mxu1 %v3176_v56 }
 0x2e3   : > { %5859 = vmatprep.mubr.bf16.mxu1 %v7279_v18 }
 0x2ea   : > { %5860 = vmatmul.mubr.bf16.vlgmr.msra.gmra.mrb[0].mxu1 %v7283_v1 }
 0x2eb   : > { %5863 = vmatprep.mubr.bf16.mxu1 %v7285_v7 }
 0x2f2   : > { %5864 = vmatmul.mubr.bf16.gmra.mrb[4].mxu1 %v7291_v14 }
 0x2f3   : > { %5867 = vmatprep.mubr.bf16.mxu1 %v7293_v15 }
 0x2f4   : > { %v5573_v0 = vpop.f32.mrb[32].mxu0 }
 0x2f5   : > { %v1749_v4 = vpop.f32.mrb[33].mxu0 }
 0x2f6   : > { %v5574_v9 = vpop.f32.mrb[34].mxu0 }
 0x2f7   : > { %v1752_v32 = vpop.f32.mrb[35].mxu0 }
 0x2fa   : > { %5868 = vmatmul.mubr.bf16.gmra.mrb[8].mxu1 %v7299_v25 }
 0x2fb   : > { %5871 = vmatprep.mubr.bf16.mxu1 %v7301_v28 }
 0x2fc   : > { %v7351_v38 = vpop.f32.mrb[36].mxu0 }
 0x2fd   : > { %v7353_v40 = vpop.f32.mrb[37].mxu0 }
 0x2fe   : > { %v7355_v18 = vpop.f32.mrb[38].mxu0 }
 0x2ff   : > { %v7357_v1 = vpop.f32.mrb[39].mxu0 }
 0x302   : > { %5872 = vmatmul.mubr.bf16.gmra.mrb[12].mxu1 %v7307_v43 }
 0x303   : > { %5875 = vmatprep.mubr.bf16.mxu1 %v7309_v49 }
 0x304   : > { %v7361_v7 = vpop.f32.mrb[40].mxu0 }
 0x305   : > { %v7363_v14 = vpop.f32.mrb[41].mxu0 }
 0x306   : > { %v7365_v15 = vpop.f32.mrb[42].mxu0 }
 0x307   : > { %v7367_v25 = vpop.f32.mrb[43].mxu0 }
 0x30a   : > { %5876 = vmatmul.mubr.bf16.gmra.mrb[16].mxu1 %v7315_v44 }
 0x30b   : > { %5879 = vmatprep.mubr.bf16.mxu1 %v7317_v61  ;;  %v3464_v61 = vld [vmem:[#allocation2 + $0x19a] sm:$0xff] }
 0x30c   : > { %v7371_v28 = vpop.f32.mrb[44].mxu0 }
 0x30d   : > { %v7373_v45 = vpop.f32.mrb[45].mxu0 }
 0x30e   : > { %v7375_v5 = vpop.f32.mrb[46].mxu0 }
 0x30f   : > { %v7377_v43 = vpop.f32.mrb[47].mxu0 }
 0x312   : > { %5880 = vmatmul.mubr.bf16.gmra.mrb[20].mxu1 %v7323_v60  ;;  %v3481_v60 = vpack.c.bf16 %v3465_v11, %v3464_v61 }
 0x313   : > { %5883 = vmatprep.mubr.bf16.mxu1 %v7325_v3 }
 0x314   : > { %v7381_v49 = vpop.f32.mrb[48].mxu0 }
 0x315   : > { %v7383_v8 = vpop.f32.mrb[49].mxu0 }
 0x316   : > { %v7385_v10 = vpop.f32.mrb[50].mxu0 }
 0x317   : > { %v7387_v44 = vpop.f32.mrb[51].mxu0 }
 0x31a   : > { %5884 = vmatmul.mubr.bf16.gmra.mrb[24].mxu1 %v7331_v27 }
 0x31b   : > { %5887 = vmatprep.mubr.bf16.mxu1 %v7336_v23 }
 0x31c   : > { %v7391_v12 = vpop.f32.mrb[52].mxu0 }
 0x31d   : > { %v7393_v13 = vpop.f32.mrb[53].mxu0 }
 0x31e   : > { %v7395_v3 = vpop.f32.mrb[54].mxu0 }
 0x31f   : > { %v7397_v16 = vpop.f32.mrb[55].mxu0 }
 0x322   : > { %5888 = vmatmul.mubr.bf16.gmra.mrb[28].mxu1 %v3481_v60 }
 0x324   : > { %v7399_v19 = vpop.f32.mrb[56].mxu0 }
 0x325   : > { %v7401_v20 = vpop.f32.mrb[57].mxu0 }
 0x326   : > { %v7403_v21 = vpop.f32.mrb[58].mxu0 }
 0x327   : > { %v7405_v27 = vpop.f32.mrb[59].mxu0 }
 0x32c   : > { %v7407_v23 = vpop.f32.mrb[60].mxu0 }
 0x32d   : > { %v7409_v22 = vpop.f32.mrb[61].mxu0 }
 0x32e   : > { %v7411_v24 = vpop.f32.mrb[62].mxu0 }
 0x32f   : > { %v7413_v33 = vpop.f32.mrb[63].mxu0 }
 0x3bd   : > { %v5861_v39 = vpop.f32.mrb[0].mxu1 }
 0x3be   : > { %v5987_v42 = vadd.f32 %v5861_v39, %v5573_v0  ;;  %v3580_v50 = vpop.f32.mrb[1].mxu1  ;;  %v6440_v39 = vld [vmem:[#allocation11 + $0x8] sm:$0xff]  }
 0x3bf   : > { %v5988_v53 = vadd.f32 %v3580_v50, %v1749_v4  ;;  %v5862_v34 = vpop.f32.mrb[2].mxu1 }
 0x3c0   : > { %v3748_v55 = vmul.f32 %v5987_v42, %v7418_v41  ;;  %v5989_v57 = vadd.f32 %v5862_v34, %v5574_v9  ;;  %v3583_v63 = vpop.f32.mrb[3].mxu1 }
 0x3c1   : > { %v3746_v6 = vmul.f32 %v5988_v53, %v7418_v41  ;;  %v5990_v29 = vadd.f32 %v3583_v63, %v1752_v32  ;;  %v6441_v63 = vld [vmem:[#allocation11 + $0x10] sm:$0xff]  }
 0x3c2   : > { %v3787_v36 = vadd.f32 %v7423_v52, %v3748_v55  ;;  %v3749_v31 = vmul.f32 %v5989_v57, %v7418_v41 }
 0x3c3   : > { %v3785_v2 = vadd.f32 %v7423_v52, %v3746_v6  ;;  %v3747_v26 = vmul.f32 %v5990_v29, %v7418_v41 }
 0x3c4   : > { %v3788_v62 = vadd.f32 %v7423_v52, %v3749_v31  ;;  %v3819_v37 = vmax.f32 %v3787_v36, 0.0 }
 0x3c5   : > { %v3786_v58 = vadd.f32 %v7423_v52, %v3747_v26  ;;  %v5865_v30 = vpop.f32.mrb[4].mxu1  ;;  %v3817_v59 = vmax.f32 %v3785_v2, 0.0 }
 0x3c6   : > { %v3820_v17 = vmax.f32 %v3788_v62, 0.0  ;;  %v5991_v51 = vadd.f32 %v5865_v30, %v7351_v38  ;;  %v3596_v47 = vpop.f32.mrb[5].mxu1 }
 0x3c7   : > { %v3818_v48 = vmax.f32 %v3786_v58, 0.0  ;;  %v5992_v54 = vadd.f32 %v3596_v47, %v7353_v40  ;;  %v5866_v56 = vpop.f32.mrb[6].mxu1 }
 0x3c8   : > { %v3850_v0 = vpack.c.bf16 %v3820_v17, %v3819_v37  ;;  %v3752_v4 = vmul.f32 %v5991_v51, %v7418_v41  ;;  %v5993_v9 = vadd.f32 %v5866_v56, %v7355_v18  ;;  %v3599_v32 = vpop.f32.mrb[7].mxu1  ;;  %v6442_v51 = vld [vmem:[#allocation11 + $0x18] sm:$0xff]  }
 0x3c9   : > { %v3750_v61 = vmul.f32 %v5992_v54, %v7418_v41  ;;  %v5994_v11 = vadd.f32 %v3599_v32, %v7357_v1  ;;  %v3849_v60 = vpack.c.bf16 %v3818_v48, %v3817_v59 }
 0x3ca   : > { %v3791_v35 = vadd.f32 %v7423_v52, %v3752_v4  ;;  %v3753_v38 = vmul.f32 %v5993_v9, %v7418_v41  ;;  %v6443_v4 = vld [vmem:[#allocation11 + $0x20] sm:$0xff]  }
 0x3cb   : > { %v3789_v42 = vadd.f32 %v7423_v52, %v3750_v61  ;;  %v3751_v40 = vmul.f32 %v5994_v11, %v7418_v41  ;;  %5907 = vmatprep.mubr.bf16.mxu0 %v3849_v60 }
 0x3cc   : > { %v3792_v50 = vadd.f32 %v7423_v52, %v3753_v38  ;;  %5908 = vmatmul.mubr.bf16.vlgmr.msra.gmra.mrb[64].mxu0 %v3850_v0  ;;  %v3823_v34 = vmax.f32 %v3791_v35, 0.0 }
 0x3cd   : > { %v3790_v18 = vadd.f32 %v7423_v52, %v3751_v40  ;;  %5940 = vmatpush3.bf16.msra.mxu0 %v6439_v46  ;;  %v5869_v53 = vpop.f32.mrb[8].mxu1  ;;  %v3821_v6 = vmax.f32 %v3789_v42, 0.0 }
 0x3ce   : > { %v3824_v1 = vmax.f32 %v3792_v50, 0.0  ;;  %v5995_v55 = vadd.f32 %v5869_v53, %v7361_v7  ;;  %v3612_v57 = vpop.f32.mrb[9].mxu1  ;;  %5941 = vmatprep.subr.bf16.mxu0 %v6440_v39  ;;  %v6444_v53 = vld [vmem:[#allocation11 + $0x28] sm:$0xff]  }
 0x3cf   : > { %v3822_v29 = vmax.f32 %v3790_v18, 0.0  ;;  %v5996_v36 = vadd.f32 %v3612_v57, %v7363_v14  ;;  %v5870_v31 = vpop.f32.mrb[10].mxu1 }
 0x3d0   : > { %v3756_v2 = vmul.f32 %v5995_v55, %v7418_v41  ;;  %v5997_v26 = vadd.f32 %v5870_v31, %v7365_v15  ;;  %v3615_v62 = vpop.f32.mrb[11].mxu1  ;;  %v3852_v58 = vpack.c.bf16 %v3824_v1, %v3823_v34 }
 0x3d1   : > { %v3754_v46 = vmul.f32 %v5996_v36, %v7418_v41  ;;  %v5998_v30 = vadd.f32 %v3615_v62, %v7367_v25  ;;  %v3851_v37 = vpack.c.bf16 %v3822_v29, %v3821_v6  ;;  %5942 = vmatpush3.bf16.msra.mxu0 %v6440_v39  ;;  %v6445_v29 = vld [vmem:[#allocation11 + $0x30] sm:$0xff]  }
 0x3d2   : > { %v3795_v7 = vadd.f32 %v7423_v52, %v3756_v2  ;;  %v3757_v17 = vmul.f32 %v5997_v26, %v7418_v41  ;;  %5943 = vmatprep.subr.bf16.mxu0 %v6441_v63 }
 0x3d3   : > { %v3793_v14 = vadd.f32 %v7423_v52, %v3754_v46  ;;  %v3755_v47 = vmul.f32 %v5998_v30, %v7418_v41  ;;  %5911 = vmatprep.mubr.bf16.mxu0 %v3851_v37 }
 0x3d4   : > { %v3796_v15 = vadd.f32 %v7423_v52, %v3757_v17  ;;  %5912 = vmatmul.mubr.bf16.gmra.mrb[68].mxu0 %v3852_v58  ;;  %v3827_v25 = vmax.f32 %v3795_v7, 0.0 }
 0x3d5   : > { %v3794_v59 = vadd.f32 %v7423_v52, %v3755_v47  ;;  %v5873_v48 = vpop.f32.mrb[12].mxu1  ;;  %5944 = vmatpush3.bf16.msra.mxu0 %v6441_v63  ;;  %v3825_v9 = vmax.f32 %v3793_v14, 0.0  ;;  %v6446_v14 = vld [vmem:[#allocation11 + $0x38] sm:$0xff]  }
 0x3d6   : > { %v3828_v54 = vmax.f32 %v3796_v15, 0.0  ;;  %v5999_v56 = vadd.f32 %v5873_v48, %v7371_v28  ;;  %v3628_v0 = vpop.f32.mrb[13].mxu1  ;;  %5945 = vmatprep.subr.bf16.mxu0 %v6442_v51 }
 0x3d7   : > { %v3826_v32 = vmax.f32 %v3794_v59, 0.0  ;;  %v6000_v61 = vadd.f32 %v3628_v0, %v7373_v45  ;;  %v5874_v11 = vpop.f32.mrb[14].mxu1 }
 0x3d8   : > { %v3760_v60 = vmul.f32 %v5999_v56, %v7418_v41  ;;  %v6001_v35 = vadd.f32 %v5874_v11, %v7375_v5  ;;  %v3631_v38 = vpop.f32.mrb[15].mxu1  ;;  %v3854_v39 = vpack.c.bf16 %v3828_v54, %v3827_v25 }
 0x3d9   : > { %v3758_v42 = vmul.f32 %v6000_v61, %v7418_v41  ;;  %v6002_v40 = vadd.f32 %v3631_v38, %v7377_v43  ;;  %v3853_v50 = vpack.c.bf16 %v3826_v32, %v3825_v9  ;;  %5946 = vmatpush3.bf16.msra.mxu0 %v6442_v51 }
 0x3da   : > { %v3799_v28 = vadd.f32 %v7423_v52, %v3760_v60  ;;  %v3761_v18 = vmul.f32 %v6001_v35, %v7418_v41  ;;  %5947 = vmatprep.subr.bf16.mxu0 %v6443_v4 }
 0x3db   : > { %v3797_v45 = vadd.f32 %v7423_v52, %v3758_v42  ;;  %v3759_v34 = vmul.f32 %v6002_v40, %v7418_v41  ;;  %5915 = vmatprep.mubr.bf16.mxu0 %v3853_v50 }
 0x3dc   : > { %v3800_v5 = vadd.f32 %v7423_v52, %v3761_v18  ;;  %5916 = vmatmul.mubr.bf16.gmra.mrb[72].mxu0 %v3854_v39  ;;  %v3831_v43 = vmax.f32 %v3799_v28, 0.0 }
 0x3dd   : > { %v3798_v1 = vadd.f32 %v7423_v52, %v3759_v34  ;;  %v5877_v55 = vpop.f32.mrb[16].mxu1  ;;  %5948 = vmatpush3.bf16.msra.mxu0 %v6443_v4  ;;  %v3829_v36 = vmax.f32 %v3797_v45, 0.0 }
 0x3de   : > { %v3832_v57 = vmax.f32 %v3800_v5, 0.0  ;;  %v6003_v63 = vadd.f32 %v5877_v55, %v7381_v49  ;;  %v3644_v6 = vpop.f32.mrb[17].mxu1  ;;  %5949 = vmatprep.subr.bf16.mxu0 %v6444_v53 }
 0x3df   : > { %v3830_v31 = vmax.f32 %v3798_v1, 0.0  ;;  %v6004_v2 = vadd.f32 %v3644_v6, %v7383_v8  ;;  %v5878_v26 = vpop.f32.mrb[18].mxu1 }
 0x3e0   : > { %v3764_v62 = vmul.f32 %v6003_v63, %v7418_v41  ;;  %v6005_v58 = vadd.f32 %v5878_v26, %v7385_v10  ;;  %v3647_v46 = vpop.f32.mrb[19].mxu1  ;;  %v3856_v30 = vpack.c.bf16 %v3832_v57, %v3831_v43 }
 0x3e1   : > { %v3762_v37 = vmul.f32 %v6004_v2, %v7418_v41  ;;  %v6006_v7 = vadd.f32 %v3647_v46, %v7387_v44  ;;  %v3855_v17 = vpack.c.bf16 %v3830_v31, %v3829_v36  ;;  %5950 = vmatpush3.bf16.msra.mxu0 %v6444_v53 }
 0x3e2   : > { %v3803_v49 = vadd.f32 %v7423_v52, %v3764_v62  ;;  %v3765_v51 = vmul.f32 %v6005_v58, %v7418_v41  ;;  %5951 = vmatprep.subr.bf16.mxu0 %v6445_v29 }
 0x3e3   : > { %v3801_v8 = vadd.f32 %v7423_v52, %v3762_v37  ;;  %v3763_v47 = vmul.f32 %v6006_v7, %v7418_v41  ;;  %5919 = vmatprep.mubr.bf16.mxu0 %v3855_v17 }
 0x3e4   : > { %v3804_v10 = vadd.f32 %v7423_v52, %v3765_v51  ;;  %5920 = vmatmul.mubr.bf16.gmra.mrb[76].mxu0 %v3856_v30  ;;  %v3835_v44 = vmax.f32 %v3803_v49, 0.0 }
 0x3e5   : > { %v3802_v15 = vadd.f32 %v7423_v52, %v3763_v47  ;;  %v5881_v59 = vpop.f32.mrb[20].mxu1  ;;  %5952 = vmatpush3.bf16.msra.mxu0 %v6445_v29  ;;  %v3833_v56 = vmax.f32 %v3801_v8, 0.0 }
 0x3e6   : > { %v3836_v48 = vmax.f32 %v3804_v10, 0.0  ;;  %v6007_v25 = vadd.f32 %v5881_v59, %v7391_v12  ;;  %v3660_v54 = vpop.f32.mrb[21].mxu1  ;;  %5953 = vmatprep.subr.bf16.mxu0 %v6446_v14 }
 0x3e7   : > { %v3834_v0 = vmax.f32 %v3802_v15, 0.0  ;;  %v6008_v4 = vadd.f32 %v3660_v54, %v7393_v13  ;;  %v5882_v9 = vpop.f32.mrb[22].mxu1 }
 0x3e8   : > { %v3768_v32 = vmul.f32 %v6007_v25, %v7418_v41  ;;  %v6009_v61 = vadd.f32 %v5882_v9, %v7395_v3  ;;  %v3663_v11 = vpop.f32.mrb[23].mxu1  ;;  %v3858_v60 = vpack.c.bf16 %v3836_v48, %v3835_v44 }
 0x3e9   : > { %v3766_v35 = vmul.f32 %v6008_v4, %v7418_v41  ;;  %v6010_v38 = vadd.f32 %v3663_v11, %v7397_v16  ;;  %v3857_v39 = vpack.c.bf16 %v3834_v0, %v3833_v56  ;;  %5954 = vmatpush3.bf16.msra.mxu0 %v6446_v14  ;;  %v6450_v11 = vld [vmem:[%s6995_s8 + $0x10] sm:$0xff]  }
 0x3ea   : > { %v3807_v12 = vadd.f32 %v7423_v52, %v3768_v32  ;;  %v3769_v42 = vmul.f32 %v6009_v61, %v7418_v41  ;;  %v6449_v61 = vld [vmem:[%s6995_s8 + $0x8] sm:$0xff]  }
 0x3eb   : > { %v3805_v40 = vadd.f32 %v7423_v52, %v3766_v35  ;;  %v3767_v13 = vmul.f32 %v6010_v38, %v7418_v41  ;;  %5923 = vmatprep.mubr.bf16.mxu0 %v3857_v39  ;;  %v6453_v35 = vld [vmem:[%s6995_s8 + $0x28] sm:$0xff]   ;;  %v6454_v38 = vld [vmem:[%s6995_s8 + $0x30] sm:$0xff]   ;;  %v6455_v39 = vld [vmem:[%s6995_s8 + $0x38] sm:$0xff]  }
 0x3ec   : > { %v3808_v50 = vadd.f32 %v7423_v52, %v3769_v42  ;;  %5924 = vmatmul.mubr.bf16.gmra.mrb[80].mxu0 %v3858_v60  ;;  %v3839_v18 = vmax.f32 %v3807_v12, 0.0  ;;  %v6452_v60 = vld [vmem:[%s6995_s8 + $0x20] sm:$0xff]   ;;  %v6457_v42 = vld [vmem:[%s6995_s8 + $0x48] sm:$0xff]  }
 0x3ed   : > { %v3806_v3 = vadd.f32 %v7423_v52, %v3767_v13  ;;  %v5885_v28 = vpop.f32.mrb[24].mxu1  ;;  %v3837_v34 = vmax.f32 %v3805_v40, 0.0  ;;  %v6456_v12 = vld [vmem:[%s6995_s8 + $0x40] sm:$0xff]   ;;  %v6458_v40 = vld [vmem:[%s6995_s8 + $0x50] sm:$0xff]   ;;  %v6459_v13 = vld [vmem:[%s6995_s8 + $0x58] sm:$0xff]  }
 0x3ee   : > { %v3840_v53 = vmax.f32 %v3808_v50, 0.0  ;;  %v6011_v16 = vadd.f32 %v5885_v28, %v7399_v19  ;;  %v3676_v45 = vpop.f32.mrb[25].mxu1  ;;  %v6460_v50 = vld [vmem:[%s6995_s8 + $0x60] sm:$0xff]   ;;  %v6462_v28 = vld [vmem:[%s6995_s8 + $0x70] sm:$0xff]  }
 0x3ef   : > { %v3838_v5 = vmax.f32 %v3806_v3, 0.0  ;;  %v6012_v1 = vadd.f32 %v3676_v45, %v7401_v20  ;;  %v5886_v55 = vpop.f32.mrb[26].mxu1  ;;  %v6461_v3 = vld [vmem:[%s6995_s8 + $0x68] sm:$0xff]  }
 0x3f0   : > { %v3772_v43 = vmul.f32 %v6011_v16, %v7418_v41  ;;  %v6013_v57 = vadd.f32 %v5886_v55, %v7403_v21  ;;  %v3679_v63 = vpop.f32.mrb[27].mxu1  ;;  %v3860_v6 = vpack.c.bf16 %v3840_v53, %v3839_v18  ;;  %v6463_v18 = vld [vmem:[%s6995_s8 + $0x78] sm:$0xff]  }
 0x3f1   : > { %v3770_v29 = vmul.f32 %v6012_v1, %v7418_v41  ;;  %v6014_v36 = vadd.f32 %v3679_v63, %v7405_v27  ;;  %v3859_v31 = vpack.c.bf16 %v3838_v5, %v3837_v34 }
 0x3f2   : > { %v3811_v2 = vadd.f32 %v7423_v52, %v3772_v43  ;;  %v3773_v19 = vmul.f32 %v6013_v57, %v7418_v41 }
 0x3f3   : > { %v3809_v26 = vadd.f32 %v7423_v52, %v3770_v29  ;;  %v3771_v20 = vmul.f32 %v6014_v36, %v7418_v41  ;;  %5927 = vmatprep.mubr.bf16.mxu0 %v3859_v31 }
 0x3f4   : > { %v3812_v62 = vadd.f32 %v7423_v52, %v3773_v19  ;;  %5928 = vmatmul.mubr.bf16.gmra.mrb[84].mxu0 %v3860_v6  ;;  %v3843_v46 = vmax.f32 %v3811_v2, 0.0 }
 0x3f5   : > { %v3810_v21 = vadd.f32 %v7423_v52, %v3771_v20  ;;  %v5889_v58 = vpop.f32.mrb[28].mxu1  ;;  %v3841_v7 = vmax.f32 %v3809_v26, 0.0 }
 0x3f6   : > { %v3844_v30 = vmax.f32 %v3812_v62, 0.0  ;;  %v6015_v27 = vadd.f32 %v5889_v58, %v7407_v23  ;;  %v3692_v37 = vpop.f32.mrb[29].mxu1 }
 0x3f7   : > { %v3842_v17 = vmax.f32 %v3810_v21, 0.0  ;;  %v6016_v49 = vadd.f32 %v3692_v37, %v7409_v22  ;;  %v5890_v51 = vpop.f32.mrb[30].mxu1 }
 0x3f8   : > { %v3776_v14 = vmul.f32 %v6015_v27, %v7418_v41  ;;  %v6017_v8 = vadd.f32 %v5890_v51, %v7411_v24  ;;  %v3695_v47 = vpop.f32.mrb[31].mxu1  ;;  %v3862_v10 = vpack.c.bf16 %v3844_v30, %v3843_v46 }
 0x3f9   : > { %v3774_v15 = vmul.f32 %v6016_v49, %v7418_v41  ;;  %v6018_v59 = vadd.f32 %v3695_v47, %v7413_v33  ;;  %v3861_v44 = vpack.c.bf16 %v3842_v17, %v3841_v7 }
 0x3fa   : > { %v3815_v48 = vadd.f32 %v7423_v52, %v3776_v14  ;;  %v3777_v23 = vmul.f32 %v6017_v8, %v7418_v41 }
 0x3fb   : > { %v3813_v25 = vadd.f32 %v7423_v52, %v3774_v15  ;;  %v3775_v22 = vmul.f32 %v6018_v59, %v7418_v41  ;;  %5931 = vmatprep.mubr.bf16.mxu0 %v3861_v44  ;;  %v6448_v41 = vld [vmem:[%s6995_s8] sm:$0xff]   ;;  %v7589_v15 = vld [vmem:[%s7866_s14] ss:$0 sm:$0xff]  ;;  %s6606_s14 = scalar_lea.vmem %s7778_s20, 2048 }
 0x3fc   : > { %v3816_v24 = vadd.f32 %v7423_v52, %v3777_v23  ;;  %5932 = vmatmul.mubr.bf16.gmra.mrb[88].mxu0 %v3862_v10  ;;  %v3847_v33 = vmax.f32 %v3815_v48, 0.0  ;;  %v7584_v10 = vld [vmem:[%s7865_s25] ss:$0 sm:$0xff]  ;;  %p6607_p3 = scmp.ne.s32.totalorder %s7778_s20, %s6606_s14 }
 0x3fd   : > { %v3814_v54 = vadd.f32 %v7423_v52, %v3775_v22  ;;  %v3845_v0 = vmax.f32 %v3813_v25, 0.0  ;;  %v6451_v52 = vld [vmem:[%s6995_s8 + $0x18] sm:$0xff]   ;;  %v7595_v44 = vld [vmem:[%s7867_s24] ss:$0 sm:$0xff]  ;;  %s7776_s8 = scalar_lea.hbm %s7869_s23, %s5027_s22  ;;  %s6612_s24 = scalar_lea.vmem %s6611_s15, 4096 }
 0x3fe   : > { %v3848_v56 = vmax.f32 %v3816_v24, 0.0  ;;  %v7601_v25 = vld [vmem:[%s7868_s19] ss:$0 sm:$0xff]  ;;  %p6608_p5 = pnand %p6607_p3, %p6934_p10  ;;  %p6614_p1 = scmp.lt.s32.totalorder %s6612_s24, %s6606_s14 }
 0x3ff   : > { %v3846_v4 = vmax.f32 %v3814_v54, 0.0 }
 0x400   : > { %v3864_v9 = vpack.c.bf16 %v3848_v56, %v3847_v33  ;;  %p6609_p7 = pneg %p6608_p5  ;;  %p6615_p2 = por %p6614_p1, %p6613_p12 }
 0x401   : > { %v3863_v32 = vpack.c.bf16 %v3846_v4, %v3845_v0 }
 0x402   : > { %p6616_p13 = pnand %p6615_p2, %p6609_p7 }
 0x403   : > { %5935 = vmatprep.mubr.bf16.mxu0 %v3863_v32 }
 0x404   : > { %5936 = vmatmul.mubr.bf16.gmra.mrb[92].mxu0 %v3864_v9 }
 0x405   : > { %5955 = vmatprep.mubr.bf16.mxu0 %v6448_v41 }
 0x40c   : > { %5956 = vmatmul.mubr.bf16.vlgmr.msra.gmra.mrb[96].mxu0 %v6449_v61 }
 0x40d   : > { %5959 = vmatprep.mubr.bf16.mxu0 %v6450_v11 }
 0x414   : > { %5960 = vmatmul.mubr.bf16.gmra.mrb[100].mxu0 %v6451_v52 }
 0x415   : > { %5963 = vmatprep.mubr.bf16.mxu0 %v6452_v60 }
 0x41c   : > { %5964 = vmatmul.mubr.bf16.gmra.mrb[104].mxu0 %v6453_v35 }
 0x41d   : > { %5967 = vmatprep.mubr.bf16.mxu0 %v6454_v38 }
 0x424   : > { %5968 = vmatmul.mubr.bf16.gmra.mrb[108].mxu0 %v6455_v39 }
 0x425   : > { %5971 = vmatprep.mubr.bf16.mxu0 %v6456_v12 }
 0x42c   : > { %5972 = vmatmul.mubr.bf16.gmra.mrb[112].mxu0 %v6457_v42 }
 0x42d   : > { %5975 = vmatprep.mubr.bf16.mxu0 %v6458_v40 }
 0x434   : > { %5976 = vmatmul.mubr.bf16.gmra.mrb[116].mxu0 %v6459_v13 }
 0x435   : > { %5979 = vmatprep.mubr.bf16.mxu0 %v6460_v50 }
 0x43c   : > { %5980 = vmatmul.mubr.bf16.gmra.mrb[120].mxu0 %v6461_v3 }
 0x43d   : > { %5983 = vmatprep.mubr.bf16.mxu0 %v6462_v28 }
 0x444   : > { %5984 = vmatmul.mubr.bf16.gmra.mrb[124].mxu0 %v6463_v18 }
 0x49f   : > { %v5909_v53 = vpop.f32.mrb[64].mxu0 }
 0x4a0   : > { %v3963_v16 = vpop.f32.mrb[65].mxu0  ;;  %v4099_v59 = vmul.f32 %v5909_v53, %v7584_v10 }
 0x4a1   : > { %v5910_v45 = vpop.f32.mrb[66].mxu0  ;;  %v4097_v48 = vmul.f32 %v7584_v10, %v3963_v16 }
 0x4a2   : > { %v3966_v34 = vpop.f32.mrb[67].mxu0  ;;  %v4100_v22 = vmul.f32 %v5910_v45, %v7584_v10  ;;  %v4138_v4 = vadd.f32 %v7595_v44, %v4099_v59 }
 0x4a3   : > { %v4098_v33 = vmul.f32 %v7584_v10, %v3966_v34  ;;  %v4136_v61 = vadd.f32 %v7595_v44, %v4097_v48 }
 0x4a4   : > { %v4139_v60 = vadd.f32 %v7595_v44, %v4100_v22 }
 0x4a5   : > { %v4137_v39 = vadd.f32 %v7595_v44, %v4098_v33 }
 0x4a7   : > { %v5913_v5 = vpop.f32.mrb[68].mxu0 }
 0x4a8   : > { %v3979_v1 = vpop.f32.mrb[69].mxu0  ;;  %v4103_v40 = vmul.f32 %v5913_v5, %v7584_v10 }
 0x4a9   : > { %v5914_v55 = vpop.f32.mrb[70].mxu0  ;;  %v4101_v50 = vmul.f32 %v7584_v10, %v3979_v1 }
 0x4aa   : > { %v3982_v43 = vpop.f32.mrb[71].mxu0  ;;  %v4104_v18 = vmul.f32 %v5914_v55, %v7584_v10 }
 0x4ab   : > { %v4102_v59 = vmul.f32 %v7584_v10, %v3982_v43 }
 0x4af   : > { %v7533_v57 = vpop.f32.mrb[72].mxu0 }
 0x4b0   : > { %v7535_v63 = vpop.f32.mrb[73].mxu0 }
 0x4b1   : > { %v7537_v6 = vpop.f32.mrb[74].mxu0 }
 0x4b2   : > { %v7539_v29 = vpop.f32.mrb[75].mxu0 }
 0x4b7   : > { %v7541_v36 = vpop.f32.mrb[76].mxu0 }
 0x4b8   : > { %v7543_v31 = vpop.f32.mrb[77].mxu0 }
 0x4b9   : > { %v7545_v2 = vpop.f32.mrb[78].mxu0 }
 0x4ba   : > { %v7547_v19 = vpop.f32.mrb[79].mxu0 }
 0x4bf   : > { %v7549_v26 = vpop.f32.mrb[80].mxu0 }
 0x4c0   : > { %v7551_v20 = vpop.f32.mrb[81].mxu0 }
 0x4c1   : > { %v7553_v62 = vpop.f32.mrb[82].mxu0 }
 0x4c2   : > { %v7555_v21 = vpop.f32.mrb[83].mxu0 }
 0x4c7   : > { %v7557_v58 = vpop.f32.mrb[84].mxu0 }
 0x4c8   : > { %v7559_v46 = vpop.f32.mrb[85].mxu0 }
 0x4c9   : > { %v7561_v30 = vpop.f32.mrb[86].mxu0 }
 0x4ca   : > { %v7563_v27 = vpop.f32.mrb[87].mxu0 }
 0x4cf   : > { %v7565_v37 = vpop.f32.mrb[88].mxu0 }
 0x4d0   : > { %v7567_v7 = vpop.f32.mrb[89].mxu0 }
 0x4d1   : > { %v7569_v17 = vpop.f32.mrb[90].mxu0 }
 0x4d2   : > { %v7571_v49 = vpop.f32.mrb[91].mxu0 }
 0x4d7   : > { %v7573_v51 = vpop.f32.mrb[92].mxu0 }
 0x4d8   : > { %v7575_v14 = vpop.f32.mrb[93].mxu0 }
 0x4d9   : > { %v7577_v8 = vpop.f32.mrb[94].mxu0 }
 0x4da   : > { %v7579_v47 = vpop.f32.mrb[95].mxu0 }
 0x4df   : > { %v5957_v23 = vpop.f32.mrb[96].mxu0 }
 0x4e0   : > { %v4402_v24 = vmul.f32 %v5957_v23, %v7589_v15  ;;  %v4266_v54 = vpop.f32.mrb[97].mxu0 }
 0x4e1   : > { %v4400_v56 = vmul.f32 %v7589_v15, %v4266_v54  ;;  %v5958_v0 = vpop.f32.mrb[98].mxu0 }
 0x4e2   : > { %v4441_v9 = vadd.f32 %v7601_v25, %v4402_v24  ;;  %v4403_v32 = vmul.f32 %v5958_v0, %v7589_v15  ;;  %v4269_v41 = vpop.f32.mrb[99].mxu0  ;;  %v4142_v24 = vadd.f32 %v7595_v44, %v4103_v40 }
 0x4e3   : > { %v4439_v11 = vadd.f32 %v7601_v25, %v4400_v56  ;;  %v4401_v52 = vmul.f32 %v7589_v15, %v4269_v41  ;;  %v4140_v56 = vadd.f32 %v7595_v44, %v4101_v50 }
 0x4e4   : > { %v4473_v35 = vadd.f32 %v4441_v9, %v4138_v4  ;;  %v4442_v38 = vadd.f32 %v7601_v25, %v4403_v32  ;;  %v4143_v9 = vadd.f32 %v7595_v44, %v4104_v18 }
 0x4e5   : > { %v4471_v12 = vadd.f32 %v4439_v11, %v4136_v61  ;;  %v4440_v42 = vadd.f32 %v7601_v25, %v4401_v52  ;;  %v4141_v61 = vadd.f32 %v7595_v44, %v4102_v59 }
 0x4e6   : > { %v4474_v13 = vadd.f32 %v4442_v38, %v4139_v60  ;;  %v4505_v53 = vmax.f32 %v4473_v35, 0.0  ;;  %v4107_v60 = vmul.f32 %v7533_v57, %v7584_v10  ;;  %v4105_v38 = vmul.f32 %v7584_v10, %v7535_v63 }
 0x4e7   : > { %v4472_v3 = vadd.f32 %v4440_v42, %v4137_v39  ;;  %v5961_v28 = vpop.f32.mrb[100].mxu0  ;;  %v4503_v48 = vmax.f32 %v4471_v12, 0.0  ;;  %v4108_v42 = vmul.f32 %v7537_v6, %v7584_v10 }
 0x4e8   : > { %v4506_v16 = vmax.f32 %v4474_v13, 0.0  ;;  %v4406_v45 = vmul.f32 %v5961_v28, %v7589_v15  ;;  %v4282_v34 = vpop.f32.mrb[101].mxu0  ;;  %v4106_v28 = vmul.f32 %v7584_v10, %v7539_v29 }
 0x4e9   : > { %v4504_v23 = vmax.f32 %v4472_v3, 0.0  ;;  %v4404_v22 = vmul.f32 %v7589_v15, %v4282_v34  ;;  %v5962_v5 = vpop.f32.mrb[102].mxu0 }
 0x4ea   : > { %v5036_v1 = vpack.c.bf16 %v4506_v16, %v4505_v53  ;;  %v4445_v54 = vadd.f32 %v7601_v25, %v4406_v45  ;;  %v4407_v55 = vmul.f32 %v5962_v5, %v7589_v15  ;;  %v4285_v33 = vpop.f32.mrb[103].mxu0  ;;  %v4146_v16 = vadd.f32 %v7595_v44, %v4107_v60 }
 0x4eb   : > { %v5031_v0 = vpack.c.bf16 %v4504_v23, %v4503_v48  ;;  %v4443_v4 = vadd.f32 %v7601_v25, %v4404_v22  ;;  %v4405_v43 = vmul.f32 %v7589_v15, %v4285_v33  ;;  %v4144_v48 = vadd.f32 %v7595_v44, %v4105_v38 }
 0x4ec   : > { %5108 = vst [vmem:[%s7632_s17 + $0x8] sm:$0xff] %v5036_v1   ;;  %v4477_v32 = vadd.f32 %v4445_v54, %v4142_v24  ;;  %v4446_v41 = vadd.f32 %v7601_v25, %v4407_v55  ;;  %v4147_v5 = vadd.f32 %v7595_v44, %v4108_v42  ;;  %v4145_v54 = vadd.f32 %v7595_v44, %v4106_v28 }
 0x4ed   : > { %5032 = vst [vmem:[%s7632_s17] sm:$0xff] %v5031_v0   ;;  %v4475_v11 = vadd.f32 %v4443_v4, %v4140_v56  ;;  %v4444_v52 = vadd.f32 %v7601_v25, %v4405_v43  ;;  %v4111_v56 = vmul.f32 %v7541_v36, %v7584_v10  ;;  %v4109_v4 = vmul.f32 %v7584_v10, %v7543_v31 }
 0x4ee   : > { %v4478_v35 = vadd.f32 %v4446_v41, %v4143_v9  ;;  %v4509_v40 = vmax.f32 %v4477_v32, 0.0  ;;  %v4112_v32 = vmul.f32 %v7545_v2, %v7584_v10  ;;  %v4110_v60 = vmul.f32 %v7584_v10, %v7547_v19 }
 0x4ef   : > { %v4476_v39 = vadd.f32 %v4444_v52, %v4141_v61  ;;  %v5965_v12 = vpop.f32.mrb[104].mxu0  ;;  %v4507_v18 = vmax.f32 %v4475_v11, 0.0 }
 0x4f0   : > { %v4510_v13 = vmax.f32 %v4478_v35, 0.0  ;;  %v4410_v50 = vmul.f32 %v5965_v12, %v7589_v15  ;;  %v4298_v3 = vpop.f32.mrb[105].mxu0  ;;  %v4151_v28 = vadd.f32 %v7595_v44, %v4112_v32 }
 0x4f1   : > { %v4508_v57 = vmax.f32 %v4476_v39, 0.0  ;;  %v4408_v53 = vmul.f32 %v7589_v15, %v4298_v3  ;;  %v5966_v63 = vpop.f32.mrb[106].mxu0  ;;  %v4150_v39 = vadd.f32 %v7595_v44, %v4111_v56 }
 0x4f2   : > { %v5046_v45 = vpack.c.bf16 %v4510_v13, %v4509_v40  ;;  %v4449_v6 = vadd.f32 %v7601_v25, %v4410_v50  ;;  %v4411_v34 = vmul.f32 %v5966_v63, %v7589_v15  ;;  %v4301_v59 = vpop.f32.mrb[107].mxu0  ;;  %v4148_v13 = vadd.f32 %v7595_v44, %v4109_v4 }
 0x4f3   : > { %v5041_v23 = vpack.c.bf16 %v4508_v57, %v4507_v18  ;;  %v4447_v22 = vadd.f32 %v7601_v25, %v4408_v53  ;;  %v4409_v29 = vmul.f32 %v7589_v15, %v4301_v59  ;;  %v4149_v53 = vadd.f32 %v7595_v44, %v4110_v60 }
 0x4f4   : > { %5110 = vst [vmem:[%s7632_s17 + $0x18] sm:$0xff] %v5046_v45   ;;  %v4481_v24 = vadd.f32 %v4449_v6, %v4146_v16  ;;  %v4450_v1 = vadd.f32 %v7601_v25, %v4411_v34  ;;  %v4115_v45 = vmul.f32 %v7549_v26, %v7584_v10  ;;  %v4113_v34 = vmul.f32 %v7584_v10, %v7551_v20 }
 0x4f5   : > { %5109 = vst [vmem:[%s7632_s17 + $0x10] sm:$0xff] %v5041_v23   ;;  %v4479_v55 = vadd.f32 %v4447_v22, %v4144_v48  ;;  %v4448_v33 = vadd.f32 %v7601_v25, %v4409_v29  ;;  %v4116_v23 = vmul.f32 %v7553_v62, %v7584_v10 }
 0x4f6   : > { %v4482_v0 = vadd.f32 %v4450_v1, %v4147_v5  ;;  %v4513_v41 = vmax.f32 %v4481_v24, 0.0  ;;  %v4114_v1 = vmul.f32 %v7584_v10, %v7555_v21 }
 0x4f7   : > { %v4480_v43 = vadd.f32 %v4448_v33, %v4145_v54  ;;  %v5969_v9 = vpop.f32.mrb[108].mxu0  ;;  %v4511_v35 = vmax.f32 %v4479_v55, 0.0  ;;  %v4154_v33 = vadd.f32 %v7595_v44, %v4115_v45 }
 0x4f8   : > { %v4514_v61 = vmax.f32 %v4482_v0, 0.0  ;;  %v4414_v11 = vmul.f32 %v5969_v9, %v7589_v15  ;;  %v4314_v52 = vpop.f32.mrb[109].mxu0 }
 0x4f9   : > { %v4512_v36 = vmax.f32 %v4480_v43, 0.0  ;;  %v4412_v38 = vmul.f32 %v7589_v15, %v4314_v52  ;;  %v5970_v31 = vpop.f32.mrb[110].mxu0  ;;  %v4152_v43 = vadd.f32 %v7595_v44, %v4113_v34  ;;  %v4153_v52 = vadd.f32 %v7595_v44, %v4114_v1 }
 0x4fa   : > { %v5056_v12 = vpack.c.bf16 %v4514_v61, %v4513_v41  ;;  %v4453_v2 = vadd.f32 %v7601_v25, %v4414_v11  ;;  %v4415_v42 = vmul.f32 %v5970_v31, %v7589_v15  ;;  %v4317_v40 = vpop.f32.mrb[111].mxu0  ;;  %v4155_v41 = vadd.f32 %v7595_v44, %v4116_v23 }
 0x4fb   : > { %v5051_v50 = vpack.c.bf16 %v4512_v36, %v4511_v35  ;;  %v4451_v3 = vadd.f32 %v7601_v25, %v4412_v38  ;;  %v4413_v19 = vmul.f32 %v7589_v15, %v4317_v40  ;;  %v4119_v36 = vmul.f32 %v7557_v58, %v7584_v10 }
 0x4fc   : > { %5112 = vst [vmem:[%s7632_s17 + $0x28] sm:$0xff] %v5056_v12   ;;  %v4485_v18 = vadd.f32 %v4453_v2, %v4150_v39  ;;  %v4454_v57 = vadd.f32 %v7601_v25, %v4415_v42  ;;  %v4117_v31 = vmul.f32 %v7584_v10, %v7559_v46  ;;  %v4120_v2 = vmul.f32 %v7561_v30, %v7584_v10 }
 0x4fd   : > { %5111 = vst [vmem:[%s7632_s17 + $0x20] sm:$0xff] %v5051_v50   ;;  %v4483_v63 = vadd.f32 %v4451_v3, %v4148_v13  ;;  %v4452_v16 = vadd.f32 %v7601_v25, %v4413_v19  ;;  %v4118_v3 = vmul.f32 %v7584_v10, %v7563_v27  ;;  %v4121_v1 = vmul.f32 %v7584_v10, %v7567_v7 }
 0x4fe   : > { %v4486_v6 = vadd.f32 %v4454_v57, %v4151_v28  ;;  %v4517_v22 = vmax.f32 %v4485_v18, 0.0  ;;  %v4158_v18 = vadd.f32 %v7595_v44, %v4119_v36  ;;  %v4159_v34 = vadd.f32 %v7595_v44, %v4120_v2 }
 0x4ff   : > { %v4484_v59 = vadd.f32 %v4452_v16, %v4149_v53  ;;  %v5973_v48 = vpop.f32.mrb[112].mxu0  ;;  %v4515_v54 = vmax.f32 %v4483_v63, 0.0  ;;  %v4156_v16 = vadd.f32 %v7595_v44, %v4117_v31  ;;  %v4157_v23 = vadd.f32 %v7595_v44, %v4118_v3 }
 0x500   : > { %v4518_v29 = vmax.f32 %v4486_v6, 0.0  ;;  %v4418_v5 = vmul.f32 %v5973_v48, %v7589_v15  ;;  %v4330_v24 = vpop.f32.mrb[113].mxu0 }
 0x501   : > { %v4516_v26 = vmax.f32 %v4484_v59, 0.0  ;;  %v4416_v55 = vmul.f32 %v7589_v15, %v4330_v24  ;;  %v5974_v20 = vpop.f32.mrb[114].mxu0 }
 0x502   : > { %v5066_v56 = vpack.c.bf16 %v4518_v29, %v4517_v22  ;;  %v4457_v62 = vadd.f32 %v7601_v25, %v4418_v5  ;;  %v4419_v0 = vmul.f32 %v5974_v20, %v7589_v15  ;;  %v4333_v4 = vpop.f32.mrb[115].mxu0  ;;  %v4123_v5 = vmul.f32 %v7565_v37, %v7584_v10 }
 0x503   : > { %v5061_v9 = vpack.c.bf16 %v4516_v26, %v4515_v54  ;;  %v4455_v32 = vadd.f32 %v7601_v25, %v4416_v55  ;;  %v4417_v21 = vmul.f32 %v7589_v15, %v4333_v4  ;;  %v4124_v55 = vmul.f32 %v7569_v17, %v7584_v10 }
 0x504   : > { %5114 = vst [vmem:[%s7632_s17 + $0x38] sm:$0xff] %v5066_v56   ;;  %v4489_v61 = vadd.f32 %v4457_v62, %v4154_v33  ;;  %v4458_v11 = vadd.f32 %v7601_v25, %v4419_v0  ;;  %v4122_v0 = vmul.f32 %v7584_v10, %v7571_v49 }
 0x505   : > { %5113 = vst [vmem:[%s7632_s17 + $0x30] sm:$0xff] %v5061_v9   ;;  %v4487_v60 = vadd.f32 %v4455_v32, %v4152_v43  ;;  %v4456_v35 = vadd.f32 %v7601_v25, %v4417_v21  ;;  %v4162_v9 = vadd.f32 %v7595_v44, %v4123_v5 }
 0x506   : > { %v4490_v38 = vadd.f32 %v4458_v11, %v4155_v41  ;;  %v4521_v42 = vmax.f32 %v4489_v61, 0.0  ;;  %v4160_v61 = vadd.f32 %v7595_v44, %v4121_v1 }
 0x507   : > { %v4488_v39 = vadd.f32 %v4456_v35, %v4153_v52  ;;  %v5977_v12 = vpop.f32.mrb[116].mxu0  ;;  %v4519_v19 = vmax.f32 %v4487_v60, 0.0  ;;  %v4163_v60 = vadd.f32 %v7595_v44, %v4124_v55 }
 0x508   : > { %v4522_v40 = vmax.f32 %v4490_v38, 0.0  ;;  %v4422_v13 = vmul.f32 %v5977_v12, %v7589_v15  ;;  %v4346_v50 = vpop.f32.mrb[117].mxu0  ;;  %v4161_v38 = vadd.f32 %v7595_v44, %v4122_v0  ;;  %v4127_v12 = vmul.f32 %v7573_v51, %v7584_v10 }
 0x509   : > { %v4520_v58 = vmax.f32 %v4488_v39, 0.0  ;;  %v4420_v28 = vmul.f32 %v7589_v15, %v4346_v50  ;;  %v5978_v46 = vpop.f32.mrb[118].mxu0  ;;  %v4128_v50 = vmul.f32 %v7577_v8, %v7584_v10 }
 0x50a   : > { %v5076_v57 = vpack.c.bf16 %v4522_v40, %v4521_v42  ;;  %v4461_v30 = vadd.f32 %v7601_v25, %v4422_v13  ;;  %v4423_v53 = vmul.f32 %v5978_v46, %v7589_v15  ;;  %v4349_v63 = vpop.f32.mrb[119].mxu0  ;;  %v4125_v42 = vmul.f32 %v7584_v10, %v7575_v14 }
 0x50b   : > { %v5071_v45 = vpack.c.bf16 %v4520_v58, %v4519_v19  ;;  %v4459_v6 = vadd.f32 %v7601_v25, %v4420_v28  ;;  %v4421_v27 = vmul.f32 %v7589_v15, %v4349_v63  ;;  %v4126_v46 = vmul.f32 %v7584_v10, %v7579_v47 }
 0x50c   : > { %5116 = vst [vmem:[%s7632_s17 + $0x48] sm:$0xff] %v5076_v57   ;;  %v4493_v59 = vadd.f32 %v4461_v30, %v4158_v18  ;;  %v4462_v48 = vadd.f32 %v7601_v25, %v4423_v53  ;;  %v4166_v30 = vadd.f32 %v7595_v44, %v4127_v12 }
 0x50d   : > { %5115 = vst [vmem:[%s7632_s17 + $0x40] sm:$0xff] %v5071_v45   ;;  %v4491_v22 = vadd.f32 %v4459_v6, %v4156_v16  ;;  %v4460_v29 = vadd.f32 %v7601_v25, %v4421_v27  ;;  %v4164_v45 = vadd.f32 %v7595_v44, %v4125_v42  ;;  %v4167_v27 = vadd.f32 %v7595_v44, %v4128_v50 }
 0x50e   : > { %v4494_v24 = vadd.f32 %v4462_v48, %v4159_v34  ;;  %v4525_v20 = vmax.f32 %v4493_v59, 0.0  ;;  %v4165_v48 = vadd.f32 %v7595_v44, %v4126_v46 }
 0x50f   : > { %v4492_v54 = vadd.f32 %v4460_v29, %v4157_v23  ;;  %v5981_v26 = vpop.f32.mrb[120].mxu0  ;;  %v4523_v4 = vmax.f32 %v4491_v22, 0.0 }
 0x510   : > { %v4526_v33 = vmax.f32 %v4494_v24, 0.0  ;;  %v4426_v56 = vmul.f32 %v5981_v26, %v7589_v15  ;;  %v4362_v62 = vpop.f32.mrb[121].mxu0 }
 0x511   : > { %v4524_v37 = vmax.f32 %v4492_v54, 0.0  ;;  %v4424_v43 = vmul.f32 %v7589_v15, %v4362_v62  ;;  %v5982_v7 = vpop.f32.mrb[122].mxu0 }
 0x512   : > { %v5086_v32 = vpack.c.bf16 %v4526_v33, %v4525_v20  ;;  %v4465_v17 = vadd.f32 %v7601_v25, %v4426_v56  ;;  %v4427_v21 = vmul.f32 %v5982_v7, %v7589_v15  ;;  %v4365_v41 = vpop.f32.mrb[123].mxu0 }
 0x513   : > { %v5081_v11 = vpack.c.bf16 %v4524_v37, %v4523_v4  ;;  %v4463_v52 = vadd.f32 %v7601_v25, %v4424_v43  ;;  %v4425_v49 = vmul.f32 %v7589_v15, %v4365_v41 }
 0x514   : > { %5118 = vst [vmem:[%s7632_s17 + $0x58] sm:$0xff] %v5086_v32   ;;  %v4497_v35 = vadd.f32 %v4465_v17, %v4162_v9  ;;  %v4466_v36 = vadd.f32 %v7601_v25, %v4427_v21 }
 0x515   : > { %5117 = vst [vmem:[%s7632_s17 + $0x50] sm:$0xff] %v5081_v11   ;;  %v4495_v31 = vadd.f32 %v4463_v52, %v4160_v61  ;;  %v4464_v39 = vadd.f32 %v7601_v25, %v4425_v49 }
 0x516   : > { %v4498_v2 = vadd.f32 %v4466_v36, %v4163_v60  ;;  %v4529_v3 = vmax.f32 %v4497_v35, 0.0 }
 0x517   : > { %v4496_v40 = vadd.f32 %v4464_v39, %v4161_v38  ;;  %v5985_v13 = vpop.f32.mrb[124].mxu0  ;;  %v4527_v18 = vmax.f32 %v4495_v31, 0.0 }
 0x518   : > { %v4530_v19 = vmax.f32 %v4498_v2, 0.0  ;;  %v4430_v58 = vmul.f32 %v5985_v13, %v7589_v15  ;;  %v4378_v28 = vpop.f32.mrb[125].mxu0 }
 0x519   : > { %v4528_v51 = vmax.f32 %v4496_v40, 0.0  ;;  %v4428_v57 = vmul.f32 %v7589_v15, %v4378_v28  ;;  %v5986_v14 = vpop.f32.mrb[126].mxu0 }
 0x51a   : > { %v5096_v53 = vpack.c.bf16 %v4530_v19, %v4529_v3  ;;  %v4469_v8 = vadd.f32 %v7601_v25, %v4430_v58  ;;  %v4431_v63 = vmul.f32 %v5986_v14, %v7589_v15  ;;  %v4381_v16 = vpop.f32.mrb[127].mxu0 }
 0x51b   : > { %v5091_v6 = vpack.c.bf16 %v4528_v51, %v4527_v18  ;;  %v4467_v47 = vadd.f32 %v7601_v25, %v4428_v57  ;;  %v4429_v10 = vmul.f32 %v7589_v15, %v4381_v16 }
 0x51c   : > { %5120 = vst [vmem:[%s7632_s17 + $0x68] sm:$0xff] %v5096_v53   ;;  %v4501_v34 = vadd.f32 %v4469_v8, %v4166_v30  ;;  %v4470_v59 = vadd.f32 %v7601_v25, %v4431_v63 }
 0x51d   : > { %5119 = vst [vmem:[%s7632_s17 + $0x60] sm:$0xff] %v5091_v6   ;;  %v4499_v23 = vadd.f32 %v4467_v47, %v4164_v45  ;;  %v4468_v22 = vadd.f32 %v7601_v25, %v4429_v10 }
 0x51e   : > { %v4502_v29 = vadd.f32 %v4470_v59, %v4167_v27  ;;  %v4533_v15 = vmax.f32 %v4501_v34, 0.0 }
 0x51f   : > { %v4500_v5 = vadd.f32 %v4468_v22, %v4165_v48  ;;  %v4531_v1 = vmax.f32 %v4499_v23, 0.0 }
 0x520   : > { %v4534_v24 = vmax.f32 %v4502_v29, 0.0 }
 0x521   : > { %v4532_v54 = vmax.f32 %v4500_v5, 0.0 }
 0x522   : > { %v5106_v26 = vpack.c.bf16 %v4534_v24, %v4533_v15 }
 0x523   : > { %v5101_v44 = vpack.c.bf16 %v4532_v54, %v4531_v1 }
 0x524   : > { %5122 = vst [vmem:[%s7632_s17 + $0x78] sm:$0xff] %v5106_v26  }
 0x525   : > { %5121 = vst [vmem:[%s7632_s17 + $0x70] sm:$0xff] %v5101_v44  }
 0x526   : > { %6619 = shalt.err (!%p6616_p13)
}
 0x527   : > { %s6620_s18 = scalar_lea.hbm %s7776_s8, 2048  ;;  %s6624_s17 = scalar_lea.hbm %s7869_s23, 4096 }
 0x528   : > { %p6621_p9 = scmp.ne.s32.totalorder %s7776_s8, %s6620_s18  ;;  %p6625_p4 = scmp.lt.u32.totalorder %s7776_s8, %s7869_s23 }
 0x529   : > { %p6626_p8 = scmp.lt.u32.totalorder %s6624_s17, %s6620_s18  ;;  %p6628_p3 = scmp.lt.u32.totalorder %s6620_s18, %s7776_s8 }
 0x52a   : > { %p6622_p0 = pnand %p6621_p9, %p6934_p10 }
 0x52b   : > { %p6627_p6 = por %p6626_p8, %p6625_p4 }
 0x52c   : > { %p6623_p11 = pneg %p6622_p0 }
 0x52d   : > { %p6629_p5 = por %p6628_p3, %p6627_p6 }
 0x52f   : > { %p6630_p7 = pnand %p6629_p5, %p6623_p11 }
 0x531   : > { %6633 = shalt.err (!%p6630_p7)
}
 0x532   : > { %s6691_s25 = smov 64   ;;  %s6692_s14 = smov 4  }
 0x533   : > { %6261 = dma.vmem_to_hbm [thread:$0]  (%p6934_p10), %s7778_s20, 2048, %s7776_s8, %s4696_s29, %s6691_s25, %s6691_s25, %s6692_s14  }
 0x534 PF: > { %s7870_s16 = sld [smem:[#allocation17_spill]]  ;;  %s7871_s15 = sld [smem:[#allocation18_spill]] }
 0x535   : > { %p7873_p1 = scmp.ge.s32.totalorder %s6680_s28, 2 }
 0x53a   : > { %s4724_s24 = sand.u32 1, %s7870_s16   ;;  %p7872_p12 = scmp.ne.s32.totalorder %s7871_s15, 0 }
 0x53b   : > { %s4725_s18 = scalar_lea.sflag [#allocation5], %s4724_s24 }
 0x53c   : > { %p6281_p2 = pnand %p7873_p1, %p7872_p12 }
 0x53e   : > { %6663 = dma.done.wait (!%p6281_p2), %s4725_s18, 2048  }
 0x53f   : > { %6665 = vsyncadd (!%p6281_p2), %s4725_s18, 4294965248  ;;  %p28_p13 = scmp.ge.s32.totalorder %s6924_s13, 4   ;;  %s7874_s25 = smov %s6672_s26 }
 0x540   : > { %s7875_s26 = smov %s6676_s27  ;;  %s7876_s27 = smov %s6940_s30 }
 0x541   : > { %s7877_s28 = smov %s6924_s13  ;;  %30 = sbr.rel (!%p28_p13) target bundleno = 13 (0xd), region = 136 }
 0x548   :  { %4730 = vsyncpa [#allocation4], 1 }
 0x549   :  { %4732 = vsyncpa [#allocation4 + $0x1], 1 }
 0x54a   :  { %4733 = vsyncpa [#allocation7], 1 }
 0x54b   :  { %4734 = vsyncpa [#allocation10], 1 }
 0x54c   :  { %4735 = vsyncpa [#allocation5], 1 }
 0x54d   :  { %4737 = vsyncpa [#allocation5 + $0x1], 1 }

</bundles_post_ra>
